<compile_context>
chip_gen: v7x
topology: tpu7x:2x2x1
jax: 0.10.0
libtpu: 0.0.40
codegen_flags: <defaults>
</compile_context>

<pallas_src>
import jax
import jax.numpy as jnp
from jax import lax
from jax.experimental import pallas as pl
from jax.experimental.pallas import tpu as pltpu


def _round_up(x, m):
    return (x + m - 1) // m * m


def _pad2(a, shape):
    return jnp.zeros(shape, a.dtype).at[: a.shape[0], : a.shape[1]].set(a)


def _make_kernel(HW, W, k, d, residual):
    p = (k // 2) * d
    offsets = [j * d - p for j in range(k)]

    def kernel(x_ref, win_ref, w1_ref, b1_ref, w2_ref, b2_ref, wout_ref,
               mw_ref, mh_ref, o_ref):
        bt = x_ref.shape[0]
        M = bt * HW
        cpo = o_ref.shape[-1]

        x = x_ref[...].reshape(M, x_ref.shape[-1])           # f32 (M, cpi)

        # --- conv_in: 1x1 conv == channel matmul (bf16 MXU), ReLU in f32 ---
        y = jnp.maximum(
            jnp.dot(x.astype(jnp.bfloat16), win_ref[...],
                    preferred_element_type=jnp.float32), 0.0)

        def directional_conv(y, w_ref, b_ref, m_ref, row_stride):
            # Build the k taps (rolled + boundary-masked feature maps),
            # concatenate along lanes, contract in a single MXU matmul.
            taps = []
            for j, off in enumerate(offsets):
                shift = (-off * row_stride) % M
                t = y if shift == 0 else pltpu.roll(y, shift=shift, axis=0)
                if off != 0:
                    t = t * m_ref[j]                         # (M, 1) 0/1 mask
                taps.append(t)
            tap_cat = jnp.concatenate(taps, axis=-1).astype(jnp.bfloat16)
            z = jnp.dot(tap_cat, w_ref[...],
                        preferred_element_type=jnp.float32)
            return jnp.maximum(z + b_ref[...], 0.0)          # bias once, f32

        # --- conv_1xk: conv along width (flat row-stride 1) ---
        y = directional_conv(y, w1_ref, b1_ref, mw_ref, 1)
        # --- conv_kx1: conv along height (flat row-stride W) ---
        y = directional_conv(y, w2_ref, b2_ref, mh_ref, W)

        # --- conv_out: 1x1 conv, optional residual, ReLU ---
        out = jnp.dot(y.astype(jnp.bfloat16), wout_ref[...],
                      preferred_element_type=jnp.float32)
        if residual:
            out = out + x
        o_ref[...] = jnp.maximum(out, 0.0).reshape(bt, HW, cpo)

    return kernel


def bottleneck_ddr2d(x_nhwc, oihw_params, *, kernel=3, stride=1, dilation=1,
                     residual=True, batch_tile=None):
    """BottleneckDDR2d forward. Takes NHWC input and PyTorch OIHW weights."""
    # TODO(synk): stride > 1 (strided output) not implemented; module default is 1.
    assert stride == 1, "only stride=1 supported"
    k, d = kernel, dilation
    B, H, W, c_in = x_nhwc.shape
    w_in_oihw, w1_oihw, b1, w2_oihw, b2, w_out_oihw = oihw_params
    c = w_in_oihw.shape[0]
    c_out = w_out_oihw.shape[0]
    if residual:
        assert c_in == c_out, "residual path requires c_in == c_out"
    HW = H * W

    # ---- channel padding to lane width (128); weights cast to bf16 ----
    cpi = _round_up(c_in, 128)
    cp = _round_up(c, 128)
    cpo = _round_up(c_out, 128)

    w_in = _pad2(w_in_oihw[:, :, 0, 0].T, (cpi, cp)).astype(jnp.bfloat16)
    w1 = jnp.concatenate(                                   # fused taps (k*cp, cp)
        [_pad2(w1_oihw[:, :, 0, j].T, (cp, cp)) for j in range(k)],
        axis=0).astype(jnp.bfloat16)
    w2 = jnp.concatenate(                                   # fused taps (k*cp, cp)
        [_pad2(w2_oihw[:, :, j, 0].T, (cp, cp)) for j in range(k)],
        axis=0).astype(jnp.bfloat16)
    w_out = _pad2(w_out_oihw[:, :, 0, 0].T, (cp, cpo)).astype(jnp.bfloat16)
    b1p = _pad2(b1.reshape(1, c), (1, cp)).astype(jnp.float32)
    b2p = _pad2(b2.reshape(1, c), (1, cp)).astype(jnp.float32)

    # ---- batch tiling: amortize per-step overhead, keep >= 2 grid steps
    #      (both v7x TensorCores busy) whenever B allows ----
    if batch_tile is None:
        bt = max(1, min(B, 512 // HW if HW <= 512 else 1))
        while bt > 1 and (B % bt != 0 or B // bt < 2):
            bt -= 1
    else:
        bt = batch_tile
    assert B % bt == 0, "batch tile must divide batch"
    grid = (B // bt,)
    M = bt * HW

    # ---- precomputed boundary masks (k, M, 1); no iota/mod in the kernel ----
    p = (k // 2) * d
    q = jnp.arange(HW, dtype=jnp.int32)
    w_idx, h_idx = q % W, q // W
    mw = jnp.stack([((w_idx + (j * d - p) >= 0) & (w_idx + (j * d - p) < W))
                    for j in range(k)]).astype(jnp.float32)
    mh = jnp.stack([((h_idx + (j * d - p) >= 0) & (h_idx + (j * d - p) < H))
                    for j in range(k)]).astype(jnp.float32)
    mw = jnp.tile(mw, (1, bt))[:, :, None]                   # (k, M, 1)
    mh = jnp.tile(mh, (1, bt))[:, :, None]                   # (k, M, 1)

    # ---- lane-dense, channel-padded input ----
    x_flat = jnp.zeros((B, HW, cpi), jnp.float32)
    x_flat = x_flat.at[:, :, :c_in].set(x_nhwc.reshape(B, HW, c_in))

    kern = _make_kernel(HW, W, k, d, residual)

    out_flat = pl.pallas_call(
        kern,
        out_shape=jax.ShapeDtypeStruct((B, HW, cpo), jnp.float32),
        grid_spec=pltpu.PrefetchScalarGridSpec(
            num_scalar_prefetch=0,
            grid=grid,
            in_specs=[
                pl.BlockSpec((bt, HW, cpi), lambda b: (b, 0, 0)),   # x
                pl.BlockSpec((cpi, cp), lambda b: (0, 0)),          # w_in
                pl.BlockSpec((k * cp, cp), lambda b: (0, 0)),       # w_1xk fused
                pl.BlockSpec((1, cp), lambda b: (0, 0)),            # b_1xk
                pl.BlockSpec((k * cp, cp), lambda b: (0, 0)),       # w_kx1 fused
                pl.BlockSpec((1, cp), lambda b: (0, 0)),            # b_kx1
                pl.BlockSpec((cp, cpo), lambda b: (0, 0)),          # w_out
                pl.BlockSpec((k, M, 1), lambda b: (0, 0, 0)),       # width masks
                pl.BlockSpec((k, M, 1), lambda b: (0, 0, 0)),       # height masks
            ],
            out_specs=pl.BlockSpec((bt, HW, cpo), lambda b: (b, 0, 0)),
        ),
        compiler_params=pltpu.CompilerParams(
            dimension_semantics=("parallel",)),
    )(x_flat, w_in, w1, b1p, w2, b2p, w_out, mw, mh)

    return out_flat[:, :, :c_out].reshape(B, H, W, c_out)


def reference_nchw(x, oihw_params, *, kernel=3, stride=1, dilation=1,
                   residual=True):
    """Pure-JAX reference mirroring the PyTorch module (NCHW / OIHW)."""
    w_in, w1, b1, w2, b2, w_out = oihw_params
    k, s, d = kernel, stride, dilation
    p = k // 2 * d
    dn = ('NCHW', 'OIHW', 'NCHW')
    y = lax.conv_general_dilated(x, w_in, (1, 1), 'VALID', dimension_numbers=dn)
    y = jnp.maximum(y, 0.0)
    y = lax.conv_general_dilated(y, w1, (s, s), [(0, 0), (p, p)],
                                 rhs_dilation=(1, d), dimension_numbers=dn)
    y = jnp.maximum(y + b1[None, :, None, None], 0.0)
    y = lax.conv_general_dilated(y, w2, (s, s), [(p, p), (0, 0)],
                                 rhs_dilation=(d, 1), dimension_numbers=dn)
    y = jnp.maximum(y + b2[None, :, None, None], 0.0)
    y = lax.conv_general_dilated(y, w_out, (1, 1), 'VALID', dimension_numbers=dn)
    if residual:
        y = y + x
    return jnp.maximum(y, 0.0)


if __name__ == "__main__":
    # Small shapes: batch=2, c_in=c_out=8, bottleneck c=4, spatial 16x16, k=3.
    B, c_in, c, c_out, H, W = 2, 8, 4, 8, 16, 16
    k, s, d, residual = 3, 1, 1, True

    key = jax.random.PRNGKey(0)
    ks = jax.random.split(key, 7)
    x_nchw = jax.random.normal(ks[0], (B, c_in, H, W), jnp.float32)

    def q(a):  # weights "deployed" in bf16 (the kernel's MXU input precision)
        return a.astype(jnp.bfloat16).astype(jnp.float32)

    # Deterministic synthetic parameters in PyTorch OIHW layout.
    w_in_oihw = q(jax.random.normal(ks[1], (c, c_in, 1, 1), jnp.float32) * 0.3)
    w1_oihw = q(jax.random.normal(ks[2], (c, c, 1, k), jnp.float32) * 0.3)
    b1 = jax.random.normal(ks[3], (c,), jnp.float32) * 0.1
    w2_oihw = q(jax.random.normal(ks[4], (c, c, k, 1), jnp.float32) * 0.3)
    b2 = jax.random.normal(ks[5], (c,), jnp.float32) * 0.1
    w_out_oihw = q(jax.random.normal(ks[6], (c_out, c, 1, 1), jnp.float32) * 0.3)

    params = (w_in_oihw, w1_oihw, b1, w2_oihw, b2, w_out_oihw)
    x_nhwc = jnp.transpose(x_nchw, (0, 2, 3, 1))

    out_nhwc = bottleneck_ddr2d(x_nhwc, params, kernel=k, stride=s,
                                dilation=d, residual=residual)
    out_nhwc = jax.block_until_ready(out_nhwc)

    ref_nchw = reference_nchw(x_nchw, params, kernel=k, stride=s,
                              dilation=d, residual=residual)
    ref_nhwc = jnp.transpose(ref_nchw, (0, 2, 3, 1))

    # bf16 MXU inputs (activations quantized between layers) -> loosened tol.
    err = float(jnp.max(jnp.abs(out_nhwc - ref_nhwc)))
    if err > 5e-2:
        raise AssertionError(f"mismatch vs reference, max abs err = {err}")
    print("KERNEL_OK")
</pallas_src>

<mosaic_0001>
module attributes {stable_mosaic.version = 11 : i64} {
  func.func @kernel(%arg0: i32, %arg1: memref<1x256x128xf32, #tpu.memory_space<vmem>>, %arg2: memref<128x128xbf16, #tpu.memory_space<vmem>>, %arg3: memref<384x128xbf16, #tpu.memory_space<vmem>>, %arg4: memref<1x128xf32, #tpu.memory_space<vmem>>, %arg5: memref<384x128xbf16, #tpu.memory_space<vmem>>, %arg6: memref<1x128xf32, #tpu.memory_space<vmem>>, %arg7: memref<128x128xbf16, #tpu.memory_space<vmem>>, %arg8: memref<3x256x1xf32, #tpu.memory_space<vmem>>, %arg9: memref<3x256x1xf32, #tpu.memory_space<vmem>>, %arg10: memref<1x256x128xf32, #tpu.memory_space<vmem>>) attributes {dimension_semantics = [#tpu.dimension_semantics<parallel>], iteration_bounds = array<i64: 2>, scalar_prefetch = 0 : i64, scratch_operands = 0 : i64, tpu.core_type = #tpu.core_type<tc>, window_params = [{transform_indices = @transform_0, window_bounds = array<i64: 1, 256, 128>}, {pipeline_mode = #tpu.pipeline_mode<synchronous>, transform_indices = @transform_1, window_bounds = array<i64: 128, 128>}, {pipeline_mode = #tpu.pipeline_mode<synchronous>, transform_indices = @transform_2, window_bounds = array<i64: 384, 128>}, {pipeline_mode = #tpu.pipeline_mode<synchronous>, transform_indices = @transform_3, window_bounds = array<i64: 1, 128>}, {pipeline_mode = #tpu.pipeline_mode<synchronous>, transform_indices = @transform_4, window_bounds = array<i64: 384, 128>}, {pipeline_mode = #tpu.pipeline_mode<synchronous>, transform_indices = @transform_5, window_bounds = array<i64: 1, 128>}, {pipeline_mode = #tpu.pipeline_mode<synchronous>, transform_indices = @transform_6, window_bounds = array<i64: 128, 128>}, {pipeline_mode = #tpu.pipeline_mode<synchronous>, transform_indices = @transform_7, window_bounds = array<i64: 3, 256, 1>}, {pipeline_mode = #tpu.pipeline_mode<synchronous>, transform_indices = @transform_8, window_bounds = array<i64: 3, 256, 1>}, {transform_indices = @transform_9, window_bounds = array<i64: 1, 256, 128>}]} {
    %c0 = arith.constant 0 : index
    %c0_0 = arith.constant 0 : index
    %c0_1 = arith.constant 0 : index
    %0 = vector.load %arg1[%c0, %c0_0, %c0_1] : memref<1x256x128xf32, #tpu.memory_space<vmem>>, vector<1x256x128xf32>
    %1 = vector.shape_cast %0 : vector<1x256x128xf32> to vector<256x128xf32>
    %2 = arith.truncf %1 : vector<256x128xf32> to vector<256x128xbf16>
    %c0_2 = arith.constant 0 : index
    %c0_3 = arith.constant 0 : index
    %3 = vector.load %arg2[%c0_2, %c0_3] : memref<128x128xbf16, #tpu.memory_space<vmem>>, vector<128x128xbf16>
    %cst = arith.constant dense<0.000000e+00> : vector<256x128xf32>
    %4 = tpu.matmul %2, %3, %cst {dimension_numbers = #tpu.dot_dimension_numbers<[1], [0], [0], [1], [0, 0, 1, 1], [], []>} : vector<256x128xbf16>, vector<128x128xbf16>, vector<256x128xf32> -> vector<256x128xf32>
    %cst_4 = arith.constant 0.000000e+00 : f32
    %5 = vector.broadcast %cst_4 : f32 to vector<256x128xf32>
    %6 = arith.maximumf %4, %5 : vector<256x128xf32>
    %c1_i32 = arith.constant 1 : i32
    %7 = tpu.dynamic_rotate %6 by %c1_i32 dim 0 : vector<256x128xf32>, i32 -> vector<256x128xf32>
    %c0_5 = arith.constant 0 : index
    %c0_6 = arith.constant 0 : index
    %c0_7 = arith.constant 0 : index
    %8 = vector.load %arg8[%c0_5, %c0_6, %c0_7] : memref<3x256x1xf32, #tpu.memory_space<vmem>>, vector<1x256x1xf32>
    %9 = vector.shape_cast %8 : vector<1x256x1xf32> to vector<256x1xf32>
    %10 = vector.broadcast %9 : vector<256x1xf32> to vector<256x128xf32>
    %11 = arith.mulf %7, %10 : vector<256x128xf32>
    %c255_i32 = arith.constant 255 : i32
    %12 = tpu.dynamic_rotate %6 by %c255_i32 dim 0 : vector<256x128xf32>, i32 -> vector<256x128xf32>
    %c2 = arith.constant 2 : index
    %c0_8 = arith.constant 0 : index
    %c0_9 = arith.constant 0 : index
    %13 = vector.load %arg8[%c2, %c0_8, %c0_9] : memref<3x256x1xf32, #tpu.memory_space<vmem>>, vector<1x256x1xf32>
    %14 = vector.shape_cast %13 : vector<1x256x1xf32> to vector<256x1xf32>
    %15 = vector.broadcast %14 : vector<256x1xf32> to vector<256x128xf32>
    %16 = arith.mulf %12, %15 : vector<256x128xf32>
    %17 = tpu.concatenate %11, %6, %16 in 1 : vector<256x128xf32>, vector<256x128xf32>, vector<256x128xf32> -> vector<256x384xf32>
    %18 = arith.truncf %17 : vector<256x384xf32> to vector<256x384xbf16>
    %c0_10 = arith.constant 0 : index
    %c0_11 = arith.constant 0 : index
    %19 = vector.load %arg3[%c0_10, %c0_11] : memref<384x128xbf16, #tpu.memory_space<vmem>>, vector<384x128xbf16>
    %cst_12 = arith.constant dense<0.000000e+00> : vector<256x128xf32>
    %20 = tpu.matmul %18, %19, %cst_12 {dimension_numbers = #tpu.dot_dimension_numbers<[1], [0], [0], [1], [0, 0, 1, 1], [], []>} : vector<256x384xbf16>, vector<384x128xbf16>, vector<256x128xf32> -> vector<256x128xf32>
    %c0_13 = arith.constant 0 : index
    %c0_14 = arith.constant 0 : index
    %21 = vector.load %arg4[%c0_13, %c0_14] : memref<1x128xf32, #tpu.memory_space<vmem>>, vector<1x128xf32>
    %22 = vector.broadcast %21 : vector<1x128xf32> to vector<256x128xf32>
    %23 = arith.addf %20, %22 : vector<256x128xf32>
    %cst_15 = arith.constant 0.000000e+00 : f32
    %24 = vector.broadcast %cst_15 : f32 to vector<256x128xf32>
    %25 = arith.maximumf %23, %24 : vector<256x128xf32>
    %c16_i32 = arith.constant 16 : i32
    %26 = tpu.dynamic_rotate %25 by %c16_i32 dim 0 : vector<256x128xf32>, i32 -> vector<256x128xf32>
    %c0_16 = arith.constant 0 : index
    %c0_17 = arith.constant 0 : index
    %c0_18 = arith.constant 0 : index
    %27 = vector.load %arg9[%c0_16, %c0_17, %c0_18] : memref<3x256x1xf32, #tpu.memory_space<vmem>>, vector<1x256x1xf32>
    %28 = vector.shape_cast %27 : vector<1x256x1xf32> to vector<256x1xf32>
    %29 = vector.broadcast %28 : vector<256x1xf32> to vector<256x128xf32>
    %30 = arith.mulf %26, %29 : vector<256x128xf32>
    %c240_i32 = arith.constant 240 : i32
    %31 = tpu.dynamic_rotate %25 by %c240_i32 dim 0 : vector<256x128xf32>, i32 -> vector<256x128xf32>
    %c2_19 = arith.constant 2 : index
    %c0_20 = arith.constant 0 : index
    %c0_21 = arith.constant 0 : index
    %32 = vector.load %arg9[%c2_19, %c0_20, %c0_21] : memref<3x256x1xf32, #tpu.memory_space<vmem>>, vector<1x256x1xf32>
    %33 = vector.shape_cast %32 : vector<1x256x1xf32> to vector<256x1xf32>
    %34 = vector.broadcast %33 : vector<256x1xf32> to vector<256x128xf32>
    %35 = arith.mulf %31, %34 : vector<256x128xf32>
    %36 = tpu.concatenate %30, %25, %35 in 1 : vector<256x128xf32>, vector<256x128xf32>, vector<256x128xf32> -> vector<256x384xf32>
    %37 = arith.truncf %36 : vector<256x384xf32> to vector<256x384xbf16>
    %c0_22 = arith.constant 0 : index
    %c0_23 = arith.constant 0 : index
    %38 = vector.load %arg5[%c0_22, %c0_23] : memref<384x128xbf16, #tpu.memory_space<vmem>>, vector<384x128xbf16>
    %cst_24 = arith.constant dense<0.000000e+00> : vector<256x128xf32>
    %39 = tpu.matmul %37, %38, %cst_24 {dimension_numbers = #tpu.dot_dimension_numbers<[1], [0], [0], [1], [0, 0, 1, 1], [], []>} : vector<256x384xbf16>, vector<384x128xbf16>, vector<256x128xf32> -> vector<256x128xf32>
    %c0_25 = arith.constant 0 : index
    %c0_26 = arith.constant 0 : index
    %40 = vector.load %arg6[%c0_25, %c0_26] : memref<1x128xf32, #tpu.memory_space<vmem>>, vector<1x128xf32>
    %41 = vector.broadcast %40 : vector<1x128xf32> to vector<256x128xf32>
    %42 = arith.addf %39, %41 : vector<256x128xf32>
    %cst_27 = arith.constant 0.000000e+00 : f32
    %43 = vector.broadcast %cst_27 : f32 to vector<256x128xf32>
    %44 = arith.maximumf %42, %43 : vector<256x128xf32>
    %45 = arith.truncf %44 : vector<256x128xf32> to vector<256x128xbf16>
    %c0_28 = arith.constant 0 : index
    %c0_29 = arith.constant 0 : index
    %46 = vector.load %arg7[%c0_28, %c0_29] : memref<128x128xbf16, #tpu.memory_space<vmem>>, vector<128x128xbf16>
    %cst_30 = arith.constant dense<0.000000e+00> : vector<256x128xf32>
    %47 = tpu.matmul %45, %46, %cst_30 {dimension_numbers = #tpu.dot_dimension_numbers<[1], [0], [0], [1], [0, 0, 1, 1], [], []>} : vector<256x128xbf16>, vector<128x128xbf16>, vector<256x128xf32> -> vector<256x128xf32>
    %48 = arith.addf %47, %1 : vector<256x128xf32>
    %cst_31 = arith.constant 0.000000e+00 : f32
    %49 = vector.broadcast %cst_31 : f32 to vector<256x128xf32>
    %50 = arith.maximumf %48, %49 : vector<256x128xf32>
    %51 = vector.shape_cast %50 : vector<256x128xf32> to vector<1x256x128xf32>
    %c0_32 = arith.constant 0 : index
    %c0_33 = arith.constant 0 : index
    %c0_34 = arith.constant 0 : index
    %52 = vector.load %arg10[%c0_32, %c0_33, %c0_34] : memref<1x256x128xf32, #tpu.memory_space<vmem>>, vector<1x256x128xf32>
    tpu.vector_store %arg10[%c0_32, %c0_33, %c0_34], %51 {strides = array<i32>} : memref<1x256x128xf32, #tpu.memory_space<vmem>>, vector<1x256x128xf32>,
    return
  }
  func.func @transform_0(%arg0: i32) -> (i32, i32, i32) {
    %c0_i32 = arith.constant 0 : i32
    %c0_i32_0 = arith.constant 0 : i32
    %c0_i32_1 = arith.constant 0 : i32
    return %arg0, %c0_i32, %c0_i32_0 : i32, i32, i32
  }
  func.func @transform_1(%arg0: i32) -> (i32, i32) {
    %c0_i32 = arith.constant 0 : i32
    %c0_i32_0 = arith.constant 0 : i32
    %c0_i32_1 = arith.constant 0 : i32
    return %c0_i32, %c0_i32_0 : i32, i32
  }
  func.func @transform_2(%arg0: i32) -> (i32, i32) {
    %c0_i32 = arith.constant 0 : i32
    %c0_i32_0 = arith.constant 0 : i32
    %c0_i32_1 = arith.constant 0 : i32
    return %c0_i32, %c0_i32_0 : i32, i32
  }
  func.func @transform_3(%arg0: i32) -> (i32, i32) {
    %c0_i32 = arith.constant 0 : i32
    %c0_i32_0 = arith.constant 0 : i32
    %c0_i32_1 = arith.constant 0 : i32
    return %c0_i32, %c0_i32_0 : i32, i32
  }
  func.func @transform_4(%arg0: i32) -> (i32, i32) {
    %c0_i32 = arith.constant 0 : i32
    %c0_i32_0 = arith.constant 0 : i32
    %c0_i32_1 = arith.constant 0 : i32
    return %c0_i32, %c0_i32_0 : i32, i32
  }
  func.func @transform_5(%arg0: i32) -> (i32, i32) {
    %c0_i32 = arith.constant 0 : i32
    %c0_i32_0 = arith.constant 0 : i32
    %c0_i32_1 = arith.constant 0 : i32
    return %c0_i32, %c0_i32_0 : i32, i32
  }
  func.func @transform_6(%arg0: i32) -> (i32, i32) {
    %c0_i32 = arith.constant 0 : i32
    %c0_i32_0 = arith.constant 0 : i32
    %c0_i32_1 = arith.constant 0 : i32
    return %c0_i32, %c0_i32_0 : i32, i32
  }
  func.func @transform_7(%arg0: i32) -> (i32, i32, i32) {
    %c0_i32 = arith.constant 0 : i32
    %c0_i32_0 = arith.constant 0 : i32
    %c0_i32_1 = arith.constant 0 : i32
    %c0_i32_2 = arith.constant 0 : i32
    return %c0_i32, %c0_i32_0, %c0_i32_1 : i32, i32, i32
  }
  func.func @transform_8(%arg0: i32) -> (i32, i32, i32) {
    %c0_i32 = arith.constant 0 : i32
    %c0_i32_0 = arith.constant 0 : i32
    %c0_i32_1 = arith.constant 0 : i32
    %c0_i32_2 = arith.constant 0 : i32
    return %c0_i32, %c0_i32_0, %c0_i32_1 : i32, i32, i32
  }
  func.func @transform_9(%arg0: i32) -> (i32, i32, i32) {
    %c0_i32 = arith.constant 0 : i32
    %c0_i32_0 = arith.constant 0 : i32
    %c0_i32_1 = arith.constant 0 : i32
    return %arg0, %c0_i32, %c0_i32_0 : i32, i32, i32
  }
}

</mosaic_0001>

<bundles_post_ra>
// kernel: tpu_custom_call.1
= control target key start
LH: loop header
LB: loop body
LE: loop exit
PB: predicated region body
PF: predicated region fallthrough
CT: control target
= control target key end

     0   :  { %14 = vsyncpa [#allocation3], 0  ;;  %s6448_s0 = inlined_call_operand.vmem [shape: f32[2,256,128], index: 0, kind: input, shape index: {}]   ;;  %s6449_s1 = inlined_call_operand.vmem [shape: bf16[128,128], index: 1, kind: input, shape index: {}]   ;;  %s6450_s2 = inlined_call_operand.vmem [shape: bf16[384,128], index: 2, kind: input, shape index: {}]   ;;  %s6451_s3 = inlined_call_operand.vmem [shape: f32[1,128], index: 3, kind: input, shape index: {}]   ;;  %s6452_s4 = inlined_call_operand.vmem [shape: bf16[384,128], index: 4, kind: input, shape index: {}]   ;;  %s6453_s5 = inlined_call_operand.vmem [shape: f32[1,128], index: 5, kind: input, shape index: {}]   ;;  %s6454_s6 = inlined_call_operand.vmem [shape: bf16[128,128], index: 6, kind: input, shape index: {}]   ;;  %s6455_s7 = inlined_call_operand.vmem [shape: f32[3,256,1], index: 7, kind: input, shape index: {}]   ;;  %s6456_s8 = inlined_call_operand.vmem [shape: f32[3,256,1], index: 8, kind: input, shape index: {}]   ;;  %s6457_s9 = inlined_call_operand.hbm [shape: f32[2,256,128], index: 9, kind: output, shape index: {}]  }
   0x1   :  { %16 = vsyncpa [#allocation3 + $0x1], 0  ;;  %s4148_s30 = smov 0   ;;  %s4150_s10 = smov 0  }
   0x2   :  { %s4152_s11 = smov 0   ;;  %s4154_s12 = smov 0  }
   0x3 LB: > { %s4169_s13 = sadd.s32 4294967295, %s4092_s12   ;;  %s3250_s14 = sadd.s32 4294967294, %s4092_s12   ;;  %s4092_s12 = sphi %s4154_s12, %s6758_s12   ;;  %s4088_s11 = sphi %s4152_s11, %s6757_s11   ;;  %s4084_s10 = sphi %s4150_s10, %s6756_s10   ;;  %s4080_s30 = sphi %s4148_s30, %s6755_s30  }
   0x4   : > { %s4173_s15 = sadd.s32 1, %s4092_s12   ;;  %s223_s16 = sadd.s32 1, %s4088_s11 }
   0x5   : > { %s220_s17 = ssub.s32 %s4092_s12, %s4173_s15  ;;  %p233_p0 = scmp.ne.s32.totalorder %s4088_s11, %s4084_s10 }
   0x6   : > { %p221_p1 = scmp.eq.s32.totalorder %s220_s17, 0  ;;  %p234_p2 = scmp.eq.s32.totalorder %s4169_s13, 1 }
   0x7   : > { %p239_p3 = scmp.ne.s32.totalorder %s4084_s10, %s4080_s30  ;;  %p240_p4 = scmp.eq.s32.totalorder %s3250_s14, 1 }
   0x8   : > { %s4184_s18 = scalar_select %p221_p1, %s4088_s11, %s223_s16  }
   0x9   : > { %p4186_p5 = por %p234_p2, %p233_p0  ;;  %p4190_p6 = por %p240_p4, %p239_p3 }
   0xa   : > { %p3253_p7 = scmp.ge.s32.totalorder %s4092_s12, 1  ;;  %p290_p8 = scmp.lt.s32.totalorder %s4092_s12, 3 }
   0xc   : > { %p291_p9 = pnand %p3253_p7, %p290_p8 }
   0xe   : > { %294 = sbr.rel (%p291_p9) target bundleno = 1264 (0x4f0), region = 56 }
  0x15   : > { %v706_v0 = vld [vmem:[%s6455_s7 + $0x10] sm:$0xff]  ;;  %v704_v1 = vld [vmem:[%s6455_s7] sm:$0xff]  ;;  %v4094_v2 = vmov 0   ;;  %v707_v4 = vld [vmem:[%s6455_s7 + $0x18] sm:$0xff]  ;;  %p326_p10 = scmp.lt.s32.totalorder %s4169_s13, 1  ;;  %s323_s26 = sand.u32 1, %s4084_s10  }
  0x16   : > { %3949 = vset.pattern.permute.xlu1 %v4094_v2  ;;  %3948 = vset.pattern.permute.xlu0 %v4094_v2  ;;  %v3950_v3 = vld [vmem:[%s6449_s1] sm:$0xff]   ;;  %v705_v5 = vld [vmem:[%s6455_s7 + $0x8] sm:$0xff]  ;;  %v3952_v7 = vld [vmem:[%s6449_s1 + $0x10] sm:$0xff]   ;;  %s3393_s28 = sshll.u32 %s4169_s13, 12 }
  0x17   : > { %748 = vperm.xlu1 %3949, %v706_v0   ;;  %738 = vperm.xlu0 %3948, %v704_v1   ;;  %v3951_v6 = vld [vmem:[%s6449_s1 + $0x8] sm:$0xff]   ;;  %v708_v9 = vld [vmem:[%s6455_s7 + $0x20] sm:$0xff]  ;;  %v3953_v10 = vld [vmem:[%s6449_s1 + $0x18] sm:$0xff]   ;;  %s327_s29 = scalar_select %p326_p10, %s4169_s13, 1 }
  0x18   : > { %3714 = vmatprep.subr.bf16.mxu0 %v3950_v3  ;;  %v709_v8 = vld [vmem:[%s6455_s7 + $0x28] sm:$0xff]  ;;  %v711_v11 = vld [vmem:[%s6455_s7 + $0x38] sm:$0xff]  ;;  %v710_v12 = vld [vmem:[%s6455_s7 + $0x30] sm:$0xff]  ;;  %s6398_s21 = scalar_lea.hbm %s6457_s9, %s3393_s28  ;;  %s6407_s13 = scalar_lea.sflag [#allocation3], %s323_s26 }
  0x19   : > { %3715 = vmatpush3.bf16.msra.mxu0 %v3950_v3  ;;  %v3954_v13 = vld [vmem:[%s6449_s1 + $0x20] sm:$0xff]   ;;  %v713_v14 = vld [vmem:[%s6455_s7 + $0x48] sm:$0xff]  ;;  %v715_v17 = vld [vmem:[%s6455_s7 + $0x58] sm:$0xff]  ;;  %s3392_s24 = sshll.u32 %s327_s29, 8  ;;  %s4095_s29 = smov [#allocation2]  }
  0x1a   : > { %3716 = vmatprep.subr.bf16.mxu0 %v3951_v6  ;;  %v712_v15 = vld [vmem:[%s6455_s7 + $0x40] sm:$0xff]  ;;  %v3955_v16 = vld [vmem:[%s6449_s1 + $0x28] sm:$0xff]   ;;  %v714_v18 = vld [vmem:[%s6455_s7 + $0x50] sm:$0xff]  ;;  %s4267_s22 = scalar_lea.vmem %s6448_s0, %s3392_s24  ;;  %s3254_s24 = sshll.u32 %s323_s26, 8 }
  0x1b   : > { %753 = vperm.xlu1 %3949, %v707_v4   ;;  %743 = vperm.xlu0 %3948, %v705_v5   ;;  %v3956_v19 = vld [vmem:[%s6449_s1 + $0x30] sm:$0xff]   ;;  %v717_v20 = vld [vmem:[%s6455_s7 + $0x68] sm:$0xff]  ;;  %v716_v21 = vld [vmem:[%s6455_s7 + $0x60] sm:$0xff]  ;;  %s6336_s27 = scalar_lea.vmem [#allocation2], %s3254_s24  ;;  %s4034_s23 = sshll.u32 %s4095_s29, 4  ;;  %s4035_s23 = int_to_ptr.vmem [resolvable:$false] %s4034_s23 }
  0x1c   : > { %v3957_v22 = vld [vmem:[%s6449_s1 + $0x38] sm:$0xff]   ;;  %v718_v24 = vld [vmem:[%s6455_s7 + $0x70] sm:$0xff]  ;;  %v721_v27 = vld [vmem:[%s6455_s7 + $0x88] sm:$0xff]  ;;  %s3188_s14 = sshll.u32 %s6336_s27, 4  ;;  %s4036_s25 = scalar_lea.vmem %s4035_s23, 8192  ;;  %s6400_s14 = int_to_ptr.vmem [resolvable:$true] %s3188_s14 }
  0x1d   : > { %3717 = vmatpush3.bf16.msra.mxu0 %v3951_v6  ;;  %v719_v23 = vld [vmem:[%s6455_s7 + $0x78] sm:$0xff]  ;;  %v334_v25 = vld [vmem:[%s4267_s22 + $0x10] sm:$0xff]  ;;  %v720_v28 = vld [vmem:[%s6455_s7 + $0x80] sm:$0xff]  ;;  %p4037_p0 = scmp.lt.s32.totalorder %s6400_s14, %s4035_s23 }
  0x1e   : > { %3718 = vmatprep.subr.bf16.mxu0 %v3952_v7  ;;  %v335_v26 = vld [vmem:[%s4267_s22 + $0x18] sm:$0xff]  ;;  %v3266_v30 = vld [vmem:[%s6455_s7 + $0x208] sm:$0xff]  ;;  %v3265_v31 = vld [vmem:[%s6455_s7 + $0x200] sm:$0xff] }
  0x1f   : > { %763 = vperm.xlu1 %3949, %v709_v8   ;;  %758 = vperm.xlu0 %3948, %v708_v9   ;;  %v365_v29 = vpack.c.bf16 %v335_v26, %v334_v25  ;;  %v338_v32 = vld [vmem:[%s4267_s22 + $0x30] sm:$0xff]  ;;  %v339_v33 = vld [vmem:[%s4267_s22 + $0x38] sm:$0xff]  ;;  %v3270_v41 = vld [vmem:[%s6455_s7 + $0x228] sm:$0xff] }
  0x20   : > { %v3268_v34 = vld [vmem:[%s6455_s7 + $0x218] sm:$0xff]  ;;  %v3267_v35 = vld [vmem:[%s6455_s7 + $0x210] sm:$0xff]  ;;  %v367_v36 = vpack.c.bf16 %v339_v33, %v338_v32  ;;  %v3269_v42 = vld [vmem:[%s6455_s7 + $0x220] sm:$0xff] }
  0x21   : > { %3719 = vmatpush3.bf16.msra.mxu0 %v3952_v7  ;;  %v723_v37 = vld [vmem:[%s6455_s7 + $0x98] sm:$0xff]  ;;  %v722_v38 = vld [vmem:[%s6455_s7 + $0x90] sm:$0xff]  ;;  %v725_v48 = vld [vmem:[%s6455_s7 + $0xa8] sm:$0xff] }
  0x22   : > { %3720 = vmatprep.subr.bf16.mxu0 %v3953_v10  ;;  %v342_v39 = vld [vmem:[%s4267_s22 + $0x50] sm:$0xff]  ;;  %v343_v40 = vld [vmem:[%s4267_s22 + $0x58] sm:$0xff]  ;;  %v724_v49 = vld [vmem:[%s6455_s7 + $0xa0] sm:$0xff] }
  0x23   : > { %773 = vperm.xlu1 %3949, %v711_v11   ;;  %768 = vperm.xlu0 %3948, %v710_v12   ;;  %v369_v43 = vpack.c.bf16 %v343_v40, %v342_v39  ;;  %v3272_v44 = vld [vmem:[%s6455_s7 + $0x238] sm:$0xff]  ;;  %v3271_v45 = vld [vmem:[%s6455_s7 + $0x230] sm:$0xff]  ;;  %v3274_v51 = vld [vmem:[%s6455_s7 + $0x248] sm:$0xff] }
  0x24   : > { %v346_v46 = vld [vmem:[%s4267_s22 + $0x70] sm:$0xff]  ;;  %v347_v47 = vld [vmem:[%s4267_s22 + $0x78] sm:$0xff]  ;;  %v3273_v52 = vld [vmem:[%s6455_s7 + $0x240] sm:$0xff] }
  0x25   : > { %3721 = vmatpush3.bf16.msra.mxu0 %v3953_v10  ;;  %v371_v50 = vpack.c.bf16 %v347_v47, %v346_v46  ;;  %v350_v53 = vld [vmem:[%s4267_s22 + $0x90] sm:$0xff]  ;;  %v351_v54 = vld [vmem:[%s4267_s22 + $0x98] sm:$0xff]  ;;  %v3278_v62 = vld [vmem:[%s6455_s7 + $0x268] sm:$0xff] }
  0x26   : > { %3722 = vmatprep.subr.bf16.mxu0 %v3954_v13  ;;  %v3276_v55 = vld [vmem:[%s6455_s7 + $0x258] sm:$0xff]  ;;  %v3275_v56 = vld [vmem:[%s6455_s7 + $0x250] sm:$0xff]  ;;  %v373_v57 = vpack.c.bf16 %v351_v54, %v350_v53  ;;  %v3277_v63 = vld [vmem:[%s6455_s7 + $0x260] sm:$0xff] }
  0x27   : > { %783 = vperm.xlu1 %3949, %v713_v14   ;;  %778 = vperm.xlu0 %3948, %v712_v15   ;;  %v727_v58 = vld [vmem:[%s6455_s7 + $0xb8] sm:$0xff]  ;;  %v726_v59 = vld [vmem:[%s6455_s7 + $0xb0] sm:$0xff]  ;;  %v729_v5 = vld [vmem:[%s6455_s7 + $0xc8] sm:$0xff] }
  0x28   : > { %v354_v60 = vld [vmem:[%s4267_s22 + $0xb0] sm:$0xff]  ;;  %v355_v61 = vld [vmem:[%s4267_s22 + $0xb8] sm:$0xff]  ;;  %v728_v6 = vld [vmem:[%s6455_s7 + $0xc0] sm:$0xff] }
  0x29   : > { %3723 = vmatpush3.bf16.msra.mxu0 %v3954_v13  ;;  %v375_v0 = vpack.c.bf16 %v355_v61, %v354_v60  ;;  %v3280_v1 = vld [vmem:[%s6455_s7 + $0x278] sm:$0xff]  ;;  %v3279_v2 = vld [vmem:[%s6455_s7 + $0x270] sm:$0xff]  ;;  %v3282_v8 = vld [vmem:[%s6455_s7 + $0x288] sm:$0xff] }
  0x2a   : > { %3724 = vmatprep.subr.bf16.mxu0 %v3955_v16  ;;  %v358_v3 = vld [vmem:[%s4267_s22 + $0xd0] sm:$0xff]  ;;  %v359_v4 = vld [vmem:[%s4267_s22 + $0xd8] sm:$0xff]  ;;  %v3281_v9 = vld [vmem:[%s6455_s7 + $0x280] sm:$0xff] }
  0x2b   : > { %793 = vperm.xlu1 %3949, %v715_v17   ;;  %788 = vperm.xlu0 %3948, %v714_v18   ;;  %v377_v7 = vpack.c.bf16 %v359_v4, %v358_v3  ;;  %v362_v10 = vld [vmem:[%s4267_s22 + $0xf0] sm:$0xff]  ;;  %v363_v11 = vld [vmem:[%s4267_s22 + $0xf8] sm:$0xff]  ;;  %v3286_v17 = vld [vmem:[%s6455_s7 + $0x2a8] sm:$0xff] }
  0x2c   : > { %v3284_v12 = vld [vmem:[%s6455_s7 + $0x298] sm:$0xff]  ;;  %v3283_v13 = vld [vmem:[%s6455_s7 + $0x290] sm:$0xff]  ;;  %v379_v14 = vpack.c.bf16 %v363_v11, %v362_v10  ;;  %v3285_v18 = vld [vmem:[%s6455_s7 + $0x2a0] sm:$0xff] }
  0x2d   : > { %3725 = vmatpush3.bf16.msra.mxu0 %v3955_v16  ;;  %v731_v15 = vld [vmem:[%s6455_s7 + $0xd8] sm:$0xff]  ;;  %v730_v16 = vld [vmem:[%s6455_s7 + $0xd0] sm:$0xff]  ;;  %v3289_v25 = vld [vmem:[%s6455_s7 + $0x2c0] sm:$0xff] }
  0x2e   : > { %3726 = vmatprep.subr.bf16.mxu0 %v3956_v19  ;;  %v3959_v26 = vld [vmem:[%s6450_s2 + $0x88] sm:$0xff]   ;;  %v3961_v32 = vld [vmem:[%s6450_s2 + $0x98] sm:$0xff]   ;;  %v1819_v40 = vld [vmem:[%s6456_s8] sm:$0xff] }
  0x2f   : > { %803 = vperm.xlu1 %3949, %v717_v20   ;;  %798 = vperm.xlu0 %3948, %v716_v21   ;;  %v3287_v20 = vld [vmem:[%s6455_s7 + $0x2b0] sm:$0xff]  ;;  %v733_v21 = vld [vmem:[%s6455_s7 + $0xe8] sm:$0xff]  ;;  %v3965_v46 = vld [vmem:[%s6450_s2 + $0xb8] sm:$0xff]  }
  0x30   : > { %v3294_v33 = vld [vmem:[%s6455_s7 + $0x2e8] sm:$0xff]  ;;  %v1826_v53 = vld [vmem:[%s6456_s8 + $0x38] sm:$0xff]  ;;  %v1825_v54 = vld [vmem:[%s6456_s8 + $0x30] sm:$0xff] }
  0x31   : > { %3727 = vmatpush3.bf16.msra.mxu0 %v3956_v19  ;;  %v3288_v19 = vld [vmem:[%s6455_s7 + $0x2b8] sm:$0xff]  ;;  %v1820_v39 = vld [vmem:[%s6456_s8 + $0x8] sm:$0xff]  ;;  %v1829_v60 = vld [vmem:[%s6456_s8 + $0x50] sm:$0xff] }
  0x32   : > { %3728 = vmatprep.subr.bf16.mxu0 %v3957_v22  ;;  %v3967_v3 = vld [vmem:[%s6450_s2] sm:$0xff]  }
  0x33   : > { %813 = vperm.xlu1 %3949, %v719_v23   ;;  %808 = vperm.xlu0 %3948, %v718_v24   ;;  %v3958_v23 = vld [vmem:[%s6450_s2 + $0x80] sm:$0xff]   ;;  %v3290_v24 = vld [vmem:[%s6455_s7 + $0x2c8] sm:$0xff] }
  0x34   : > { %v1835_v10 = vld [vmem:[%s6456_s8 + $0x80] sm:$0xff] }
  0x35   : > { %3729 = vmatpush3.bf16.msra.mxu0 %v3957_v22  ;;  %v732_v22 = vld [vmem:[%s6455_s7 + $0xe0] sm:$0xff] }
  0x36   : > { %3762 = vmatprep.subr.bf16.mxu0 %v3958_v23 }
  0x37   : > { %823 = vperm.xlu1 %3949, %v721_v27   ;;  %818 = vperm.xlu0 %3948, %v720_v28   ;;  %v3292_v27 = vld [vmem:[%s6455_s7 + $0x2d8] sm:$0xff]  ;;  %v3291_v28 = vld [vmem:[%s6455_s7 + $0x2d0] sm:$0xff] }
  0x38   : > { %3731 = vmatmul.mubr.bf16.vlgmr.msra.gmra.mrb[0].mxu0 %v365_v29  ;;  %v3960_v29 = vld [vmem:[%s6450_s2 + $0x90] sm:$0xff]  }
  0x39   : > { %3763 = vmatpush3.bf16.msra.mxu0 %v3958_v23  ;;  %v3974_v23 = vld [vmem:[%s6450_s2 + $0x60] sm:$0xff]  }
  0x3a   : > { %3764 = vmatprep.subr.bf16.mxu0 %v3959_v26 }
  0x3b   : > { %1033 = vperm.xlu1 %3949, %v3266_v30   ;;  %1028 = vperm.xlu0 %3948, %v3265_v31   ;;  %v735_v30 = vld [vmem:[%s6455_s7 + $0xf8] sm:$0xff]  ;;  %v734_v31 = vld [vmem:[%s6455_s7 + $0xf0] sm:$0xff] }
  0x3d   : > { %3765 = vmatpush3.bf16.msra.mxu0 %v3959_v26  ;;  %v1837_v26 = vld [vmem:[%s6456_s8 + $0x90] sm:$0xff] }
  0x3e   : > { %3766 = vmatprep.subr.bf16.mxu0 %v3960_v29 }
  0x3f   : > { %1043 = vperm.xlu1 %3949, %v3268_v34   ;;  %1038 = vperm.xlu0 %3948, %v3267_v35   ;;  %v3293_v34 = vld [vmem:[%s6455_s7 + $0x2e0] sm:$0xff] }
  0x40   : > { %3735 = vmatmul.mubr.bf16.gmra.mrb[4].mxu0 %v367_v36  ;;  %v3962_v35 = vld [vmem:[%s6450_s2 + $0xa0] sm:$0xff]   ;;  %v3296_v36 = vld [vmem:[%s6455_s7 + $0x2f8] sm:$0xff] }
  0x41   : > { %3767 = vmatpush3.bf16.msra.mxu0 %v3960_v29  ;;  %v3976_v29 = vld [vmem:[%s6450_s2 + $0x68] sm:$0xff]  }
  0x42   : > { %3768 = vmatprep.subr.bf16.mxu0 %v3961_v32 }
  0x43   : > { %833 = vperm.xlu1 %3949, %v723_v37   ;;  %828 = vperm.xlu0 %3948, %v722_v38   ;;  %v3295_v37 = vld [vmem:[%s6455_s7 + $0x2f0] sm:$0xff]  ;;  %v3963_v38 = vld [vmem:[%s6450_s2 + $0xa8] sm:$0xff]  }
  0x45   : > { %3769 = vmatpush3.bf16.msra.mxu0 %v3961_v32  ;;  %v3326_v32 = vld [vmem:[%s6456_s8 + $0x220] sm:$0xff] }
  0x46   : > { %3770 = vmatprep.subr.bf16.mxu0 %v3962_v35 }
  0x47   : > { %1053 = vperm.xlu1 %3949, %v3270_v41   ;;  %1048 = vperm.xlu0 %3948, %v3269_v42   ;;  %v3964_v41 = vld [vmem:[%s6450_s2 + $0xb0] sm:$0xff]  }
  0x48   : > { %3739 = vmatmul.mubr.bf16.gmra.mrb[8].mxu0 %v369_v43 }
  0x49   : > { %3771 = vmatpush3.bf16.msra.mxu0 %v3962_v35  ;;  %v3979_v35 = vld [vmem:[%s6450_s2 + $0x30] sm:$0xff]  }
  0x4a   : > { %3772 = vmatprep.subr.bf16.mxu0 %v3963_v38 }
  0x4b   : > { %1063 = vperm.xlu1 %3949, %v3272_v44   ;;  %1058 = vperm.xlu0 %3948, %v3271_v45   ;;  %v1822_v44 = vld [vmem:[%s6456_s8 + $0x18] sm:$0xff]  ;;  %v1821_v45 = vld [vmem:[%s6456_s8 + $0x10] sm:$0xff] }
  0x4d   : > { %3773 = vmatpush3.bf16.msra.mxu0 %v3963_v38  ;;  %v3328_v38 = vld [vmem:[%s6456_s8 + $0x230] sm:$0xff] }
  0x4e   : > { %3774 = vmatprep.subr.bf16.mxu0 %v3964_v41 }
  0x4f   : > { %843 = vperm.xlu1 %3949, %v725_v48   ;;  %838 = vperm.xlu0 %3948, %v724_v49   ;;  %v1824_v49 = vld [vmem:[%s6456_s8 + $0x28] sm:$0xff] }
  0x50   : > { %3743 = vmatmul.mubr.bf16.gmra.mrb[12].mxu0 %v371_v50  ;;  %v1823_v50 = vld [vmem:[%s6456_s8 + $0x20] sm:$0xff] }
  0x51   : > { %3775 = vmatpush3.bf16.msra.mxu0 %v3964_v41  ;;  %v1840_v41 = vld [vmem:[%s6456_s8 + $0xa8] sm:$0xff] }
  0x52   : > { %3776 = vmatprep.subr.bf16.mxu0 %v3965_v46 }
  0x53   : > { %1073 = vperm.xlu1 %3949, %v3274_v51   ;;  %1068 = vperm.xlu0 %3948, %v3273_v52  }
  0x55   : > { %3777 = vmatpush3.bf16.msra.mxu0 %v3965_v46 }
  0x57   : > { %1083 = vperm.xlu1 %3949, %v3276_v55   ;;  %1078 = vperm.xlu0 %3948, %v3275_v56  }
  0x58   : > { %3747 = vmatmul.mubr.bf16.gmra.mrb[16].mxu0 %v373_v57  ;;  %v1828_v57 = vld [vmem:[%s6456_s8 + $0x48] sm:$0xff] }
  0x5b   : > { %853 = vperm.xlu1 %3949, %v727_v58   ;;  %848 = vperm.xlu0 %3948, %v726_v59   ;;  %v1827_v58 = vld [vmem:[%s6456_s8 + $0x40] sm:$0xff]  ;;  %v1830_v59 = vld [vmem:[%s6456_s8 + $0x58] sm:$0xff] }
  0x5f   : > { %1093 = vperm.xlu1 %3949, %v3278_v62   ;;  %1088 = vperm.xlu0 %3948, %v3277_v63   ;;  %v1832_v63 = vld [vmem:[%s6456_s8 + $0x68] sm:$0xff] }
  0x60   : > { %3751 = vmatmul.mubr.bf16.gmra.mrb[20].mxu0 %v375_v0  ;;  %v1831_v0 = vld [vmem:[%s6456_s8 + $0x60] sm:$0xff] }
  0x63   : > { %1103 = vperm.xlu1 %3949, %v3280_v1   ;;  %1098 = vperm.xlu0 %3948, %v3279_v2   ;;  %v3966_v1 = vld [vmem:[%s6450_s2 + $0x40] sm:$0xff]  }
  0x64   : > { %3418 = vmatprep.subr.bf16.mxu1 %v3966_v1  ;;  %v3335_v1 = vld [vmem:[%s6456_s8 + $0x268] sm:$0xff] }
  0x65   : > { %3419 = vmatpush3.bf16.msra.mxu1 %v3967_v3  ;;  %v3334_v3 = vld [vmem:[%s6456_s8 + $0x260] sm:$0xff] }
  0x67   : > { %863 = vperm.xlu1 %3949, %v729_v5   ;;  %858 = vperm.xlu0 %3948, %v728_v6   ;;  %v1834_v5 = vld [vmem:[%s6456_s8 + $0x78] sm:$0xff]  ;;  %v1833_v6 = vld [vmem:[%s6456_s8 + $0x70] sm:$0xff] }
  0x68   : > { %3755 = vmatmul.mubr.bf16.gmra.mrb[24].mxu0 %v377_v7  ;;  %v3968_v7 = vld [vmem:[%s6450_s2 + $0x48] sm:$0xff]  }
  0x69   : > { %3420 = vmatprep.subr.bf16.mxu1 %v3968_v7  ;;  %v3337_v7 = vld [vmem:[%s6456_s8 + $0x278] sm:$0xff] }
  0x6b   : > { %1113 = vperm.xlu1 %3949, %v3282_v8   ;;  %1108 = vperm.xlu0 %3948, %v3281_v9   ;;  %v3969_v8 = vld [vmem:[%s6450_s2 + $0x8] sm:$0xff]  }
  0x6c   : > { %v1836_v9 = vld [vmem:[%s6456_s8 + $0x88] sm:$0xff]  ;;  %3421 = vmatpush3.bf16.msra.mxu1 %v3969_v8  ;;  %v3336_v8 = vld [vmem:[%s6456_s8 + $0x270] sm:$0xff] }
  0x6f   : > { %1123 = vperm.xlu1 %3949, %v3284_v12   ;;  %1118 = vperm.xlu0 %3948, %v3283_v13   ;;  %v3970_v13 = vld [vmem:[%s6450_s2 + $0x50] sm:$0xff]  }
  0x70   : > { %3759 = vmatmul.mubr.bf16.gmra.mrb[28].mxu0 %v379_v14  ;;  %v3971_v14 = vld [vmem:[%s6450_s2 + $0x10] sm:$0xff]   ;;  %3422 = vmatprep.subr.bf16.mxu1 %v3970_v13 }
  0x71   : > { %3423 = vmatpush3.bf16.msra.mxu1 %v3971_v14 }
  0x73   : > { %873 = vperm.xlu1 %3949, %v731_v15   ;;  %868 = vperm.xlu0 %3948, %v730_v16   ;;  %v3323_v15 = vld [vmem:[%s6456_s8 + $0x208] sm:$0xff]  ;;  %v3322_v16 = vld [vmem:[%s6456_s8 + $0x200] sm:$0xff] }
  0x77   : > { %1133 = vperm.xlu1 %3949, %v3286_v17   ;;  %1128 = vperm.xlu0 %3948, %v3285_v18   ;;  %v3972_v17 = vld [vmem:[%s6450_s2 + $0x58] sm:$0xff]  }
  0x78   : > { %3424 = vmatprep.subr.bf16.mxu1 %v3972_v17 }
  0x7b   : > { %1143 = vperm.xlu1 %3949, %v3288_v19   ;;  %1138 = vperm.xlu0 %3948, %v3287_v20   ;;  %v3973_v19 = vld [vmem:[%s6450_s2 + $0x18] sm:$0xff]  }
  0x7c   : > { %3425 = vmatpush3.bf16.msra.mxu1 %v3973_v19 }
  0x7d   : > { %3426 = vmatprep.subr.bf16.mxu1 %v3974_v23  ;;  %v1846_v23 = vld [vmem:[%s6456_s8 + $0xd8] sm:$0xff] }
  0x7f   : > { %883 = vperm.xlu1 %3949, %v733_v21   ;;  %878 = vperm.xlu0 %3948, %v732_v22   ;;  %v3325_v21 = vld [vmem:[%s6456_s8 + $0x218] sm:$0xff]  ;;  %v3324_v22 = vld [vmem:[%s6456_s8 + $0x210] sm:$0xff] }
  0x83   : > { %1153 = vperm.xlu1 %3949, %v3290_v24   ;;  %1148 = vperm.xlu0 %3948, %v3289_v25   ;;  %v3975_v24 = vld [vmem:[%s6450_s2 + $0x20] sm:$0xff]   ;;  %v1838_v25 = vld [vmem:[%s6456_s8 + $0x98] sm:$0xff] }
  0x84   : > { %3427 = vmatpush3.bf16.msra.mxu1 %v3975_v24  ;;  %v1845_v24 = vld [vmem:[%s6456_s8 + $0xd0] sm:$0xff] }
  0x85   : > { %3428 = vmatprep.subr.bf16.mxu1 %v3976_v29  ;;  %v3343_v29 = vld [vmem:[%s6456_s8 + $0x2a8] sm:$0xff] }
  0x87   : > { %1163 = vperm.xlu1 %3949, %v3292_v27   ;;  %1158 = vperm.xlu0 %3948, %v3291_v28  }
  0x8b   : > { %893 = vperm.xlu1 %3949, %v735_v30   ;;  %888 = vperm.xlu0 %3948, %v734_v31   ;;  %v3977_v30 = vld [vmem:[%s6450_s2 + $0x28] sm:$0xff]  }
  0x8c   : > { %v3327_v31 = vld [vmem:[%s6456_s8 + $0x228] sm:$0xff]  ;;  %3429 = vmatpush3.bf16.msra.mxu1 %v3977_v30  ;;  %v3342_v30 = vld [vmem:[%s6456_s8 + $0x2a0] sm:$0xff] }
  0x8f   : > { %1173 = vperm.xlu1 %3949, %v3294_v33   ;;  %1168 = vperm.xlu0 %3948, %v3293_v34   ;;  %v3978_v33 = vld [vmem:[%s6450_s2 + $0x70] sm:$0xff]  }
  0x90   : > { %3430 = vmatprep.subr.bf16.mxu1 %v3978_v33  ;;  %v3345_v33 = vld [vmem:[%s6456_s8 + $0x2b8] sm:$0xff] }
  0x91   : > { %3431 = vmatpush3.bf16.msra.mxu1 %v3979_v35  ;;  %v3344_v35 = vld [vmem:[%s6456_s8 + $0x2b0] sm:$0xff] }
  0x93   : > { %1183 = vperm.xlu1 %3949, %v3296_v36   ;;  %1178 = vperm.xlu0 %3948, %v3295_v37   ;;  %v3329_v37 = vld [vmem:[%s6456_s8 + $0x238] sm:$0xff] }
  0x96   : > { %v4462_v42 = vpop.permute.xlu1 %748  ;;  %v4464_v43 = vpop.permute.xlu0 %738 }
  0x97   : > { %6500 = vst [vmem:[#allocation5_spill] sm:$0xff] %v4464_v43  ;;  %1858 = vperm.xlu1 %3949, %v1820_v39   ;;  %1853 = vperm.xlu0 %3948, %v1819_v40   ;;  %v3980_v39 = vld [vmem:[%s6450_s2 + $0x78] sm:$0xff]  }
  0x98   : > { %v3981_v40 = vld [vmem:[%s6450_s2 + $0x38] sm:$0xff]   ;;  %3432 = vmatprep.subr.bf16.mxu1 %v3980_v39 }
  0x99   : > { %3433 = vmatpush3.bf16.msra.mxu1 %v3981_v40 }
  0x9a   : > { %v4475_v47 = vpop.permute.xlu1 %753  ;;  %v4477_v48 = vpop.permute.xlu0 %743 }
  0x9b   : > { %1868 = vperm.xlu1 %3949, %v1822_v44   ;;  %1863 = vperm.xlu0 %3948, %v1821_v45   ;;  %v1839_v44 = vld [vmem:[%s6456_s8 + $0xa0] sm:$0xff] }
  0x9e   : > { %v4485_v51 = vpop.permute.xlu1 %763  ;;  %v4487_v52 = vpop.permute.xlu0 %758 }
  0x9f   : > { %1878 = vperm.xlu1 %3949, %v1824_v49   ;;  %1873 = vperm.xlu0 %3948, %v1823_v50   ;;  %v3331_v49 = vld [vmem:[%s6456_s8 + $0x248] sm:$0xff]  ;;  %v3330_v50 = vld [vmem:[%s6456_s8 + $0x240] sm:$0xff] }
  0xa2   : > { %v4495_v55 = vpop.permute.xlu0 %768  ;;  %v4497_v56 = vpop.permute.xlu1 %773 }
  0xa3   : > { %1888 = vperm.xlu1 %3949, %v1826_v53   ;;  %1883 = vperm.xlu0 %3948, %v1825_v54  }
  0xa6   : > { %v4511_v61 = vpop.permute.xlu0 %778  ;;  %v4513_v62 = vpop.permute.xlu1 %783 }
  0xa7   : > { %1898 = vperm.xlu1 %3949, %v1828_v57   ;;  %1893 = vperm.xlu0 %3948, %v1827_v58   ;;  %v3333_v57 = vld [vmem:[%s6456_s8 + $0x258] sm:$0xff]  ;;  %v3332_v58 = vld [vmem:[%s6456_s8 + $0x250] sm:$0xff] }
  0xaa   : > { %v4524_v2 = vpop.permute.xlu0 %788  ;;  %v4529_v4 = vpop.permute.xlu1 %793 }
  0xab   : > { %1908 = vperm.xlu1 %3949, %v1830_v59   ;;  %1903 = vperm.xlu0 %3948, %v1829_v60   ;;  %v1842_v59 = vld [vmem:[%s6456_s8 + $0xb8] sm:$0xff]  ;;  %v1841_v60 = vld [vmem:[%s6456_s8 + $0xb0] sm:$0xff] }
  0xae   : > { %v4549_v11 = vpop.permute.xlu0 %798  ;;  %v4551_v12 = vpop.permute.xlu1 %803 }
  0xaf   : > { %1918 = vperm.xlu1 %3949, %v1832_v63   ;;  %1913 = vperm.xlu0 %3948, %v1831_v0  }
  0xb2   : > { %v4568_v18 = vpop.permute.xlu0 %808  ;;  %v4573_v20 = vpop.permute.xlu1 %813 }
  0xb3   : > { %1928 = vperm.xlu1 %3949, %v1834_v5   ;;  %1923 = vperm.xlu0 %3948, %v1833_v6  }
  0xb6   : > { %v4593_v27 = vpop.permute.xlu0 %818  ;;  %v4595_v28 = vpop.permute.xlu1 %823 }
  0xb7   : > { %1938 = vperm.xlu1 %3949, %v1836_v9   ;;  %1933 = vperm.xlu0 %3948, %v1835_v10   ;;  %v1844_v9 = vld [vmem:[%s6456_s8 + $0xc8] sm:$0xff]  ;;  %v1843_v10 = vld [vmem:[%s6456_s8 + $0xc0] sm:$0xff] }
  0xba   : > { %v4612_v34 = vpop.permute.xlu0 %1028  ;;  %v4617_v36 = vpop.permute.xlu1 %1033 }
  0xbb   : > { %2083 = vperm.xlu1 %3949, %v3323_v15   ;;  %2078 = vperm.xlu0 %3948, %v3322_v16   ;;  %v3339_v15 = vld [vmem:[%s6456_s8 + $0x288] sm:$0xff]  ;;  %v3338_v16 = vld [vmem:[%s6456_s8 + $0x280] sm:$0xff] }
  0xbe   : > { %v4637_v45 = vpop.permute.xlu0 %1038  ;;  %v4639_v46 = vpop.permute.xlu1 %1043 }
  0xbf   : > { %2093 = vperm.xlu1 %3949, %v3325_v21   ;;  %2088 = vperm.xlu0 %3948, %v3324_v22   ;;  %v3341_v21 = vld [vmem:[%s6456_s8 + $0x298] sm:$0xff]  ;;  %v3340_v22 = vld [vmem:[%s6456_s8 + $0x290] sm:$0xff] }
  0xc2   : > { %v4647_v53 = vpop.permute.xlu0 %828  ;;  %v4649_v54 = vpop.permute.xlu1 %833 }
  0xc3   : > { %1948 = vperm.xlu1 %3949, %v1838_v25   ;;  %1943 = vperm.xlu0 %3948, %v1837_v26  }
  0xc6   : > { %v4663_v63 = vpop.permute.xlu0 %1048  ;;  %v4665_v0 = vpop.permute.xlu1 %1053 }
  0xc7   : > { %2103 = vperm.xlu1 %3949, %v3327_v31   ;;  %2098 = vperm.xlu0 %3948, %v3326_v32  }
  0xca   : > { %v4673_v5 = vpop.permute.xlu0 %1058  ;;  %v4675_v6 = vpop.permute.xlu1 %1063 }
  0xcb   : > { %2113 = vperm.xlu1 %3949, %v3329_v37   ;;  %2108 = vperm.xlu0 %3948, %v3328_v38   ;;  %v1848_v37 = vld [vmem:[%s6456_s8 + $0xe8] sm:$0xff]  ;;  %v1847_v38 = vld [vmem:[%s6456_s8 + $0xe0] sm:$0xff] }
  0xce   : > { %v4689_v13 = vpop.permute.xlu0 %838  ;;  %v4691_v14 = vpop.permute.xlu1 %843 }
  0xcf   : > { %1958 = vperm.xlu1 %3949, %v1840_v41   ;;  %1953 = vperm.xlu0 %3948, %v1839_v44   ;;  %v3347_v41 = vld [vmem:[%s6456_s8 + $0x2c8] sm:$0xff]  ;;  %v3346_v44 = vld [vmem:[%s6456_s8 + $0x2c0] sm:$0xff] }
  0xd2   : > { %v4699_v17 = vpop.permute.xlu0 %1068  ;;  %v4701_v19 = vpop.permute.xlu1 %1073 }
  0xd3   : > { %2123 = vperm.xlu1 %3949, %v3331_v49   ;;  %2118 = vperm.xlu0 %3948, %v3330_v50  }
  0xd6   : > { %v4715_v25 = vpop.permute.xlu0 %1078  ;;  %v4717_v26 = vpop.permute.xlu1 %1083 }
  0xd7   : > { %2133 = vperm.xlu1 %3949, %v3333_v57   ;;  %2128 = vperm.xlu0 %3948, %v3332_v58   ;;  %v3349_v57 = vld [vmem:[%s6456_s8 + $0x2d8] sm:$0xff]  ;;  %v3348_v58 = vld [vmem:[%s6456_s8 + $0x2d0] sm:$0xff] }
  0xda   : > { %v4725_v31 = vpop.permute.xlu0 %848  ;;  %v4727_v32 = vpop.permute.xlu1 %853 }
  0xdb   : > { %1968 = vperm.xlu1 %3949, %v1842_v59   ;;  %1963 = vperm.xlu0 %3948, %v1841_v60   ;;  %v669_v59 = vlaneseq  ;;  %v1850_v60 = vld [vmem:[%s6456_s8 + $0xf8] sm:$0xff] }
  0xde   : > { %v4741_v39 = vpop.permute.xlu0 %1088  ;;  %v4743_v40 = vpop.permute.xlu1 %1093 }
  0xdf   : > { %2143 = vperm.xlu1 %3949, %v3335_v1   ;;  %2138 = vperm.xlu0 %3948, %v3334_v3   ;;  %v1849_v1 = vld [vmem:[%s6456_s8 + $0xf0] sm:$0xff] }
  0xe2   : > { %v4751_v49 = vpop.permute.xlu0 %1098  ;;  %v4753_v50 = vpop.permute.xlu1 %1103 }
  0xe3   : > { %2153 = vperm.xlu1 %3949, %v3337_v7   ;;  %2148 = vperm.xlu0 %3948, %v3336_v8  }
  0xe6   : > { %v4767_v3 = vpop.permute.xlu0 %858  ;;  %v4769_v7 = vpop.permute.xlu1 %863 }
  0xe7   : > { %1978 = vperm.xlu1 %3949, %v1844_v9   ;;  %1973 = vperm.xlu0 %3948, %v1843_v10   ;;  %6501 = vst [vmem:[#allocation6_spill] sm:$0xff] %v4767_v3  ;;  %6502 = vst [vmem:[#allocation7_spill] sm:$0xff] %v4769_v7  ;;  %v4771_v9 = vshrl.u32 %v669_v59, 7 }
  0xe9   : > { %vm960_vm0 = vcmp.lt.s32.totalorder %v4771_v9, 7  ;;  %vm671_vm1 = vcmp.lt.s32.totalorder %v4771_v9, 1 }
  0xeb   : > { %2163 = vperm.xlu1 %3949, %v3339_v15   ;;  %2158 = vperm.xlu0 %3948, %v3338_v16   ;;  %v3351_v16 = vld [vmem:[%s6456_s8 + $0x2e8] sm:$0xff] }
  0xef   : > { %2173 = vperm.xlu1 %3949, %v3341_v21   ;;  %2168 = vperm.xlu0 %3948, %v3340_v22   ;;  %v3350_v21 = vld [vmem:[%s6456_s8 + $0x2e0] sm:$0xff] }
  0xf3   : > { %1988 = vperm.xlu1 %3949, %v1846_v23   ;;  %1983 = vperm.xlu0 %3948, %v1845_v24  }
  0xf7   : > { %2183 = vperm.xlu1 %3949, %v3343_v29   ;;  %2178 = vperm.xlu0 %3948, %v3342_v30   ;;  %v4785_v29 = vpop.permute.xlu0 %1108 }
  0xfb   : > { %2193 = vperm.xlu1 %3949, %v3345_v33   ;;  %2188 = vperm.xlu0 %3948, %v3344_v35   ;;  %v4790_v35 = vpop.permute.xlu1 %1113 }
  0xff   : > { %1998 = vperm.xlu1 %3949, %v1848_v37   ;;  %1993 = vperm.xlu0 %3948, %v1847_v38  }
 0x103   : > { %2203 = vperm.xlu1 %3949, %v3347_v41   ;;  %2198 = vperm.xlu0 %3948, %v3346_v44   ;;  %v3353_v44 = vld [vmem:[%s6456_s8 + $0x2f8] sm:$0xff] }
 0x107   : > { %2213 = vperm.xlu1 %3949, %v3349_v57   ;;  %2208 = vperm.xlu0 %3948, %v3348_v58   ;;  %v3352_v57 = vld [vmem:[%s6456_s8 + $0x2f0] sm:$0xff] }
 0x10b   : > { %2008 = vperm.xlu1 %3949, %v1850_v60   ;;  %2003 = vperm.xlu0 %3948, %v1849_v1   ;;  %v3732_v8 = vpop.f32.mrb[0].mxu0 }
 0x10c   : > { %v4773_v10 = vmax.f32 %v3732_v8, 0.0  ;;  %v478_v15 = vpop.f32.mrb[1].mxu0 }
 0x10d   : > { %v4781_v22 = vmax.f32 %v478_v15, 0.0  ;;  %v3733_v23 = vpop.f32.mrb[2].mxu0 }
 0x10e   : > { %6503 = vst [vmem:[#allocation8_spill] sm:$0xff] %v4773_v10  ;;  %v4783_v24 = vmax.f32 %v3733_v23, 0.0  ;;  %v930_v30 = vrot.slane %v4773_v10, 1  ;;  %v481_v33 = vpop.f32.mrb[3].mxu0  ;;  %v639_v59 = vrot.slane %v4773_v10, 7 }
 0x10f   : > { %6504 = vst [vmem:[#allocation9_spill] sm:$0xff] %v4781_v22  ;;  %2223 = vperm.xlu1 %3949, %v3351_v16   ;;  %2218 = vperm.xlu0 %3948, %v3350_v21   ;;  %v606_v41 = vmax.f32 %v481_v33, 0.0  ;;  %v6460_v1 = vrot.slane %v4781_v22, 1 }
 0x110   : > { %6505 = vst [vmem:[#allocation10_spill] sm:$0xff] %v4783_v24  ;;  %v640_v37 = vrot.slane %v4783_v24, 7  ;;  %v931_v38 = vrot.slane %v4783_v24, 1 }
 0x111   : > { %v638_v15 = vrot.slane %v606_v41, 7  ;;  %v929_v16 = vrot.slane %v606_v41, 1  ;;  %v1219_v21 = vpack.c.bf16 %v606_v41, %v4781_v22  ;;  %v6507_v41 = vrot.slane %v4781_v22, 7 }
 0x112   : > { %v989_v8 = vsel %vm960_vm0, %v930_v30, %v931_v38  ;;  %v700_v33 = vsel %vm671_vm1, %v639_v59, %v640_v37 }
 0x113   : > { %2233 = vperm.xlu1 %3949, %v3353_v44   ;;  %2228 = vperm.xlu0 %3948, %v3352_v57   ;;  %v3736_v23 = vpop.f32.mrb[4].mxu0  ;;  %v990_v58 = vsel %vm960_vm0, %v929_v16, %v930_v30  ;;  %v991_v60 = vsel %vm960_vm0, %v6460_v1, %v929_v16  ;;  %v702_v44 = vsel %vm671_vm1, %v6507_v41, %v638_v15  ;;  %v4822_v57 = vpop.permute.xlu0 %1118 }
 0x114   : > { %v4816_v10 = vmax.f32 %v3736_v23, 0.0  ;;  %1497 = vmatprep.mubr.bf16.mxu1 %v1219_v21  ;;  %v494_v24 = vpop.f32.mrb[5].mxu0  ;;  %v1188_v3 = vmul.f32 %v4637_v45, %v989_v8  ;;  %v1186_v30 = vmul.f32 %v4612_v34, %v991_v60  ;;  %v1187_v7 = vmul.f32 %v4617_v36, %v990_v58  ;;  %v4829_v23 = vpop.permute.xlu1 %1123 }
 0x115   : > { %v4827_v43 = vmax.f32 %v494_v24, 0.0  ;;  %v3737_v16 = vpop.f32.mrb[6].mxu0  ;;  %v4835_v22 = vmul.f32 %v4477_v48, %v702_v44  ;;  %v701_v41 = vsel %vm671_vm1, %v638_v15, %v639_v59  ;;  %v4849_v48 = vmul.f32 %v4475_v47, %v700_v33 }
 0x116   : > { %6506 = vst [vmem:[#allocation11_spill] sm:$0xff] %v4816_v10  ;;  %v643_v21 = vrot.slane %v4816_v10, 7  ;;  %v4832_v1 = vmax.f32 %v3737_v16, 0.0  ;;  %v1220_v45 = vpack.c.bf16 %v1187_v7, %v1186_v30  ;;  %v497_v24 = vpop.f32.mrb[7].mxu0  ;;  %v4842_v58 = vmul.f32 %v4462_v42, %v701_v41 }
 0x117   : > { %6508 = vst [vmem:[#allocation12_spill] sm:$0xff] %v4827_v43  ;;  %v641_v34 = vrot.slane %v4827_v43, 7  ;;  %v932_v36 = vrot.slane %v4827_v43, 1  ;;  %v934_v60 = vrot.slane %v4816_v10, 1  ;;  %v4846_v16 = vmax.f32 %v497_v24, 0.0  ;;  %v4863_v33 = vpop.permute.xlu0 %868 }
 0x118   : > { %6509 = vst [vmem:[#allocation13_spill] sm:$0xff] %v4832_v1  ;;  %v935_v8 = vrot.slane %v4832_v1, 1  ;;  %v644_v59 = vrot.slane %v4832_v1, 7  ;;  %3778 = vmatprep.mubr.bf16.mxu0 %v1220_v45  ;;  %6510 = vst [vmem:[#allocation14_spill] sm:$0xff] %v4863_v33 }
 0x119   : > { %v988_v7 = vsel %vm960_vm0, %v931_v38, %v932_v36  ;;  %v699_v15 = vsel %vm671_vm1, %v640_v37, %v641_v34  ;;  %v642_v30 = vrot.slane %v4846_v16, 7  ;;  %v933_v41 = vrot.slane %v4846_v16, 1 }
 0x11a   : > { %v1189_v44 = vmul.f32 %v4639_v46, %v988_v7  ;;  %v985_v47 = vsel %vm960_vm0, %v934_v60, %v935_v8  ;;  %v4871_v46 = vmul.f32 %v4487_v52, %v699_v15  ;;  %v4873_v7 = vpop.permute.xlu1 %873 }
 0x11b   : > { %v3740_v38 = vpop.f32.mrb[8].mxu0  ;;  %v1192_v45 = vmul.f32 %v4673_v5, %v985_v47  ;;  %v986_v33 = vsel %vm960_vm0, %v933_v41, %v934_v60  ;;  %v987_v5 = vsel %vm960_vm0, %v932_v36, %v933_v41  ;;  %v698_v15 = vsel %vm671_vm1, %v641_v34, %v642_v30 }
 0x11c   : > { %6511 = vst [vmem:[#allocation15_spill] sm:$0xff] %v4871_v46  ;;  %v4875_v42 = vmax.f32 %v3740_v38, 0.0  ;;  %v510_v10 = vpop.f32.mrb[9].mxu0  ;;  %v1223_v1 = vpack.c.bf16 %v1189_v44, %v1188_v3  ;;  %v1190_v24 = vmul.f32 %v4663_v63, %v987_v5  ;;  %v1191_v52 = vmul.f32 %v4665_v0, %v986_v33 }
 0x11d   : > { %v4881_v47 = vmax.f32 %v510_v10, 0.0  ;;  %v3741_v37 = vpop.f32.mrb[10].mxu0  ;;  %v4892_v60 = vmul.f32 %v4485_v51, %v698_v15  ;;  %v696_v0 = vsel %vm671_vm1, %v643_v21, %v644_v59  ;;  %v4904_v51 = vpop.permute.xlu0 %1128 }
 0x11e   : > { %6512 = vst [vmem:[#allocation16_spill] sm:$0xff] %v4875_v42  ;;  %v647_v38 = vrot.slane %v4875_v42, 7  ;;  %v938_v3 = vrot.slane %v4875_v42, 1  ;;  %v4889_v44 = vmax.f32 %v3741_v37, 0.0  ;;  %3779 = vmatmul.mubr.bf16.vlgmr.msra.gmra.mrb[32].mxu0 %v1223_v1  ;;  %v513_v63 = vpop.f32.mrb[11].mxu0  ;;  %v1226_v41 = vpack.c.bf16 %v1191_v52, %v1190_v24  ;;  %v6564_v9 = vld [vmem:[#allocation12_spill] sm:$0xff] }
 0x11f   : > { %6513 = vst [vmem:[#allocation17_spill] sm:$0xff] %v4892_v60  ;;  %v645_v10 = vrot.slane %v4881_v47, 7  ;;  %v936_v36 = vrot.slane %v4881_v47, 1  ;;  %v4900_v5 = vmax.f32 %v513_v63, 0.0  ;;  %v697_v24 = vsel %vm671_vm1, %v642_v30, %v643_v21  ;;  %v4915_v63 = vpop.permute.xlu1 %1133 }
 0x120   : > { %v939_v33 = vrot.slane %v4889_v44, 1  ;;  %3782 = vmatprep.mubr.bf16.mxu0 %v1226_v41  ;;  %v4911_v52 = vmul.f32 %v4497_v56, %v696_v0  ;;  %v4924_v56 = vmul.f32 %v4495_v55, %v697_v24 }
 0x121   : > { %v984_v37 = vsel %vm960_vm0, %v935_v8, %v936_v36  ;;  %v695_v15 = vsel %vm671_vm1, %v644_v59, %v645_v10  ;;  %v646_v34 = vrot.slane %v4900_v5, 7  ;;  %v937_v1 = vrot.slane %v4900_v5, 1 }
 0x122   : > { %v1193_v41 = vmul.f32 %v4675_v6, %v984_v37  ;;  %v981_v8 = vsel %vm960_vm0, %v938_v3, %v939_v33  ;;  %v4929_v30 = vmul.f32 %v4511_v61, %v695_v15 }
 0x123   : > { %v3744_v46 = vpop.f32.mrb[12].mxu0  ;;  %v1196_v21 = vmul.f32 %v4715_v25, %v981_v8  ;;  %v982_v6 = vsel %vm960_vm0, %v937_v1, %v938_v3  ;;  %v983_v37 = vsel %vm960_vm0, %v936_v36, %v937_v1  ;;  %v694_v3 = vsel %vm671_vm1, %v645_v10, %v646_v34 }
 0x124   : > { %v4931_v0 = vmax.f32 %v3744_v46, 0.0  ;;  %v526_v60 = vpop.f32.mrb[13].mxu0  ;;  %v1229_v43 = vpack.c.bf16 %v1193_v41, %v1192_v45  ;;  %v1194_v24 = vmul.f32 %v4699_v17, %v983_v37  ;;  %v1195_v8 = vmul.f32 %v4701_v19, %v982_v6  ;;  %v4956_v6 = vpop.permute.xlu1 %1143 }
 0x125   : > { %v4937_v25 = vmax.f32 %v526_v60, 0.0  ;;  %v3745_v55 = vpop.f32.mrb[14].mxu0  ;;  %v4949_v60 = vpop.permute.xlu0 %1138  ;;  %v4954_v41 = vmul.f32 %v4513_v62, %v694_v3  ;;  %v6517_v62 = vrot.slane %v4889_v44, 7  ;;  %v693_v3 = vsel %vm671_vm1, %v646_v34, %v647_v38 }
 0x126   : > { %6514 = vst [vmem:[#allocation18_spill] sm:$0xff] %v4931_v0  ;;  %v942_v45 = vrot.slane %v4931_v0, 1  ;;  %v4945_v15 = vmax.f32 %v3745_v55, 0.0  ;;  %3783 = vmatmul.mubr.bf16.gmra.mrb[36].mxu0 %v1229_v43  ;;  %v529_v19 = vpop.f32.mrb[15].mxu0  ;;  %v1232_v1 = vpack.c.bf16 %v1195_v8, %v1194_v24  ;;  %v4981_v46 = vmul.f32 %v4524_v2, %v693_v3 }
 0x127   : > { %6515 = vst [vmem:[#allocation19_spill] sm:$0xff] %v4937_v25  ;;  %v649_v36 = vrot.slane %v4937_v25, 7  ;;  %v940_v17 = vrot.slane %v4937_v25, 1  ;;  %v4960_v55 = vmax.f32 %v529_v19, 0.0  ;;  %v692_v8 = vsel %vm671_vm1, %v647_v38, %v6517_v62 }
 0x128   : > { %v943_v43 = vrot.slane %v4945_v15, 1  ;;  %3786 = vmatprep.mubr.bf16.mxu0 %v1232_v1  ;;  %6518 = vst [vmem:[#allocation21_spill] sm:$0xff] %v4981_v46  ;;  %v4984_v62 = vmul.f32 %v4529_v4, %v692_v8 }
 0x129   : > { %6516 = vst [vmem:[#allocation20_spill] sm:$0xff] %v4960_v55  ;;  %v980_v59 = vsel %vm960_vm0, %v939_v33, %v940_v17  ;;  %v650_v19 = vrot.slane %v4960_v55, 7  ;;  %v941_v61 = vrot.slane %v4960_v55, 1 }
 0x12a   : > { %v1197_v1 = vmul.f32 %v4717_v26, %v980_v59  ;;  %v977_v33 = vsel %vm960_vm0, %v942_v45, %v943_v43 }
 0x12b   : > { %v3748_v10 = vpop.f32.mrb[16].mxu0  ;;  %v1200_v24 = vmul.f32 %v4751_v49, %v977_v33  ;;  %v978_v26 = vsel %vm960_vm0, %v941_v61, %v942_v45  ;;  %v979_v59 = vsel %vm960_vm0, %v940_v17, %v941_v61  ;;  %v4994_v49 = vpop.permute.xlu0 %878  ;;  %v690_v61 = vsel %vm671_vm1, %v649_v36, %v650_v19 }
 0x12c   : > { %v4988_v34 = vmax.f32 %v3748_v10, 0.0  ;;  %v542_v37 = vpop.f32.mrb[17].mxu0  ;;  %v1235_v42 = vpack.c.bf16 %v1197_v1, %v1196_v21  ;;  %v1198_v4 = vmul.f32 %v4741_v39, %v979_v59  ;;  %v1199_v8 = vmul.f32 %v4743_v40, %v978_v26  ;;  %v5002_v33 = vpop.permute.xlu1 %883 }
 0x12d   : > { %v4996_v2 = vmax.f32 %v542_v37, 0.0  ;;  %v3749_v3 = vpop.f32.mrb[18].mxu0  ;;  %v6522_v26 = vrot.slane %v4889_v44, 7 }
 0x12e   : > { %6519 = vst [vmem:[#allocation22_spill] sm:$0xff] %v4988_v34  ;;  %v946_v45 = vrot.slane %v4988_v34, 1  ;;  %v5006_v1 = vmax.f32 %v3749_v3, 0.0  ;;  %3787 = vmatmul.mubr.bf16.gmra.mrb[40].mxu0 %v1235_v42  ;;  %v545_v40 = vpop.f32.mrb[19].mxu0  ;;  %v1238_v37 = vpack.c.bf16 %v1199_v8, %v1198_v4  ;;  %v5026_v4 = vmul.f32 %v4551_v12, %v690_v61 }
 0x12f   : > { %6520 = vst [vmem:[#allocation23_spill] sm:$0xff] %v4996_v2  ;;  %v653_v17 = vrot.slane %v4996_v2, 7  ;;  %v944_v39 = vrot.slane %v4996_v2, 1  ;;  %v691_v59 = vsel %vm671_vm1, %v6522_v26, %v649_v36  ;;  %v5018_v10 = vmax.f32 %v545_v40, 0.0 }
 0x130   : > { %6521 = vst [vmem:[#allocation24_spill] sm:$0xff] %v5006_v1  ;;  %v947_v3 = vrot.slane %v5006_v1, 1  ;;  %v5021_v42 = vmul.f32 %v4549_v11, %v691_v59  ;;  %3790 = vmatprep.mubr.bf16.mxu0 %v1238_v37  ;;  %v6524_v36 = vrot.slane %v4945_v15, 7  ;;  %v6525_v26 = vrot.slane %v4931_v0, 7 }
 0x131   : > { %6523 = vst [vmem:[#allocation25_spill] sm:$0xff] %v5018_v10  ;;  %v976_v21 = vsel %vm960_vm0, %v943_v43, %v944_v39  ;;  %v654_v11 = vrot.slane %v5018_v10, 7  ;;  %v945_v37 = vrot.slane %v5018_v10, 1  ;;  %v5041_v43 = vpop.permute.xlu0 %1148 }
 0x132   : > { %v688_v40 = vsel %vm671_vm1, %v6525_v26, %v6524_v36  ;;  %v1201_v59 = vmul.f32 %v4753_v50, %v976_v21  ;;  %v973_v12 = vsel %vm960_vm0, %v946_v45, %v947_v3  ;;  %v6526_v25 = vmov %v6525_v26  ;;  %v5053_v50 = vpop.permute.xlu1 %1153 }
 0x133   : > { %v3752_v61 = vpop.f32.mrb[20].mxu0  ;;  %v1204_v8 = vmul.f32 %v4822_v57, %v973_v12  ;;  %v689_v36 = vsel %vm671_vm1, %v650_v19, %v6526_v25  ;;  %v5051_v26 = vmul.f32 %v4573_v20, %v688_v40  ;;  %v974_v57 = vsel %vm960_vm0, %v945_v37, %v946_v45 }
 0x134   : > { %v5055_v21 = vmax.f32 %v3752_v61, 0.0  ;;  %v558_v55 = vpop.f32.mrb[21].mxu0  ;;  %v1241_v46 = vpack.c.bf16 %v1201_v59, %v1200_v24  ;;  %v975_v12 = vsel %vm960_vm0, %v944_v39, %v945_v37  ;;  %v1203_v20 = vmul.f32 %v4790_v35, %v974_v57 }
 0x135   : > { %v5061_v38 = vmax.f32 %v558_v55, 0.0  ;;  %v3753_v0 = vpop.f32.mrb[22].mxu0  ;;  %v1202_v25 = vmul.f32 %v4785_v29, %v975_v12  ;;  %v5066_v19 = vmul.f32 %v4568_v18, %v689_v36  ;;  %v6530_v12 = vrot.slane %v4945_v15, 7 }
 0x136   : > { %6527 = vst [vmem:[#allocation26_spill] sm:$0xff] %v5055_v21  ;;  %v950_v24 = vrot.slane %v5055_v21, 1  ;;  %v5070_v59 = vmax.f32 %v3753_v0, 0.0  ;;  %3791 = vmatmul.mubr.bf16.gmra.mrb[44].mxu0 %v1241_v46  ;;  %v561_v29 = vpop.f32.mrb[23].mxu0  ;;  %v686_v0 = vsel %vm671_vm1, %v653_v17, %v654_v11  ;;  %v1159_v46 = vpop.permute.xlu0 %1158 }
 0x137   : > { %6528 = vst [vmem:[#allocation27_spill] sm:$0xff] %v5061_v38  ;;  %v657_v55 = vrot.slane %v5061_v38, 7  ;;  %v948_v39 = vrot.slane %v5061_v38, 1  ;;  %v1244_v37 = vpack.c.bf16 %v1203_v20, %v1202_v25  ;;  %v5080_v36 = vmax.f32 %v561_v29, 0.0  ;;  %v5095_v45 = vpop.permute.xlu1 %1163 }
 0x138   : > { %v951_v61 = vrot.slane %v5070_v59, 1  ;;  %v687_v25 = vsel %vm671_vm1, %v6530_v12, %v653_v17  ;;  %v5091_v20 = vmul.f32 %v4595_v28, %v686_v0  ;;  %v6531_v0 = vrot.slane %v5006_v1, 7 }
 0x139   : > { %6529 = vst [vmem:[#allocation28_spill] sm:$0xff] %v5080_v36  ;;  %3794 = vmatprep.mubr.bf16.mxu0 %v1244_v37  ;;  %v972_v57 = vsel %vm960_vm0, %v947_v3, %v948_v39  ;;  %v949_v37 = vrot.slane %v5080_v36, 1  ;;  %v5104_v28 = vmul.f32 %v4593_v27, %v687_v25  ;;  %v6532_v12 = vrot.slane %v4988_v34, 7 }
 0x13a   : > { %v1205_v40 = vmul.f32 %v4829_v23, %v972_v57  ;;  %v969_v3 = vsel %vm960_vm0, %v950_v24, %v951_v61 }
 0x13b   : > { %v3756_v35 = vpop.f32.mrb[24].mxu0  ;;  %v1208_v17 = vmul.f32 %v4949_v60, %v969_v3  ;;  %v684_v29 = vsel %vm671_vm1, %v6532_v12, %v6531_v0  ;;  %v6533_v18 = vmov %v6532_v12  ;;  %v970_v27 = vsel %vm960_vm0, %v949_v37, %v950_v24 }
 0x13c   : > { %v685_v23 = vsel %vm671_vm1, %v654_v11, %v6533_v18  ;;  %v5116_v57 = vmax.f32 %v3756_v35, 0.0  ;;  %v574_v2 = vpop.f32.mrb[25].mxu0  ;;  %v1247_v10 = vpack.c.bf16 %v1205_v40, %v1204_v8  ;;  %v971_v60 = vsel %vm960_vm0, %v948_v39, %v949_v37 }
 0x13d   : > { %v5122_v25 = vmax.f32 %v574_v2, 0.0  ;;  %v3757_v3 = vpop.f32.mrb[26].mxu0  ;;  %v1206_v0 = vmul.f32 %v4904_v51, %v971_v60  ;;  %v1207_v12 = vmul.f32 %v4915_v63, %v970_v27  ;;  %v5133_v24 = vmul.f32 %v4647_v53, %v685_v23  ;;  %v5135_v2 = vpop.permute.xlu0 %888 }
 0x13e   : > { %v954_v8 = vrot.slane %v5116_v57, 1  ;;  %v5130_v40 = vmax.f32 %v3757_v3, 0.0  ;;  %3795 = vmatmul.mubr.bf16.gmra.mrb[48].mxu0 %v1247_v10  ;;  %v577_v63 = vpop.f32.mrb[27].mxu0  ;;  %v5140_v37 = vmul.f32 %v4649_v54, %v684_v29  ;;  %v5142_v27 = vpop.permute.xlu1 %893  ;;  %v6536_v54 = vrot.slane %v5080_v36, 7 }
 0x13f   : > { %6534 = vst [vmem:[#allocation29_spill] sm:$0xff] %v5133_v24  ;;  %v952_v51 = vrot.slane %v5122_v25, 1  ;;  %v1250_v35 = vpack.c.bf16 %v1207_v12, %v1206_v0  ;;  %v5146_v3 = vmax.f32 %v577_v63, 0.0  ;;  %v6537_v12 = vrot.slane %v5006_v1, 7 }
 0x140   : > { %6535 = vst [vmem:[#allocation30_spill] sm:$0xff] %v5140_v37  ;;  %v955_v10 = vrot.slane %v5130_v40, 1  ;;  %v682_v29 = vsel %vm671_vm1, %v657_v55, %v6536_v54 }
 0x141   : > { %3798 = vmatprep.mubr.bf16.mxu0 %v1250_v35  ;;  %v968_v23 = vsel %vm960_vm0, %v951_v61, %v952_v51  ;;  %v683_v63 = vsel %vm671_vm1, %v6537_v12, %v657_v55  ;;  %v953_v35 = vrot.slane %v5146_v3, 1  ;;  %v5171_v54 = vmul.f32 %v4691_v14, %v682_v29 }
 0x142   : > { %v1209_v53 = vmul.f32 %v4956_v6, %v968_v23  ;;  %v965_v61 = vsel %vm960_vm0, %v954_v8, %v955_v10  ;;  %v5168_v60 = vmul.f32 %v4689_v13, %v683_v63  ;;  %v1174_v63 = vpop.permute.xlu1 %1173 }
 0x143   : > { %v3760_v0 = vpop.f32.mrb[28].mxu0  ;;  %v1212_v18 = vmul.f32 %v1159_v46, %v965_v61  ;;  %6539 = vst [vmem:[#allocation32_spill] sm:$0xff] %v5171_v54  ;;  %v966_v6 = vsel %vm960_vm0, %v953_v35, %v954_v8  ;;  %v967_v23 = vsel %vm960_vm0, %v952_v51, %v953_v35  ;;  %v1169_v46 = vpop.permute.xlu0 %1168  ;;  %v6540_v51 = vrot.slane %v5070_v59, 7 }
 0x144   : > { %6538 = vst [vmem:[#allocation31_spill] sm:$0xff] %v5168_v60  ;;  %v5175_v12 = vmax.f32 %v3760_v0, 0.0  ;;  %v590_v39 = vpop.f32.mrb[29].mxu0  ;;  %v1253_v11 = vpack.c.bf16 %v1209_v53, %v1208_v17  ;;  %v1210_v14 = vmul.f32 %v5041_v43, %v967_v23  ;;  %v1211_v29 = vmul.f32 %v5053_v50, %v966_v6 }
 0x145   : > { %v5181_v61 = vmax.f32 %v590_v39, 0.0  ;;  %v3761_v13 = vpop.f32.mrb[30].mxu0  ;;  %v6541_v39 = vrot.slane %v5055_v21, 7  ;;  %v6543_v0 = vrot.slane %v5080_v36, 7 }
 0x146   : > { %v667_v17 = vrot.slane %v5175_v12, 7  ;;  %v958_v53 = vrot.slane %v5175_v12, 1  ;;  %v5189_v8 = vmax.f32 %v3761_v13, 0.0  ;;  %3799 = vmatmul.mubr.bf16.gmra.mrb[52].mxu0 %v1253_v11  ;;  %v593_v6 = vpop.f32.mrb[31].mxu0  ;;  %v1256_v23 = vpack.c.bf16 %v1211_v29, %v1210_v14 }
 0x147   : > { %v680_v43 = vsel %vm671_vm1, %v6541_v39, %v6540_v51  ;;  %v665_v50 = vrot.slane %v5181_v61, 7  ;;  %v956_v35 = vrot.slane %v5181_v61, 1  ;;  %v6542_v55 = vmov %v6541_v39  ;;  %v6548_v39 = vld [vmem:[#allocation5_spill] sm:$0xff] }
 0x148   : > { %v681_v11 = vsel %vm671_vm1, %v6543_v0, %v6542_v55  ;;  %v668_v13 = vrot.slane %v5189_v8, 7  ;;  %v959_v60 = vrot.slane %v5189_v8, 1  ;;  %v5207_v54 = vmax.f32 %v593_v6, 0.0  ;;  %3802 = vmatprep.mubr.bf16.mxu0 %v1256_v23 }
 0x149   : > { %v5210_v51 = vmul.f32 %v4725_v31, %v681_v11  ;;  %v964_v14 = vsel %vm960_vm0, %v955_v10, %v956_v35  ;;  %v5215_v29 = vmul.f32 %v4727_v32, %v680_v43  ;;  %v6544_v55 = vrot.slane %v5146_v3, 7  ;;  %v6546_v10 = vld [vmem:[#allocation9_spill] sm:$0xff]  ;;  %v1179_v43 = vpop.permute.xlu0 %1178 }
 0x14a   : > { %v6545_v0 = vrot.slane %v5122_v25, 7  ;;  %v666_v31 = vrot.slane %v5207_v54, 7  ;;  %v957_v23 = vrot.slane %v5207_v54, 1  ;;  %v1213_v11 = vmul.f32 %v5095_v45, %v964_v14  ;;  %v1184_v45 = vpop.permute.xlu1 %1183 }
 0x14b   : > { %v6547_v21 = vrot.slane %v6546_v10, 7  ;;  %v961_v36 = vsel %vm960_vm0, %v958_v53, %v959_v60  ;;  %v6549_v24 = vrot.slane %v6546_v10, 1 }
 0x14c   : > { %v678_v6 = vsel %vm671_vm1, %v6545_v0, %v6544_v55  ;;  %v1259_v14 = vpack.c.bf16 %v1213_v11, %v1212_v18  ;;  %v962_v37 = vsel %vm960_vm0, %v957_v23, %v958_v53  ;;  %v6552_v11 = vld [vmem:[#allocation7_spill] sm:$0xff]  ;;  %v1258_v53 = vpack.c.bf16 %v5130_v40, %v5116_v57 }
 0x14d   : > { %v703_v32 = vsel %vm671_vm1, %v668_v13, %v6547_v21  ;;  %v992_v55 = vsel %vm960_vm0, %v959_v60, %v6549_v24  ;;  %v963_v21 = vsel %vm960_vm0, %v956_v35, %v957_v23  ;;  %v1215_v1 = vmul.f32 %v1174_v63, %v962_v37  ;;  %v6555_v63 = vld [vmem:[#allocation6_spill] sm:$0xff] }
 0x14e   : > { %v896_v38 = vmul.f32 %v6548_v39, %v703_v32  ;;  %v1216_v39 = vmul.f32 %v1179_v43, %v961_v36  ;;  %v1214_v34 = vmul.f32 %v1169_v46, %v963_v21  ;;  %v1217_v10 = vmul.f32 %v1184_v45, %v992_v55  ;;  %3803 = vmatmul.mubr.bf16.gmra.mrb[56].mxu0 %v1259_v14  ;;  %v6558_v55 = vld [vmem:[#allocation10_spill] sm:$0xff]  ;;  %v6559_v45 = vld [vmem:[#allocation8_spill] sm:$0xff] }
 0x14f   : > { %v6550_v24 = vmov %v6545_v0  ;;  %v6551_v60 = vrot.slane %v5070_v59, 7  ;;  %v5253_v0 = vmul.f32 %v6552_v11, %v678_v6  ;;  %v6553_v36 = vrot.slane %v5130_v40, 7  ;;  %v6561_v21 = vld [vmem:[#allocation14_spill] sm:$0xff] }
 0x150   : > { %v1218_v32 = vpack.c.bf16 %v4835_v22, %v896_v38  ;;  %v6554_v22 = vrot.slane %v5116_v57, 7  ;;  %v1262_v37 = vpack.c.bf16 %v1215_v1, %v1214_v34  ;;  %v1265_v46 = vpack.c.bf16 %v1217_v10, %v1216_v39 }
 0x151   : > { %v679_v18 = vsel %vm671_vm1, %v6551_v60, %v6550_v24  ;;  %v6557_v6 = vrot.slane %v5146_v3, 7  ;;  %v6560_v14 = vpack.c.bf16 %v6558_v55, %v6559_v45  ;;  %v1261_v1 = vpack.c.bf16 %v5207_v54, %v5181_v61  ;;  %v5341_v45 = vpop.permute.xlu1 %1858  ;;  %v3987_v54 = vld [vmem:[%s6452_s4 + $0xa8] sm:$0xff]   ;;  %v3988_v61 = vld [vmem:[%s6452_s4 + $0xb0] sm:$0xff]  }
 0x152   : > { %v676_v38 = vsel %vm671_vm1, %v6554_v22, %v6553_v36  ;;  %1498 = vmatmul.mubr.bf16.vlgmr.msra.gmra.mrb[0].mxu1 %v1218_v32  ;;  %v5264_v35 = vmul.f32 %v6555_v63, %v679_v18  ;;  %v6556_v23 = vmov %v6554_v22  ;;  %v674_v39 = vsel %vm671_vm1, %v665_v50, %v666_v31  ;;  %3806 = vmatprep.mubr.bf16.mxu0 %v1262_v37 }
 0x153   : > { %v677_v43 = vsel %vm671_vm1, %v6557_v6, %v6556_v23  ;;  %1505 = vmatprep.mubr.bf16.mxu1 %v6560_v14  ;;  %v5279_v34 = vmul.f32 %v4873_v7, %v676_v38  ;;  %v6562_v10 = vmov %v6553_v36  ;;  %v5292_v18 = vmul.f32 %v5002_v33, %v674_v39  ;;  %v6570_v23 = vld [vmem:[#allocation11_spill] sm:$0xff]  ;;  %6578 = vst [vmem:[#allocation5_spill] sm:$0xff] %v5341_v45 }
 0x154   : > { %v5276_v24 = vmul.f32 %v6561_v21, %v677_v43  ;;  %v1254_v32 = vpack.c.bf16 %v5253_v0, %v5264_v35  ;;  %v675_v60 = vsel %vm671_vm1, %v6562_v10, %v665_v50  ;;  %v1264_v7 = vpack.c.bf16 %v5189_v8, %v5175_v12  ;;  %v6582_v21 = vld [vmem:[#allocation19_spill] sm:$0xff]  ;;  %v3986_v0 = vld [vmem:[%s6452_s4 + $0xa0] sm:$0xff]  }
 0x155   : > { %v5299_v36 = vmul.f32 %v4994_v49, %v675_v60  ;;  %v672_v22 = vsel %vm671_vm1, %v667_v17, %v668_v13  ;;  %v673_v38 = vsel %vm671_vm1, %v666_v31, %v667_v17  ;;  %v6563_v49 = vpack.c.bf16 %v4849_v48, %v4842_v58  ;;  %v6567_v13 = vld [vmem:[#allocation15_spill] sm:$0xff]  ;;  %v5333_v48 = vpop.permute.xlu0 %1853  ;;  %v6585_v60 = vld [vmem:[#allocation18_spill] sm:$0xff] }
 0x156   : > { %v1257_v11 = vpack.c.bf16 %v5279_v34, %v5276_v24  ;;  %v5306_v50 = vmul.f32 %v5135_v2, %v673_v38  ;;  %v5309_v33 = vmul.f32 %v5142_v27, %v672_v22  ;;  %3807 = vmatmul.mubr.bf16.gmra.mrb[60].mxu0 %v1265_v46  ;;  %v6565_v17 = vpack.c.bf16 %v4846_v16, %v6564_v9  ;;  %v6566_v2 = vld [vmem:[#allocation17_spill] sm:$0xff]  ;;  %v6576_v46 = vld [vmem:[#allocation16_spill] sm:$0xff] }
 0x157   : > { %v1260_v37 = vpack.c.bf16 %v5292_v18, %v5299_v36  ;;  %v6568_v31 = vpack.c.bf16 %v6566_v2, %v6567_v13  ;;  %v6569_v27 = vld [vmem:[#allocation13_spill] sm:$0xff]  ;;  %v6572_v43 = vpack.c.bf16 %v4911_v52, %v4924_v56  ;;  %v6573_v58 = vpack.c.bf16 %v4900_v5, %v4881_v47  ;;  %6574 = vst [vmem:[#allocation9_spill] sm:$0xff] %v5333_v48  ;;  %v5348_v47 = vpop.permute.xlu1 %1868  ;;  %v6581_v5 = vld [vmem:[#allocation20_spill] sm:$0xff] }
 0x158   : > { %v1263_v63 = vpack.c.bf16 %v5309_v33, %v5306_v50  ;;  %v6571_v6 = vpack.c.bf16 %v6569_v27, %v6570_v23  ;;  %v6575_v16 = vpack.c.bf16 %v4954_v41, %v4929_v30  ;;  %v6577_v55 = vpack.c.bf16 %v4889_v44, %v6576_v46  ;;  %v6579_v52 = vld [vmem:[#allocation21_spill] sm:$0xff]  ;;  %v6593_v27 = vld [vmem:[#allocation22_spill] sm:$0xff]  ;;  %v6598_v46 = vld [vmem:[#allocation28_spill] sm:$0xff] }
 0x159   : > { %v5343_v14 = vpop.permute.xlu0 %1863  ;;  %v6580_v56 = vpack.c.bf16 %v4984_v62, %v6579_v52  ;;  %v6583_v39 = vpack.c.bf16 %v6581_v5, %v6582_v21  ;;  %v6584_v10 = vpack.c.bf16 %v5026_v4, %v5021_v42  ;;  %v6586_v62 = vpack.c.bf16 %v4945_v15, %v6585_v60  ;;  %v6588_v9 = vld [vmem:[#allocation25_spill] sm:$0xff]  ;;  %v6602_v5 = vld [vmem:[#allocation31_spill] sm:$0xff]  ;;  %v3989_v24 = vld [vmem:[%s6452_s4 + $0xb8] sm:$0xff]  }
 0x15a   : > { %1506 = vmatmul.mubr.bf16.gmra.mrb[4].mxu1 %v6563_v49  ;;  %v6587_v49 = vpack.c.bf16 %v5051_v26, %v5066_v19  ;;  %v6591_v15 = vpack.c.bf16 %v5091_v20, %v5104_v28  ;;  %v3996_v48 = vld [vmem:[%s6452_s4 + $0x58] sm:$0xff]  }
 0x15b   : > { %1513 = vmatprep.mubr.bf16.mxu1 %v6565_v17  ;;  %v5355_v41 = vpop.permute.xlu1 %1878  ;;  %v6589_v17 = vld [vmem:[#allocation23_spill] sm:$0xff] }
 0x15c   : > { %v6590_v2 = vpack.c.bf16 %v6588_v9, %v6589_v17  ;;  %v6607_v9 = vpack.c.bf16 %v5215_v29, %v5210_v51 }
 0x15d   : > { %v5353_v30 = vpop.permute.xlu0 %1873 }
 0x15f   : > { %v5365_v22 = vpop.permute.xlu1 %1888 }
 0x161   : > { %v5357_v44 = vpop.permute.xlu0 %1883 }
 0x162   : > { %1514 = vmatmul.mubr.bf16.gmra.mrb[8].mxu1 %v6568_v31  ;;  %v6592_v31 = vld [vmem:[#allocation24_spill] sm:$0xff] }
 0x163   : > { %1521 = vmatprep.mubr.bf16.mxu1 %v6571_v6  ;;  %v5375_v13 = vpop.permute.xlu1 %1898  ;;  %v6594_v23 = vpack.c.bf16 %v6592_v31, %v6593_v27  ;;  %v3984_v31 = vld [vmem:[%s6452_s4 + $0x90] sm:$0xff]  }
 0x165   : > { %v5367_v38 = vpop.permute.xlu0 %1893 }
 0x167   : > { %v5382_v4 = vpop.permute.xlu1 %1908 }
 0x169   : > { %v5377_v42 = vpop.permute.xlu0 %1903 }
 0x16a   : > { %1522 = vmatmul.mubr.bf16.gmra.mrb[12].mxu1 %v6572_v43  ;;  %v6595_v43 = vld [vmem:[#allocation30_spill] sm:$0xff] }
 0x16b   : > { %1529 = vmatprep.mubr.bf16.mxu1 %v6573_v58  ;;  %v5389_v19 = vpop.permute.xlu1 %1918  ;;  %v6596_v58 = vld [vmem:[#allocation29_spill] sm:$0xff] }
 0x16d   : > { %v5387_v26 = vpop.permute.xlu0 %1913 }
 0x16f   : > { %v5399_v28 = vpop.permute.xlu1 %1928 }
 0x171   : > { %v5391_v6 = vpop.permute.xlu0 %1923 }
 0x172   : > { %1530 = vmatmul.mubr.bf16.gmra.mrb[16].mxu1 %v6575_v16  ;;  %v6597_v16 = vpack.c.bf16 %v6595_v43, %v6596_v58  ;;  %v3990_v43 = vld [vmem:[%s6452_s4 + $0x40] sm:$0xff]  }
 0x173   : > { %1537 = vmatprep.mubr.bf16.mxu1 %v6577_v55  ;;  %v6599_v55 = vld [vmem:[#allocation27_spill] sm:$0xff]  ;;  %v5409_v60 = vpop.permute.xlu1 %1938  ;;  %v3991_v58 = vld [vmem:[%s6452_s4] sm:$0xff]   ;;  %3554 = vmatprep.subr.bf16.mxu0 %v3990_v43 }
 0x174   : > { %v6600_v20 = vpack.c.bf16 %v6598_v46, %v6599_v55  ;;  %6606 = vst [vmem:[#allocation7_spill] sm:$0xff] %v5409_v60  ;;  %3555 = vmatpush3.bf16.msra.mxu0 %v3991_v58 }
 0x175   : > { %v5401_v52 = vpop.permute.xlu0 %1933 }
 0x177   : > { %v5419_v17 = vpop.permute.xlu1 %2083 }
 0x17a   : > { %1538 = vmatmul.mubr.bf16.gmra.mrb[20].mxu1 %v6580_v56  ;;  %v6601_v56 = vld [vmem:[#allocation32_spill] sm:$0xff] }
 0x17b   : > { %1545 = vmatprep.mubr.bf16.mxu1 %v6583_v39  ;;  %v6603_v21 = vpack.c.bf16 %v6601_v56, %v6602_v5  ;;  %v6604_v39 = vld [vmem:[#allocation26_spill] sm:$0xff]  ;;  %v5432_v27 = vpop.permute.xlu1 %2093 }
 0x182   : > { %1546 = vmatmul.mubr.bf16.gmra.mrb[24].mxu1 %v6584_v10  ;;  %v6605_v10 = vpack.c.bf16 %v5070_v59, %v6604_v39  ;;  %v6608_v59 = vpack.c.bf16 %v5146_v3, %v5122_v25  ;;  %v5442_v25 = vpop.permute.xlu1 %1948  ;;  %v3985_v3 = vld [vmem:[%s6452_s4 + $0x98] sm:$0xff]   ;;  %v3993_v39 = vld [vmem:[%s6452_s4 + $0x8] sm:$0xff]  }
 0x183   : > { %1553 = vmatprep.mubr.bf16.mxu1 %v6586_v62  ;;  %v3982_v62 = vld [vmem:[%s6452_s4 + $0x80] sm:$0xff]   ;;  %6610 = vst [vmem:[#allocation10_spill] sm:$0xff] %v5442_v25 }
 0x184   : > { %3810 = vmatprep.subr.bf16.mxu1 %v3982_v62 }
 0x185   : > { %3811 = vmatpush3.bf16.msra.mxu1 %v3982_v62 }
 0x186   : > { %v5458_v57 = vpop.permute.xlu1 %2103 }
 0x18a   : > { %1554 = vmatmul.mubr.bf16.gmra.mrb[28].mxu1 %v6587_v49  ;;  %v5414_v49 = vpop.permute.xlu0 %2078 }
 0x18b   : > { %1561 = vmatprep.mubr.bf16.mxu1 %v6590_v2 }
 0x18e   : > { %v5424_v2 = vpop.permute.xlu0 %2088 }
 0x192   : > { %1562 = vmatmul.mubr.bf16.gmra.mrb[32].mxu1 %v6591_v15  ;;  %v3983_v15 = vld [vmem:[%s6452_s4 + $0x88] sm:$0xff]   ;;  %v5434_v51 = vpop.permute.xlu0 %1943 }
 0x193   : > { %1569 = vmatprep.mubr.bf16.mxu1 %v6594_v23  ;;  %3812 = vmatprep.subr.bf16.mxu1 %v3983_v15  ;;  %6609 = vst [vmem:[#allocation6_spill] sm:$0xff] %v5434_v51  ;;  %v4004_v51 = vld [vmem:[%s6452_s4 + $0x78] sm:$0xff]  }
 0x194   : > { %3813 = vmatpush3.bf16.msra.mxu1 %v3983_v15 }
 0x195   : > { %3814 = vmatprep.subr.bf16.mxu1 %v3984_v31 }
 0x196   : > { %v5447_v29 = vpop.permute.xlu0 %2098 }
 0x198   : > { %3815 = vmatpush3.bf16.msra.mxu1 %v3984_v31 }
 0x199   : > { %3816 = vmatprep.subr.bf16.mxu1 %v3985_v3 }
 0x19a   : > { %1570 = vmatmul.mubr.bf16.gmra.mrb[36].mxu1 %v6597_v16  ;;  %v5460_v40 = vpop.permute.xlu0 %2108 }
 0x19b   : > { %1577 = vmatprep.mubr.bf16.mxu1 %v6600_v20 }
 0x19c   : > { %3817 = vmatpush3.bf16.msra.mxu1 %v3985_v3 }
 0x19d   : > { %3818 = vmatprep.subr.bf16.mxu1 %v3986_v0 }
 0x19e   : > { %v5476_v35 = vpop.permute.xlu0 %1953 }
 0x19f   : > { %6611 = vst [vmem:[#allocation8_spill] sm:$0xff] %v5476_v35 }
 0x1a0   : > { %3819 = vmatpush3.bf16.msra.mxu1 %v3986_v0  ;;  %v3994_v0 = vld [vmem:[%s6452_s4 + $0x50] sm:$0xff]  }
 0x1a1   : > { %3820 = vmatprep.subr.bf16.mxu1 %v3987_v54 }
 0x1a2   : > { %1578 = vmatmul.mubr.bf16.gmra.mrb[40].mxu1 %v6603_v21  ;;  %v5483_v12 = vpop.permute.xlu0 %2118  ;;  %v3992_v21 = vld [vmem:[%s6452_s4 + $0x48] sm:$0xff]  }
 0x1a3   : > { %1585 = vmatprep.mubr.bf16.mxu1 %v6605_v10  ;;  %3556 = vmatprep.subr.bf16.mxu0 %v3992_v21 }
 0x1a4   : > { %3821 = vmatpush3.bf16.msra.mxu1 %v3987_v54  ;;  %3557 = vmatpush3.bf16.msra.mxu0 %v3993_v39  ;;  %v3995_v54 = vld [vmem:[%s6452_s4 + $0x10] sm:$0xff]  }
 0x1a5   : > { %3822 = vmatprep.subr.bf16.mxu1 %v3988_v61  ;;  %3558 = vmatprep.subr.bf16.mxu0 %v3994_v0  ;;  %v3997_v0 = vld [vmem:[%s6452_s4 + $0x18] sm:$0xff]  }
 0x1a8   : > { %3823 = vmatpush3.bf16.msra.mxu1 %v3988_v61  ;;  %3559 = vmatpush3.bf16.msra.mxu0 %v3995_v54 }
 0x1a9   : > { %3824 = vmatprep.subr.bf16.mxu1 %v3989_v24  ;;  %3560 = vmatprep.subr.bf16.mxu0 %v3996_v48  ;;  %v3999_v48 = vld [vmem:[%s6452_s4 + $0x20] sm:$0xff]  }
 0x1aa   : > { %1586 = vmatmul.mubr.bf16.gmra.mrb[44].mxu1 %v6607_v9 }
 0x1ab   : > { %1593 = vmatprep.mubr.bf16.mxu1 %v6608_v59 }
 0x1ac   : > { %3825 = vmatpush3.bf16.msra.mxu1 %v3989_v24  ;;  %3561 = vmatpush3.bf16.msra.mxu0 %v3997_v0 }
 0x1b2   : > { %1594 = vmatmul.mubr.bf16.gmra.mrb[48].mxu1 %v1254_v32 }
 0x1b3   : > { %1601 = vmatprep.mubr.bf16.mxu1 %v1258_v53  ;;  %v5465_v53 = vpop.permute.xlu1 %2113 }
 0x1b7   : > { %v5481_v34 = vpop.permute.xlu1 %1958 }
 0x1b8   : > { %6612 = vst [vmem:[#allocation14_spill] sm:$0xff] %v5481_v34 }
 0x1ba   : > { %1602 = vmatmul.mubr.bf16.gmra.mrb[52].mxu1 %v1257_v11 }
 0x1bb   : > { %1609 = vmatprep.mubr.bf16.mxu1 %v1261_v1  ;;  %v5488_v8 = vpop.permute.xlu1 %2123  ;;  %v5490_v1 = vpop.permute.xlu0 %2128 }
 0x1bf   : > { %v5492_v32 = vpop.permute.xlu1 %2133  ;;  %v5494_v18 = vpop.permute.xlu0 %1963 }
 0x1c0   : > { %6613 = vst [vmem:[#allocation12_spill] sm:$0xff] %v5494_v18 }
 0x1c2   : > { %1610 = vmatmul.mubr.bf16.gmra.mrb[56].mxu1 %v1260_v37 }
 0x1c3   : > { %1617 = vmatprep.mubr.bf16.mxu1 %v1264_v7  ;;  %v5496_v7 = vpop.permute.xlu1 %1968  ;;  %v5498_v11 = vpop.permute.xlu0 %2138 }
 0x1c4   : > { %6614 = vst [vmem:[#allocation17_spill] sm:$0xff] %v5496_v7 }
 0x1c7   : > { %v5500_v36 = vpop.permute.xlu1 %2143  ;;  %v5502_v37 = vpop.permute.xlu0 %2148 }
 0x1c8   : > { %6615 = vst [vmem:[#allocation15_spill] sm:$0xff] %v5502_v37 }
 0x1ca   : > { %1618 = vmatmul.mubr.bf16.gmra.mrb[60].mxu1 %v1263_v63 }
 0x1cb   : > { %v5504_v50 = vpop.permute.xlu1 %2153  ;;  %v5506_v33 = vpop.permute.xlu0 %1973 }
 0x1cc   : > { %6616 = vst [vmem:[#allocation13_spill] sm:$0xff] %v5504_v50  ;;  %6617 = vst [vmem:[#allocation11_spill] sm:$0xff] %v5506_v33 }
 0x1cf   : > { %v5508_v63 = vpop.permute.xlu1 %1978  ;;  %v5510_v23 = vpop.permute.xlu0 %2158 }
 0x1d0   : > { %6618 = vst [vmem:[#allocation16_spill] sm:$0xff] %v5508_v63  ;;  %6619 = vst [vmem:[#allocation21_spill] sm:$0xff] %v5510_v23  ;;  %v4002_v23 = vld [vmem:[%s6452_s4 + $0x70] sm:$0xff]  }
 0x1d3   : > { %v5518_v16 = vpop.permute.xlu1 %2163  ;;  %v5520_v46 = vpop.permute.xlu0 %2168 }
 0x1d4   : > { %6620 = vst [vmem:[#allocation20_spill] sm:$0xff] %v5518_v16  ;;  %6621 = vst [vmem:[#allocation19_spill] sm:$0xff] %v5520_v46  ;;  %v4000_v46 = vld [vmem:[%s6452_s4 + $0x68] sm:$0xff]  }
 0x1d7   : > { %v5536_v10 = vpop.permute.xlu1 %2173  ;;  %v5538_v62 = vpop.permute.xlu0 %1983 }
 0x1d8   : > { %6622 = vst [vmem:[#allocation18_spill] sm:$0xff] %v5536_v10  ;;  %6623 = vst [vmem:[#allocation25_spill] sm:$0xff] %v5538_v62 }
 0x1db   : > { %v5546_v31 = vpop.permute.xlu1 %1988  ;;  %v5556_v61 = vpop.permute.xlu0 %2178 }
 0x1dc   : > { %6624 = vst [vmem:[#allocation23_spill] sm:$0xff] %v5546_v31  ;;  %6625 = vst [vmem:[#allocation24_spill] sm:$0xff] %v5556_v61 }
 0x1df   : > { %v5560_v43 = vpop.permute.xlu1 %2183  ;;  %v5564_v21 = vpop.permute.xlu0 %2188 }
 0x1e0   : > { %6626 = vst [vmem:[#allocation22_spill] sm:$0xff] %v5560_v43  ;;  %6627 = vst [vmem:[#allocation30_spill] sm:$0xff] %v5564_v21  ;;  %v3998_v43 = vld [vmem:[%s6452_s4 + $0x60] sm:$0xff]  }
 0x1e1   : > { %3562 = vmatprep.subr.bf16.mxu0 %v3998_v43  ;;  %v4001_v43 = vld [vmem:[%s6452_s4 + $0x28] sm:$0xff]  }
 0x1e2   : > { %3563 = vmatpush3.bf16.msra.mxu0 %v3999_v48 }
 0x1e3   : > { %v5576_v54 = vpop.permute.xlu1 %2193  ;;  %v5578_v31 = vpop.permute.xlu0 %1993  ;;  %3564 = vmatprep.subr.bf16.mxu0 %v4000_v46  ;;  %v4003_v46 = vld [vmem:[%s6452_s4 + $0x30] sm:$0xff]  }
 0x1e4   : > { %6628 = vst [vmem:[#allocation29_spill] sm:$0xff] %v5576_v54  ;;  %6629 = vst [vmem:[#allocation28_spill] sm:$0xff] %v5578_v31 }
 0x1e6   : > { %3565 = vmatpush3.bf16.msra.mxu0 %v4001_v43 }
 0x1e7   : > { %v5594_v0 = vpop.permute.xlu1 %1998  ;;  %v5596_v31 = vpop.permute.xlu0 %2198  ;;  %3566 = vmatprep.subr.bf16.mxu0 %v4002_v23 }
 0x1e8   : > { %6630 = vst [vmem:[#allocation27_spill] sm:$0xff] %v5594_v0  ;;  %6631 = vst [vmem:[#allocation32_spill] sm:$0xff] %v5596_v31 }
 0x1ea   : > { %3567 = vmatpush3.bf16.msra.mxu0 %v4003_v46 }
 0x1eb   : > { %v5604_v18 = vpop.permute.xlu1 %2203  ;;  %v5614_v0 = vpop.permute.xlu0 %2208  ;;  %3568 = vmatprep.subr.bf16.mxu0 %v4004_v51 }
 0x1ec   : > { %6635 = vst [vmem:[#allocation34_spill] sm:$0xff] %v5604_v18  ;;  %6637 = vst [vmem:[#allocation36_spill] sm:$0xff] %v5614_v0 }
 0x1ef   : > { %v5618_v31 = vpop.permute.xlu1 %2213  ;;  %v5622_v18 = vpop.permute.xlu0 %2003 }
 0x1f0   : > { %6639 = vst [vmem:[#allocation38_spill] sm:$0xff] %v5618_v31  ;;  %6641 = vst [vmem:[#allocation40_spill] sm:$0xff] %v5622_v18 }
 0x1f1   : > { %v5522_v55 = vpop.f32.mrb[32].mxu0 }
 0x1f2   : > { %v5524_v20 = vpop.f32.mrb[33].mxu0 }
 0x1f3   : > { %v5526_v56 = vpop.f32.mrb[34].mxu0  ;;  %v5634_v43 = vpop.permute.xlu1 %2008 }
 0x1f4   : > { %v5528_v5 = vpop.f32.mrb[35].mxu0  ;;  %6644 = vst [vmem:[#allocation43_spill] sm:$0xff] %v5634_v43  ;;  %v5636_v31 = vpop.permute.xlu0 %2218 }
 0x1f5   : > { %6645 = vst [vmem:[#allocation44_spill] sm:$0xff] %v5636_v31 }
 0x1f9   : > { %v5540_v9 = vpop.f32.mrb[36].mxu0 }
 0x1fa   : > { %v5542_v59 = vpop.f32.mrb[37].mxu0 }
 0x1fb   : > { %v5544_v15 = vpop.f32.mrb[38].mxu0 }
 0x1fc   : > { %v5548_v3 = vpop.f32.mrb[39].mxu0 }
 0x201   : > { %v5558_v24 = vpop.f32.mrb[40].mxu0 }
 0x202   : > { %v5562_v58 = vpop.f32.mrb[41].mxu0 }
 0x203   : > { %v5566_v39 = vpop.f32.mrb[42].mxu0 }
 0x204   : > { %v5568_v45 = vpop.f32.mrb[43].mxu0 }
 0x209   : > { %v5580_v62 = vpop.f32.mrb[44].mxu0 }
 0x20a   : > { %v5582_v21 = vpop.f32.mrb[45].mxu0 }
 0x20b   : > { %v5584_v63 = vpop.f32.mrb[46].mxu0 }
 0x20c   : > { %v5586_v33 = vpop.f32.mrb[47].mxu0 }
 0x211   : > { %v5598_v54 = vpop.f32.mrb[48].mxu0 }
 0x212   : > { %6632 = vst [vmem:[#allocation31_spill] sm:$0xff] %v5598_v54  ;;  %v5600_v61 = vpop.f32.mrb[49].mxu0 }
 0x213   : > { %6633 = vst [vmem:[#allocation26_spill] sm:$0xff] %v5600_v61  ;;  %v5602_v7 = vpop.f32.mrb[50].mxu0 }
 0x214   : > { %6634 = vst [vmem:[#allocation33_spill] sm:$0xff] %v5602_v7  ;;  %v5606_v10 = vpop.f32.mrb[51].mxu0 }
 0x215   : > { %6636 = vst [vmem:[#allocation35_spill] sm:$0xff] %v5606_v10 }
 0x219   : > { %v5616_v48 = vpop.f32.mrb[52].mxu0 }
 0x21a   : > { %6638 = vst [vmem:[#allocation37_spill] sm:$0xff] %v5616_v48  ;;  %v5620_v34 = vpop.f32.mrb[53].mxu0  ;;  %v5645_v48 = vld [vmem:[%s6451_s3] ss:$0 sm:$0xff] }
 0x21b   : > { %6640 = vst [vmem:[#allocation39_spill] sm:$0xff] %v5620_v34  ;;  %v5624_v35 = vpop.f32.mrb[54].mxu0 }
 0x21c   : > { %6642 = vst [vmem:[#allocation41_spill] sm:$0xff] %v5624_v35  ;;  %v5626_v16 = vpop.f32.mrb[55].mxu0 }
 0x21d   : > { %6643 = vst [vmem:[#allocation42_spill] sm:$0xff] %v5626_v16 }
 0x221   : > { %v5638_v0 = vpop.f32.mrb[56].mxu0 }
 0x222   : > { %6646 = vst [vmem:[#allocation45_spill] sm:$0xff] %v5638_v0  ;;  %v5640_v35 = vpop.f32.mrb[57].mxu0  ;;  %v5652_v0 = vpop.permute.xlu1 %2223 }
 0x223   : > { %6647 = vst [vmem:[#allocation46_spill] sm:$0xff] %v5640_v35  ;;  %v5647_v34 = vpop.f32.mrb[58].mxu0  ;;  %6650 = vst [vmem:[#allocation49_spill] sm:$0xff] %v5652_v0 }
 0x224   : > { %6648 = vst [vmem:[#allocation47_spill] sm:$0xff] %v5647_v34  ;;  %v5649_v46 = vpop.f32.mrb[59].mxu0 }
 0x225   : > { %v3434_v18 = vpop.f32.mrb[0].mxu1  ;;  %6649 = vst [vmem:[#allocation48_spill] sm:$0xff] %v5649_v46 }
 0x226   : > { %v3435_v16 = vpop.f32.mrb[1].mxu1  ;;  %v2234_v10 = vpop.permute.xlu1 %2233 }
 0x227   : > { %v3436_v7 = vadd.f32 %v3435_v16, %v3434_v18  ;;  %v3437_v23 = vpop.f32.mrb[2].mxu1  ;;  %v4005_v18 = vld [vmem:[%s6452_s4 + $0x38] sm:$0xff]   ;;  %v2229_v16 = vpop.permute.xlu0 %2228 }
 0x228   : > { %v3438_v43 = vpop.f32.mrb[3].mxu1  ;;  %3569 = vmatpush3.bf16.msra.mxu0 %v4005_v18 }
 0x229   : > { %v1500_v31 = vadd.f32 %v3436_v7, %v5645_v48  ;;  %v3439_v54 = vadd.f32 %v3438_v43, %v3437_v23  ;;  %v5662_v34 = vpop.f32.mrb[60].mxu0 }
 0x22a   : > { %6651 = vst [vmem:[#allocation50_spill] sm:$0xff] %v5662_v34  ;;  %v5665_v23 = vpop.f32.mrb[61].mxu0 }
 0x22b   : > { %v1661_v35 = vadd.f32 %v5524_v20, %v1500_v31  ;;  %v1503_v25 = vadd.f32 %v3439_v54, %v5645_v48  ;;  %v5667_v31 = vpop.f32.mrb[62].mxu0 }
 0x22c   : > { %v5669_v37 = vpop.f32.mrb[63].mxu0 }
 0x22d   : > { %v1787_v46 = vmax.f32 %v1661_v35, 0.0  ;;  %v1664_v7 = vadd.f32 %v5528_v5, %v1503_v25  ;;  %v3440_v43 = vpop.f32.mrb[4].mxu1 }
 0x22e   : > { %v3441_v20 = vpop.f32.mrb[5].mxu1 }
 0x22f   : > { %v1788_v54 = vmax.f32 %v1664_v7, 0.0  ;;  %v3442_v0 = vadd.f32 %v3441_v20, %v3440_v43  ;;  %v3443_v50 = vpop.f32.mrb[6].mxu1  ;;  %v5671_v60 = vmul.f32 %v2229_v16, %v1787_v46  ;;  %v5677_v51 = vmul.f32 %v5343_v14, %v1787_v46 }
 0x230   : > { %v3444_v61 = vpop.f32.mrb[7].mxu1 }
 0x231   : > { %v1508_v35 = vadd.f32 %v3442_v0, %v5645_v48  ;;  %v3445_v25 = vadd.f32 %v3444_v61, %v3443_v50  ;;  %v2269_v5 = vpack.c.bf16 %v1788_v54, %v1787_v46  ;;  %v5674_v34 = vmul.f32 %v2234_v10, %v1788_v54 }
 0x232   : > { %v5680_v18 = vmul.f32 %v5348_v47, %v1788_v54 }
 0x233   : > { %v1669_v7 = vadd.f32 %v5522_v55, %v1508_v35  ;;  %v1511_v43 = vadd.f32 %v3445_v25, %v5645_v48  ;;  %2547 = vmatprep.mubr.bf16.mxu0 %v2269_v5 }
 0x235   : > { %v5688_v61 = vmax.f32 %v1669_v7, 0.0  ;;  %v1672_v10 = vadd.f32 %v5526_v56, %v1511_v43  ;;  %v3446_v14 = vpop.f32.mrb[8].mxu1 }
 0x236   : > { %v3447_v0 = vpop.f32.mrb[9].mxu1 }
 0x237   : > { %v5691_v46 = vmax.f32 %v1672_v10, 0.0  ;;  %v3448_v47 = vadd.f32 %v3447_v0, %v3446_v14  ;;  %v3449_v20 = vpop.f32.mrb[10].mxu1  ;;  %v2236_v54 = vmul.f32 %v5414_v49, %v5688_v61  ;;  %v5702_v56 = vmul.f32 %v5353_v30, %v5688_v61 }
 0x238   : > { %v3450_v55 = vpop.f32.mrb[11].mxu1 }
 0x239   : > { %v1516_v35 = vadd.f32 %v3448_v47, %v5645_v48  ;;  %v3451_v25 = vadd.f32 %v3450_v55, %v3449_v20  ;;  %v2237_v5 = vmul.f32 %v5419_v17, %v5691_v46  ;;  %v5706_v43 = vmul.f32 %v5355_v41, %v5691_v46 }
 0x23b   : > { %v1677_v10 = vadd.f32 %v5542_v59, %v1516_v35  ;;  %v1519_v49 = vadd.f32 %v3451_v25, %v5645_v48  ;;  %v2270_v14 = vpack.c.bf16 %v2237_v5, %v2236_v54 }
 0x23d   : > { %v5712_v17 = vmax.f32 %v1677_v10, 0.0  ;;  %v1680_v47 = vadd.f32 %v5548_v3, %v1519_v49  ;;  %v3452_v20 = vpop.f32.mrb[12].mxu1  ;;  %3826 = vmatprep.mubr.bf16.mxu1 %v2270_v14 }
 0x23e   : > { %v3453_v30 = vpop.f32.mrb[13].mxu1 }
 0x23f   : > { %v5715_v55 = vmax.f32 %v1680_v47, 0.0  ;;  %v3454_v50 = vadd.f32 %v3453_v30, %v3452_v20  ;;  %v3455_v41 = vpop.f32.mrb[14].mxu1  ;;  %v2238_v59 = vmul.f32 %v5424_v2, %v5712_v17  ;;  %v5726_v10 = vmul.f32 %v5357_v44, %v5712_v17 }
 0x240   : > { %v3456_v35 = vpop.f32.mrb[15].mxu1 }
 0x241   : > { %v2239_v54 = vmul.f32 %v5432_v27, %v5715_v55  ;;  %v1524_v25 = vadd.f32 %v3454_v50, %v5645_v48  ;;  %v3457_v5 = vadd.f32 %v3456_v35, %v3455_v41  ;;  %v5730_v49 = vmul.f32 %v5365_v22, %v5715_v55 }
 0x243   : > { %v2273_v14 = vpack.c.bf16 %v2239_v54, %v2238_v59  ;;  %v1685_v2 = vadd.f32 %v5540_v9, %v1524_v25  ;;  %v1527_v47 = vadd.f32 %v3457_v5, %v5645_v48 }
 0x245   : > { %v5736_v50 = vmax.f32 %v1685_v2, 0.0  ;;  %v1688_v20 = vadd.f32 %v5544_v15, %v1527_v47  ;;  %v3458_v30 = vpop.f32.mrb[16].mxu1  ;;  %3827 = vmatmul.mubr.bf16.vlgmr.msra.gmra.mrb[64].mxu1 %v2273_v14 }
 0x246   : > { %v3459_v44 = vpop.f32.mrb[17].mxu1 }
 0x247   : > { %v5739_v41 = vmax.f32 %v1688_v20, 0.0  ;;  %v3460_v35 = vadd.f32 %v3459_v44, %v3458_v30  ;;  %v3461_v22 = vpop.f32.mrb[18].mxu1  ;;  %v2240_v9 = vmul.f32 %v5447_v29, %v5736_v50  ;;  %v5750_v5 = vmul.f32 %v5367_v38, %v5736_v50 }
 0x248   : > { %v3462_v0 = vpop.f32.mrb[19].mxu1 }
 0x249   : > { %v1532_v59 = vadd.f32 %v3460_v35, %v5645_v48  ;;  %v3463_v54 = vadd.f32 %v3462_v0, %v3461_v22  ;;  %v2241_v25 = vmul.f32 %v5458_v57, %v5739_v41  ;;  %v5754_v14 = vmul.f32 %v5375_v13, %v5739_v41 }
 0x24b   : > { %v1693_v2 = vadd.f32 %v5562_v58, %v1532_v59  ;;  %v1535_v29 = vadd.f32 %v3463_v54, %v5645_v48  ;;  %v2276_v47 = vpack.c.bf16 %v2241_v25, %v2240_v9 }
 0x24d   : > { %v5760_v57 = vmax.f32 %v1693_v2, 0.0  ;;  %v1696_v20 = vadd.f32 %v5568_v45, %v1535_v29  ;;  %v3464_v30 = vpop.f32.mrb[20].mxu1  ;;  %3830 = vmatprep.mubr.bf16.mxu1 %v2276_v47 }
 0x24e   : > { %v3465_v38 = vpop.f32.mrb[21].mxu1 }
 0x24f   : > { %v5763_v44 = vmax.f32 %v1696_v20, 0.0  ;;  %v3466_v35 = vadd.f32 %v3465_v38, %v3464_v30  ;;  %v3467_v13 = vpop.f32.mrb[22].mxu1  ;;  %v2242_v58 = vmul.f32 %v5460_v40, %v5760_v57  ;;  %v5774_v25 = vmul.f32 %v5377_v42, %v5760_v57 }
 0x250   : > { %v3468_v22 = vpop.f32.mrb[23].mxu1 }
 0x251   : > { %v1540_v9 = vadd.f32 %v3466_v35, %v5645_v48  ;;  %v3469_v59 = vadd.f32 %v3468_v22, %v3467_v13  ;;  %v2243_v54 = vmul.f32 %v5465_v53, %v5763_v44  ;;  %v5778_v2 = vmul.f32 %v5382_v4, %v5763_v44 }
 0x253   : > { %v1701_v29 = vadd.f32 %v5558_v24, %v1540_v9  ;;  %v1543_v40 = vadd.f32 %v3469_v59, %v5645_v48  ;;  %v2279_v47 = vpack.c.bf16 %v2243_v54, %v2242_v58 }
 0x255   : > { %v5784_v53 = vmax.f32 %v1701_v29, 0.0  ;;  %v1704_v30 = vadd.f32 %v5566_v39, %v1543_v40  ;;  %v3470_v38 = vpop.f32.mrb[24].mxu1  ;;  %3831 = vmatmul.mubr.bf16.gmra.mrb[68].mxu1 %v2279_v47 }
 0x256   : > { %v3471_v42 = vpop.f32.mrb[25].mxu1 }
 0x257   : > { %v5787_v35 = vmax.f32 %v1704_v30, 0.0  ;;  %v3472_v13 = vadd.f32 %v3471_v42, %v3470_v38  ;;  %v3473_v4 = vpop.f32.mrb[26].mxu1  ;;  %v2244_v24 = vmul.f32 %v5483_v12, %v5784_v53  ;;  %v5798_v54 = vmul.f32 %v5387_v26, %v5784_v53 }
 0x258   : > { %v3474_v22 = vpop.f32.mrb[27].mxu1 }
 0x259   : > { %v1548_v58 = vadd.f32 %v3472_v13, %v5645_v48  ;;  %v3475_v9 = vadd.f32 %v3474_v22, %v3473_v4  ;;  %v2245_v59 = vmul.f32 %v5488_v8, %v5787_v35  ;;  %v5802_v29 = vmul.f32 %v5389_v19, %v5787_v35 }
 0x25b   : > { %v1709_v40 = vadd.f32 %v5582_v21, %v1548_v58  ;;  %v1551_v12 = vadd.f32 %v3475_v9, %v5645_v48  ;;  %v2282_v47 = vpack.c.bf16 %v2245_v59, %v2244_v24 }
 0x25d   : > { %v5808_v8 = vmax.f32 %v1709_v40, 0.0  ;;  %v1712_v38 = vadd.f32 %v5586_v33, %v1551_v12  ;;  %v3476_v42 = vpop.f32.mrb[28].mxu1  ;;  %3834 = vmatprep.mubr.bf16.mxu1 %v2282_v47 }
 0x25e   : > { %v3477_v26 = vpop.f32.mrb[29].mxu1 }
 0x25f   : > { %v5811_v13 = vmax.f32 %v1712_v38, 0.0  ;;  %v3478_v4 = vadd.f32 %v3477_v26, %v3476_v42  ;;  %v3479_v19 = vpop.f32.mrb[30].mxu1  ;;  %v2246_v21 = vmul.f32 %v5490_v1, %v5808_v8  ;;  %v5822_v59 = vmul.f32 %v5391_v6, %v5808_v8 }
 0x260   : > { %v3480_v22 = vpop.f32.mrb[31].mxu1 }
 0x261   : > { %v1556_v24 = vadd.f32 %v3478_v4, %v5645_v48  ;;  %v3481_v58 = vadd.f32 %v3480_v22, %v3479_v19  ;;  %v2247_v9 = vmul.f32 %v5492_v32, %v5811_v13  ;;  %v5826_v40 = vmul.f32 %v5399_v28, %v5811_v13 }
 0x263   : > { %v1717_v12 = vadd.f32 %v5580_v62, %v1556_v24  ;;  %v1559_v1 = vadd.f32 %v3481_v58, %v5645_v48  ;;  %v2285_v47 = vpack.c.bf16 %v2247_v9, %v2246_v21 }
 0x265   : > { %v5832_v32 = vmax.f32 %v1717_v12, 0.0  ;;  %v1720_v42 = vadd.f32 %v5584_v63, %v1559_v1  ;;  %v3482_v26 = vpop.f32.mrb[32].mxu1  ;;  %3835 = vmatmul.mubr.bf16.gmra.mrb[72].mxu1 %v2285_v47  ;;  %v6652_v12 = vld [vmem:[#allocation7_spill] sm:$0xff]  ;;  %v6653_v47 = vld [vmem:[#allocation26_spill] sm:$0xff] }
 0x266   : > { %v3483_v6 = vpop.f32.mrb[33].mxu1 }
 0x267   : > { %v5835_v4 = vmax.f32 %v1720_v42, 0.0  ;;  %v3484_v19 = vadd.f32 %v3483_v6, %v3482_v26  ;;  %v3485_v28 = vpop.f32.mrb[34].mxu1  ;;  %v2248_v62 = vmul.f32 %v5498_v11, %v5832_v32  ;;  %v5846_v9 = vmul.f32 %v5401_v52, %v5832_v32 }
 0x268   : > { %v3486_v22 = vpop.f32.mrb[35].mxu1 }
 0x269   : > { %v1564_v21 = vadd.f32 %v3484_v19, %v5645_v48  ;;  %v3487_v24 = vadd.f32 %v3486_v22, %v3485_v28  ;;  %v2249_v58 = vmul.f32 %v5500_v36, %v5835_v4  ;;  %v5850_v1 = vmul.f32 %v6652_v12, %v5835_v4  ;;  %v6654_v19 = vld [vmem:[#allocation35_spill] sm:$0xff] }
 0x26b   : > { %v1725_v42 = vadd.f32 %v6653_v47, %v1564_v21  ;;  %v1567_v11 = vadd.f32 %v3487_v24, %v5645_v48  ;;  %v2288_v26 = vpack.c.bf16 %v2249_v58, %v2248_v62  ;;  %v6655_v21 = vld [vmem:[#allocation15_spill] sm:$0xff]  ;;  %v6656_v58 = vld [vmem:[#allocation13_spill] sm:$0xff] }
 0x26d   : > { %v5856_v36 = vmax.f32 %v1725_v42, 0.0  ;;  %v1728_v28 = vadd.f32 %v6654_v19, %v1567_v11  ;;  %v3488_v22 = vpop.f32.mrb[36].mxu1  ;;  %3838 = vmatprep.mubr.bf16.mxu1 %v2288_v26  ;;  %v6657_v26 = vld [vmem:[#allocation6_spill] sm:$0xff] }
 0x26e   : > { %v3489_v52 = vpop.f32.mrb[37].mxu1 }
 0x26f   : > { %v5859_v38 = vmax.f32 %v1728_v28, 0.0  ;;  %v3490_v63 = vadd.f32 %v3489_v52, %v3488_v22  ;;  %v3491_v12 = vpop.f32.mrb[38].mxu1  ;;  %v2250_v47 = vmul.f32 %v6655_v21, %v5856_v36  ;;  %v5870_v19 = vmul.f32 %v6657_v26, %v5856_v36  ;;  %v6658_v28 = vld [vmem:[#allocation10_spill] sm:$0xff]  ;;  %v6659_v52 = vld [vmem:[#allocation31_spill] sm:$0xff] }
 0x270   : > { %v3492_v30 = vpop.f32.mrb[39].mxu1 }
 0x271   : > { %v1572_v62 = vadd.f32 %v3490_v63, %v5645_v48  ;;  %v3493_v24 = vadd.f32 %v3492_v30, %v3491_v12  ;;  %v2251_v42 = vmul.f32 %v6656_v58, %v5859_v38  ;;  %v5874_v22 = vmul.f32 %v6658_v28, %v5859_v38  ;;  %v6660_v58 = vld [vmem:[#allocation33_spill] sm:$0xff] }
 0x273   : > { %v1733_v6 = vadd.f32 %v6659_v52, %v1572_v62  ;;  %v1575_v21 = vadd.f32 %v3493_v24, %v5645_v48  ;;  %v2291_v63 = vpack.c.bf16 %v2251_v42, %v2250_v47  ;;  %v6661_v62 = vld [vmem:[#allocation21_spill] sm:$0xff]  ;;  %v6662_v42 = vld [vmem:[#allocation20_spill] sm:$0xff] }
 0x275   : > { %v5880_v12 = vmax.f32 %v1733_v6, 0.0  ;;  %v1736_v11 = vadd.f32 %v6660_v58, %v1575_v21  ;;  %v3494_v33 = vpop.f32.mrb[40].mxu1  ;;  %3839 = vmatmul.mubr.bf16.gmra.mrb[76].mxu1 %v2291_v63  ;;  %v6663_v63 = vld [vmem:[#allocation8_spill] sm:$0xff] }
 0x276   : > { %v3495_v26 = vpop.f32.mrb[41].mxu1 }
 0x277   : > { %v5883_v20 = vmax.f32 %v1736_v11, 0.0  ;;  %v3496_v39 = vadd.f32 %v3495_v26, %v3494_v33  ;;  %v3497_v28 = vpop.f32.mrb[42].mxu1  ;;  %v2252_v52 = vmul.f32 %v6661_v62, %v5880_v12  ;;  %v5894_v58 = vmul.f32 %v6663_v63, %v5880_v12  ;;  %v6665_v33 = vld [vmem:[#allocation14_spill] sm:$0xff]  ;;  %v6667_v26 = vld [vmem:[#allocation39_spill] sm:$0xff] }
 0x278   : > { %v3498_v0 = vpop.f32.mrb[43].mxu1 }
 0x279   : > { %v1580_v47 = vadd.f32 %v3496_v39, %v5645_v48  ;;  %v3499_v24 = vadd.f32 %v3498_v0, %v3497_v28  ;;  %v2253_v6 = vmul.f32 %v6662_v42, %v5883_v20  ;;  %6664 = vst [vmem:[#allocation7_spill] sm:$0xff] %v5894_v58  ;;  %v5898_v11 = vmul.f32 %v6665_v33, %v5883_v20  ;;  %v6668_v42 = vld [vmem:[#allocation42_spill] sm:$0xff] }
 0x27b   : > { %6666 = vst [vmem:[#allocation26_spill] sm:$0xff] %v5898_v11  ;;  %v1741_v30 = vadd.f32 %v6667_v26, %v1580_v47  ;;  %v1583_v62 = vadd.f32 %v3499_v24, %v5645_v48  ;;  %v2294_v39 = vpack.c.bf16 %v2253_v6, %v2252_v52  ;;  %v6669_v47 = vld [vmem:[#allocation19_spill] sm:$0xff]  ;;  %v6670_v6 = vld [vmem:[#allocation18_spill] sm:$0xff] }
 0x27d   : > { %v5904_v28 = vmax.f32 %v1741_v30, 0.0  ;;  %v1744_v21 = vadd.f32 %v6668_v42, %v1583_v62  ;;  %v3500_v45 = vpop.f32.mrb[44].mxu1  ;;  %3842 = vmatprep.mubr.bf16.mxu1 %v2294_v39  ;;  %v6671_v39 = vld [vmem:[#allocation12_spill] sm:$0xff] }
 0x27e   : > { %v3501_v63 = vpop.f32.mrb[45].mxu1 }
 0x27f   : > { %v5907_v27 = vmax.f32 %v1744_v21, 0.0  ;;  %v3502_v15 = vadd.f32 %v3501_v63, %v3500_v45  ;;  %v3503_v33 = vpop.f32.mrb[46].mxu1  ;;  %v2254_v26 = vmul.f32 %v6669_v47, %v5904_v28  ;;  %v5918_v42 = vmul.f32 %v6671_v39, %v5904_v28  ;;  %v6673_v45 = vld [vmem:[#allocation17_spill] sm:$0xff] }
 0x280   : > { %v3504_v3 = vpop.f32.mrb[47].mxu1  ;;  %v6675_v63 = vld [vmem:[#allocation37_spill] sm:$0xff] }
 0x281   : > { %v1588_v52 = vadd.f32 %v3502_v15, %v5645_v48  ;;  %v3505_v24 = vadd.f32 %v3504_v3, %v3503_v33  ;;  %v2255_v30 = vmul.f32 %v6670_v6, %v5907_v27  ;;  %6672 = vst [vmem:[#allocation35_spill] sm:$0xff] %v5918_v42  ;;  %v5922_v21 = vmul.f32 %v6673_v45, %v5907_v27  ;;  %v6677_v6 = vld [vmem:[#allocation41_spill] sm:$0xff] }
 0x283   : > { %6674 = vst [vmem:[#allocation15_spill] sm:$0xff] %v5922_v21  ;;  %v1749_v0 = vadd.f32 %v6675_v63, %v1588_v52  ;;  %v1591_v47 = vadd.f32 %v3505_v24, %v5645_v48  ;;  %v2297_v15 = vpack.c.bf16 %v2255_v30, %v2254_v26  ;;  %v6679_v52 = vld [vmem:[#allocation24_spill] sm:$0xff]  ;;  %v6680_v30 = vld [vmem:[#allocation22_spill] sm:$0xff] }
 0x285   : > { %v5928_v33 = vmax.f32 %v1749_v0, 0.0  ;;  %v1752_v62 = vadd.f32 %v6677_v6, %v1591_v47  ;;  %v3506_v16 = vpop.f32.mrb[48].mxu1  ;;  %3843 = vmatmul.mubr.bf16.gmra.mrb[80].mxu1 %v2297_v15  ;;  %v6681_v15 = vld [vmem:[#allocation11_spill] sm:$0xff] }
 0x286   : > { %v3507_v39 = vpop.f32.mrb[49].mxu1 }
 0x287   : > { %6676 = vst [vmem:[#allocation13_spill] sm:$0xff] %v5928_v33  ;;  %v5931_v7 = vmax.f32 %v1752_v62, 0.0  ;;  %v3508_v58 = vadd.f32 %v3507_v39, %v3506_v16  ;;  %v3509_v45 = vpop.f32.mrb[50].mxu1  ;;  %v2256_v63 = vmul.f32 %v6679_v52, %v5928_v33  ;;  %v5942_v6 = vmul.f32 %v6681_v15, %v5928_v33  ;;  %v6683_v16 = vld [vmem:[#allocation16_spill] sm:$0xff]  ;;  %v6685_v39 = vld [vmem:[#allocation46_spill] sm:$0xff] }
 0x288   : > { %v3510_v11 = vpop.f32.mrb[51].mxu1 }
 0x289   : > { %6678 = vst [vmem:[#allocation6_spill] sm:$0xff] %v5931_v7  ;;  %v1596_v26 = vadd.f32 %v3508_v58, %v5645_v48  ;;  %v3511_v24 = vadd.f32 %v3510_v11, %v3509_v45  ;;  %v2257_v0 = vmul.f32 %v6680_v30, %v5931_v7  ;;  %6682 = vst [vmem:[#allocation10_spill] sm:$0xff] %v5942_v6  ;;  %v6687_v30 = vld [vmem:[#allocation48_spill] sm:$0xff] }
 0x28a   : > { %v5946_v62 = vmul.f32 %v6683_v16, %v5931_v7 }
 0x28b   : > { %v1757_v3 = vadd.f32 %v6685_v39, %v1596_v26  ;;  %v1599_v52 = vadd.f32 %v3511_v24, %v5645_v48  ;;  %v2300_v58 = vpack.c.bf16 %v2257_v0, %v2256_v63  ;;  %v6689_v26 = vld [vmem:[#allocation30_spill] sm:$0xff]  ;;  %v6690_v0 = vld [vmem:[#allocation29_spill] sm:$0xff] }
 0x28c   : > { %6684 = vst [vmem:[#allocation31_spill] sm:$0xff] %v5946_v62 }
 0x28d   : > { %v5952_v45 = vmax.f32 %v1757_v3, 0.0  ;;  %v1760_v47 = vadd.f32 %v6687_v30, %v1599_v52  ;;  %v3512_v42 = vpop.f32.mrb[52].mxu1  ;;  %3846 = vmatprep.mubr.bf16.mxu1 %v2300_v58  ;;  %v6691_v58 = vld [vmem:[#allocation25_spill] sm:$0xff] }
 0x28e   : > { %v3513_v15 = vpop.f32.mrb[53].mxu1 }
 0x28f   : > { %6686 = vst [vmem:[#allocation33_spill] sm:$0xff] %v5952_v45  ;;  %v5955_v21 = vmax.f32 %v1760_v47, 0.0  ;;  %v3514_v33 = vadd.f32 %v3513_v15, %v3512_v42  ;;  %v3515_v16 = vpop.f32.mrb[54].mxu1  ;;  %v2258_v39 = vmul.f32 %v6689_v26, %v5952_v45  ;;  %v5966_v30 = vmul.f32 %v6691_v58, %v5952_v45  ;;  %v6693_v42 = vld [vmem:[#allocation23_spill] sm:$0xff]  ;;  %v6695_v15 = vld [vmem:[#allocation45_spill] sm:$0xff] }
 0x290   : > { %v3516_v7 = vpop.f32.mrb[55].mxu1 }
 0x291   : > { %6688 = vst [vmem:[#allocation21_spill] sm:$0xff] %v5955_v21  ;;  %v1604_v63 = vadd.f32 %v3514_v33, %v5645_v48  ;;  %v3517_v24 = vadd.f32 %v3516_v7, %v3515_v16  ;;  %v2259_v3 = vmul.f32 %v6690_v0, %v5955_v21  ;;  %6692 = vst [vmem:[#allocation20_spill] sm:$0xff] %v5966_v30  ;;  %v6696_v0 = vld [vmem:[#allocation47_spill] sm:$0xff] }
 0x292   : > { %v5970_v47 = vmul.f32 %v6693_v42, %v5955_v21 }
 0x293   : > { %v1765_v11 = vadd.f32 %v6695_v15, %v1604_v63  ;;  %v1607_v26 = vadd.f32 %v3517_v24, %v5645_v48  ;;  %v2303_v33 = vpack.c.bf16 %v2259_v3, %v2258_v39  ;;  %v6697_v63 = vld [vmem:[#allocation32_spill] sm:$0xff]  ;;  %v6698_v3 = vld [vmem:[#allocation34_spill] sm:$0xff] }
 0x294   : > { %6694 = vst [vmem:[#allocation8_spill] sm:$0xff] %v5970_v47 }
 0x295   : > { %v5976_v16 = vmax.f32 %v1765_v11, 0.0  ;;  %v1768_v52 = vadd.f32 %v6696_v0, %v1607_v26  ;;  %v3518_v6 = vpop.f32.mrb[56].mxu1  ;;  %3847 = vmatmul.mubr.bf16.gmra.mrb[84].mxu1 %v2303_v33  ;;  %v6699_v33 = vld [vmem:[#allocation28_spill] sm:$0xff] }
 0x296   : > { %v3519_v58 = vpop.f32.mrb[57].mxu1 }
 0x297   : > { %v5979_v62 = vmax.f32 %v1768_v52, 0.0  ;;  %v3520_v45 = vadd.f32 %v3519_v58, %v3518_v6  ;;  %v3521_v42 = vpop.f32.mrb[58].mxu1  ;;  %v2260_v15 = vmul.f32 %v6697_v63, %v5976_v16  ;;  %v5990_v0 = vmul.f32 %v6699_v33, %v5976_v16  ;;  %v6701_v6 = vld [vmem:[#allocation27_spill] sm:$0xff] }
 0x298   : > { %v3522_v21 = vpop.f32.mrb[59].mxu1 }
 0x299   : > { %v1612_v39 = vadd.f32 %v3520_v45, %v5645_v48  ;;  %v3523_v24 = vadd.f32 %v3522_v21, %v3521_v42  ;;  %v2261_v11 = vmul.f32 %v6698_v3, %v5979_v62  ;;  %6700 = vst [vmem:[#allocation14_spill] sm:$0xff] %v5990_v0  ;;  %v5994_v52 = vmul.f32 %v6701_v6, %v5979_v62 }
 0x29b   : > { %6702 = vst [vmem:[#allocation39_spill] sm:$0xff] %v5994_v52  ;;  %v1773_v58 = vadd.f32 %v5665_v23, %v1612_v39  ;;  %v1615_v63 = vadd.f32 %v3523_v24, %v5645_v48  ;;  %v2306_v45 = vpack.c.bf16 %v2261_v11, %v2260_v15  ;;  %v6703_v23 = vld [vmem:[#allocation36_spill] sm:$0xff]  ;;  %v6704_v11 = vld [vmem:[#allocation38_spill] sm:$0xff] }
 0x29d   : > { %v6000_v42 = vmax.f32 %v1773_v58, 0.0  ;;  %v1776_v3 = vadd.f32 %v5669_v37, %v1615_v63  ;;  %v3524_v7 = vpop.f32.mrb[60].mxu1  ;;  %3850 = vmatprep.mubr.bf16.mxu1 %v2306_v45  ;;  %v6705_v63 = vld [vmem:[#allocation40_spill] sm:$0xff] }
 0x29e   : > { %v3525_v33 = vpop.f32.mrb[61].mxu1 }
 0x29f   : > { %v6003_v26 = vmax.f32 %v1776_v3, 0.0  ;;  %v3526_v30 = vadd.f32 %v3525_v33, %v3524_v7  ;;  %v3527_v6 = vpop.f32.mrb[62].mxu1  ;;  %v2262_v39 = vmul.f32 %v6703_v23, %v6000_v42  ;;  %v6014_v45 = vmul.f32 %v6705_v63, %v6000_v42  ;;  %v6706_v7 = vld [vmem:[#allocation43_spill] sm:$0xff]  ;;  %v6707_v33 = vld [vmem:[#allocation50_spill] sm:$0xff]  ;;  %v6708_v63 = vld [vmem:[#allocation9_spill] sm:$0xff] }
 0x2a0   : > { %v3528_v47 = vpop.f32.mrb[63].mxu1 }
 0x2a1   : > { %v1620_v15 = vadd.f32 %v3526_v30, %v5645_v48  ;;  %v3529_v24 = vadd.f32 %v3528_v47, %v3527_v6  ;;  %v2263_v58 = vmul.f32 %v6704_v11, %v6003_v26  ;;  %v6018_v3 = vmul.f32 %v6706_v7, %v6003_v26  ;;  %v6709_v7 = vld [vmem:[#allocation5_spill] sm:$0xff] }
 0x2a3   : > { %v1781_v21 = vadd.f32 %v6707_v33, %v1620_v15  ;;  %v1623_v23 = vadd.f32 %v3529_v24, %v5645_v48  ;;  %v2309_v30 = vpack.c.bf16 %v2263_v58, %v2262_v39  ;;  %v2313_v47 = vpack.c.bf16 %v6018_v3, %v6014_v45  ;;  %v6710_v15 = vld [vmem:[#allocation44_spill] sm:$0xff]  ;;  %v6711_v39 = vld [vmem:[#allocation49_spill] sm:$0xff] }
 0x2a4   : > { %v6712_v33 = vpack.c.bf16 %v5691_v46, %v5688_v61  ;;  %v6717_v61 = vpack.c.bf16 %v5739_v41, %v5736_v50  ;;  %v6722_v46 = vpack.c.bf16 %v5778_v2, %v5774_v25  ;;  %v6728_v50 = vpack.c.bf16 %v5850_v1, %v5846_v9  ;;  %v6732_v25 = vld [vmem:[#allocation26_spill] sm:$0xff]  ;;  %v6733_v2 = vld [vmem:[#allocation7_spill] sm:$0xff] }
 0x2a5   : > { %v6024_v6 = vmax.f32 %v1781_v21, 0.0  ;;  %v1784_v11 = vadd.f32 %v5667_v31, %v1623_v23  ;;  %3851 = vmatmul.mubr.bf16.gmra.mrb[88].mxu1 %v2309_v30  ;;  %v6713_v23 = vpack.c.bf16 %v5674_v34, %v5671_v60  ;;  %v6714_v30 = vpack.c.bf16 %v5680_v18, %v5677_v51  ;;  %v6745_v9 = vld [vmem:[#allocation10_spill] sm:$0xff] }
 0x2a6   : > { %v6718_v60 = vpack.c.bf16 %v5730_v49, %v5726_v10  ;;  %v6719_v34 = vpack.c.bf16 %v5763_v44, %v5760_v57  ;;  %v6720_v51 = vpack.c.bf16 %v5754_v14, %v5750_v5  ;;  %v6721_v18 = vpack.c.bf16 %v5787_v35, %v5784_v53  ;;  %v4006_v49 = vld [vmem:[%s6454_s6] sm:$0xff]   ;;  %v4007_v57 = vld [vmem:[%s6454_s6 + $0x8] sm:$0xff]   ;;  %v4008_v44 = vld [vmem:[%s6454_s6 + $0x10] sm:$0xff]  }
 0x2a7   : > { %v6027_v37 = vmax.f32 %v1784_v11, 0.0  ;;  %v2011_v0 = vmul.f32 %v6708_v63, %v6024_v6  ;;  %v2264_v48 = vmul.f32 %v6710_v15, %v6024_v6  ;;  %v6715_v11 = vpack.c.bf16 %v5715_v55, %v5712_v17  ;;  %3858 = vmatprep.subr.bf16.mxu1 %v4006_v49  ;;  %v6735_v53 = vld [vmem:[#allocation6_spill] sm:$0xff]  ;;  %v6736_v35 = vld [vmem:[#allocation13_spill] sm:$0xff]  ;;  %v6752_v15 = vld [vmem:[#allocation39_spill] sm:$0xff] }
 0x2a8   : > { %v6725_v17 = vpack.c.bf16 %v5835_v4, %v5832_v32  ;;  %v6726_v55 = vpack.c.bf16 %v5826_v40, %v5822_v59  ;;  %v6727_v10 = vpack.c.bf16 %v5859_v38, %v5856_v36  ;;  %v6729_v41 = vpack.c.bf16 %v5883_v20, %v5880_v12  ;;  %3859 = vmatpush3.bf16.msra.mxu1 %v4006_v49  ;;  %v6742_v59 = vld [vmem:[#allocation33_spill] sm:$0xff]  ;;  %v4009_v38 = vld [vmem:[%s6454_s6 + $0x18] sm:$0xff]   ;;  %v6744_v4 = vld [vmem:[#allocation31_spill] sm:$0xff] }
 0x2a9   : > { %v2012_v52 = vmul.f32 %v6709_v7, %v6027_v37  ;;  %v2265_v24 = vmul.f32 %v6711_v39, %v6027_v37  ;;  %v2314_v21 = vpack.c.bf16 %v6027_v37, %v6024_v6  ;;  %v6730_v5 = vpack.c.bf16 %v5874_v22, %v5870_v19  ;;  %3860 = vmatprep.subr.bf16.mxu1 %v4007_v57  ;;  %v4010_v32 = vld [vmem:[%s6454_s6 + $0x20] sm:$0xff]   ;;  %v4011_v19 = vld [vmem:[%s6454_s6 + $0x28] sm:$0xff]   ;;  %v4012_v22 = vld [vmem:[%s6454_s6 + $0x30] sm:$0xff]  }
 0x2aa   : > { %v6731_v14 = vpack.c.bf16 %v5907_v27, %v5904_v28  ;;  %v6734_v20 = vpack.c.bf16 %v6732_v25, %v6733_v2  ;;  %v6738_v27 = vld [vmem:[#allocation15_spill] sm:$0xff]  ;;  %v6746_v1 = vpack.c.bf16 %v6744_v4, %v6745_v9  ;;  %v6747_v36 = vpack.c.bf16 %v5979_v62, %v5976_v16  ;;  %v6748_v12 = vld [vmem:[#allocation8_spill] sm:$0xff]  ;;  %v6202_v49 = vld [vmem:[%s6453_s5] ss:$0 sm:$0xff] }
 0x2ab   : > { %v2268_v58 = vpack.c.bf16 %v2012_v52, %v2011_v0  ;;  %v2312_v31 = vpack.c.bf16 %v2265_v24, %v2264_v48  ;;  %v6716_v0 = vpack.c.bf16 %v5706_v43, %v5702_v56  ;;  %v6723_v56 = vpack.c.bf16 %v5811_v13, %v5808_v8  ;;  %v6741_v13 = vld [vmem:[#allocation21_spill] sm:$0xff]  ;;  %v6749_v28 = vld [vmem:[#allocation20_spill] sm:$0xff]  ;;  %v6753_v48 = vld [vmem:[#allocation14_spill] sm:$0xff] }
 0x2ac   : > { %v6724_v43 = vpack.c.bf16 %v5802_v29, %v5798_v54  ;;  %3861 = vmatpush3.bf16.msra.mxu1 %v4007_v57  ;;  %v6737_v54 = vpack.c.bf16 %v6735_v53, %v6736_v35  ;;  %v6739_v29 = vld [vmem:[#allocation35_spill] sm:$0xff]  ;;  %v6743_v40 = vpack.c.bf16 %v6741_v13, %v6742_v59  ;;  %v6750_v52 = vpack.c.bf16 %v6748_v12, %v6749_v28  ;;  %v4013_v16 = vld [vmem:[%s6454_s6 + $0x38] sm:$0xff]  }
 0x2ad   : > { %2548 = vmatmul.mubr.bf16.vlgmr.msra.gmra.mrb[64].mxu0 %v2268_v58  ;;  %3854 = vmatprep.mubr.bf16.mxu1 %v2312_v31  ;;  %v6740_v8 = vpack.c.bf16 %v6738_v27, %v6739_v29  ;;  %v6751_v37 = vpack.c.bf16 %v6003_v26, %v6000_v42  ;;  %v6754_v39 = vpack.c.bf16 %v6752_v15, %v6753_v48 }
 0x2ae   : > { %2555 = vmatprep.mubr.bf16.mxu0 %v6712_v33  ;;  %3855 = vmatmul.mubr.bf16.gmra.mrb[92].mxu1 %v6713_v23 }
 0x2af   : > { %3862 = vmatprep.subr.bf16.mxu1 %v4008_v44 }
 0x2b0   : > { %3863 = vmatpush3.bf16.msra.mxu1 %v4008_v44 }
 0x2b1   : > { %3864 = vmatprep.subr.bf16.mxu1 %v4009_v38 }
 0x2b4   : > { %3865 = vmatpush3.bf16.msra.mxu1 %v4009_v38 }
 0x2b5   : > { %2556 = vmatmul.mubr.bf16.gmra.mrb[68].mxu0 %v6714_v30  ;;  %3866 = vmatprep.subr.bf16.mxu1 %v4010_v32 }
 0x2b6   : > { %2563 = vmatprep.mubr.bf16.mxu0 %v6715_v11 }
 0x2b8   : > { %3867 = vmatpush3.bf16.msra.mxu1 %v4010_v32 }
 0x2b9   : > { %3868 = vmatprep.subr.bf16.mxu1 %v4011_v19 }
 0x2bc   : > { %3869 = vmatpush3.bf16.msra.mxu1 %v4011_v19 }
 0x2bd   : > { %2564 = vmatmul.mubr.bf16.gmra.mrb[72].mxu0 %v6716_v0  ;;  %3870 = vmatprep.subr.bf16.mxu1 %v4012_v22 }
 0x2be   : > { %2571 = vmatprep.mubr.bf16.mxu0 %v6717_v61 }
 0x2c0   : > { %3871 = vmatpush3.bf16.msra.mxu1 %v4012_v22 }
 0x2c1   : > { %3872 = vmatprep.subr.bf16.mxu1 %v4013_v16 }
 0x2c4   : > { %3873 = vmatpush3.bf16.msra.mxu1 %v4013_v16 }
 0x2c5   : > { %2572 = vmatmul.mubr.bf16.gmra.mrb[76].mxu0 %v6718_v60 }
 0x2c6   : > { %2579 = vmatprep.mubr.bf16.mxu0 %v6719_v34 }
 0x2cd   : > { %2580 = vmatmul.mubr.bf16.gmra.mrb[80].mxu0 %v6720_v51 }
 0x2ce   : > { %2587 = vmatprep.mubr.bf16.mxu0 %v6721_v18 }
 0x2d5   : > { %2588 = vmatmul.mubr.bf16.gmra.mrb[84].mxu0 %v6722_v46 }
 0x2d6   : > { %2595 = vmatprep.mubr.bf16.mxu0 %v6723_v56 }
 0x2dd   : > { %2596 = vmatmul.mubr.bf16.gmra.mrb[88].mxu0 %v6724_v43 }
 0x2de   : > { %2603 = vmatprep.mubr.bf16.mxu0 %v6725_v17 }
 0x2e5   : > { %2604 = vmatmul.mubr.bf16.gmra.mrb[92].mxu0 %v6726_v55 }
 0x2e6   : > { %2611 = vmatprep.mubr.bf16.mxu0 %v6727_v10 }
 0x2ed   : > { %2612 = vmatmul.mubr.bf16.gmra.mrb[96].mxu0 %v6728_v50 }
 0x2ee   : > { %2619 = vmatprep.mubr.bf16.mxu0 %v6729_v41 }
 0x2f5   : > { %2620 = vmatmul.mubr.bf16.gmra.mrb[100].mxu0 %v6730_v5 }
 0x2f6   : > { %2627 = vmatprep.mubr.bf16.mxu0 %v6731_v14 }
 0x2fd   : > { %2628 = vmatmul.mubr.bf16.gmra.mrb[104].mxu0 %v6734_v20 }
 0x2fe   : > { %2635 = vmatprep.mubr.bf16.mxu0 %v6737_v54 }
 0x305   : > { %2636 = vmatmul.mubr.bf16.gmra.mrb[108].mxu0 %v6740_v8 }
 0x306   : > { %2643 = vmatprep.mubr.bf16.mxu0 %v6743_v40 }
 0x30d   : > { %2644 = vmatmul.mubr.bf16.gmra.mrb[112].mxu0 %v6746_v1 }
 0x30e   : > { %2651 = vmatprep.mubr.bf16.mxu0 %v6747_v36 }
 0x315   : > { %2652 = vmatmul.mubr.bf16.gmra.mrb[116].mxu0 %v6750_v52 }
 0x316   : > { %2659 = vmatprep.mubr.bf16.mxu0 %v6751_v37 }
 0x318   : > { %v3828_v62 = vpop.f32.mrb[64].mxu1 }
 0x319   : > { %v2710_v6 = vpop.f32.mrb[65].mxu1 }
 0x31a   : > { %v3829_v63 = vpop.f32.mrb[66].mxu1 }
 0x31b   : > { %v2713_v7 = vpop.f32.mrb[67].mxu1 }
 0x31d   : > { %2660 = vmatmul.mubr.bf16.gmra.mrb[120].mxu0 %v6754_v39 }
 0x31e   : > { %2667 = vmatprep.mubr.bf16.mxu0 %v2314_v21 }
 0x325   : > { %2668 = vmatmul.mubr.bf16.gmra.mrb[124].mxu0 %v2313_v47 }
 0x328   : > { %v6153_v26 = vpop.f32.mrb[68].mxu1 }
 0x329   : > { %v2726_v42 = vpop.f32.mrb[69].mxu1 }
 0x32a   : > { %v6155_v24 = vpop.f32.mrb[70].mxu1 }
 0x32b   : > { %v6157_v58 = vpop.f32.mrb[71].mxu1 }
 0x338   : > { %v6159_v31 = vpop.f32.mrb[72].mxu1 }
 0x339   : > { %v6161_v33 = vpop.f32.mrb[73].mxu1 }
 0x33a   : > { %v6163_v23 = vpop.f32.mrb[74].mxu1 }
 0x33b   : > { %v6165_v30 = vpop.f32.mrb[75].mxu1 }
 0x348   : > { %v6167_v21 = vpop.f32.mrb[76].mxu1 }
 0x349   : > { %v6169_v11 = vpop.f32.mrb[77].mxu1 }
 0x34a   : > { %v6171_v45 = vpop.f32.mrb[78].mxu1 }
 0x34b   : > { %v6173_v3 = vpop.f32.mrb[79].mxu1 }
 0x358   : > { %v6175_v47 = vpop.f32.mrb[80].mxu1 }
 0x359   : > { %v6177_v0 = vpop.f32.mrb[81].mxu1 }
 0x35a   : > { %v6179_v61 = vpop.f32.mrb[82].mxu1 }
 0x35b   : > { %v6181_v60 = vpop.f32.mrb[83].mxu1 }
 0x368   : > { %v6183_v34 = vpop.f32.mrb[84].mxu1 }
 0x369   : > { %v6185_v51 = vpop.f32.mrb[85].mxu1 }
 0x36a   : > { %v6187_v18 = vpop.f32.mrb[86].mxu1 }
 0x36b   : > { %v6189_v46 = vpop.f32.mrb[87].mxu1 }
 0x378   : > { %v6191_v56 = vpop.f32.mrb[88].mxu1 }
 0x379   : > { %v6193_v43 = vpop.f32.mrb[89].mxu1 }
 0x37a   : > { %v6195_v17 = vpop.f32.mrb[90].mxu1 }
 0x37b   : > { %v6197_v55 = vpop.f32.mrb[91].mxu1 }
 0x380   : > { %v3570_v10 = vpop.f32.mrb[64].mxu0 }
 0x381   : > { %v3571_v50 = vpop.f32.mrb[65].mxu0  ;;  %v6204_v41 = vpop.f32.mrb[92].mxu1 }
 0x382   : > { %v3572_v5 = vadd.f32 %v3571_v50, %v3570_v10  ;;  %v3573_v14 = vpop.f32.mrb[66].mxu0  ;;  %v6206_v57 = vpop.f32.mrb[93].mxu1 }
 0x383   : > { %v3574_v44 = vpop.f32.mrb[67].mxu0  ;;  %v6208_v25 = vpop.f32.mrb[94].mxu1 }
 0x384   : > { %v2550_v2 = vadd.f32 %v3572_v5, %v6202_v49  ;;  %v3575_v20 = vadd.f32 %v3574_v44, %v3573_v14  ;;  %v6211_v53 = vpop.f32.mrb[95].mxu1 }
 0x386   : > { %v2711_v35 = vadd.f32 %v2710_v6, %v2550_v2  ;;  %v2553_v54 = vadd.f32 %v3575_v20, %v6202_v49 }
 0x388   : > { %v2714_v27 = vadd.f32 %v2713_v7, %v2553_v54  ;;  %v3576_v29 = vpop.f32.mrb[68].mxu0  ;;  %v2837_v13 = vmax.f32 %v2711_v35, 0.0 }
 0x389   : > { %v3577_v8 = vpop.f32.mrb[69].mxu0 }
 0x38a   : > { %v2838_v59 = vmax.f32 %v2714_v27, 0.0  ;;  %v3578_v40 = vadd.f32 %v3577_v8, %v3576_v29  ;;  %v3579_v38 = vpop.f32.mrb[70].mxu0 }
 0x38b   : > { %v3580_v32 = vpop.f32.mrb[71].mxu0 }
 0x38c   : > { %v2558_v4 = vadd.f32 %v3578_v40, %v6202_v49  ;;  %v3581_v9 = vadd.f32 %v3580_v32, %v3579_v38  ;;  %v2869_v1 = vpack.c.bf16 %v2838_v59, %v2837_v13 }
 0x38e   : > { %v2719_v36 = vadd.f32 %v3828_v62, %v2558_v4  ;;  %v2561_v19 = vadd.f32 %v3581_v9, %v6202_v49  ;;  %3874 = vmatprep.mubr.bf16.mxu1 %v2869_v1 }
 0x390   : > { %v2722_v22 = vadd.f32 %v3829_v63, %v2561_v19  ;;  %v3582_v12 = vpop.f32.mrb[72].mxu0  ;;  %v2839_v52 = vmax.f32 %v2719_v36, 0.0 }
 0x391   : > { %v3583_v28 = vpop.f32.mrb[73].mxu0 }
 0x392   : > { %v2840_v37 = vmax.f32 %v2722_v22, 0.0  ;;  %v3584_v16 = vadd.f32 %v3583_v28, %v3582_v12  ;;  %v3585_v6 = vpop.f32.mrb[74].mxu0 }
 0x393   : > { %v3586_v7 = vpop.f32.mrb[75].mxu0 }
 0x394   : > { %v2870_v15 = vpack.c.bf16 %v2840_v37, %v2839_v52  ;;  %v2566_v48 = vadd.f32 %v3584_v16, %v6202_v49  ;;  %v3587_v39 = vadd.f32 %v3586_v7, %v3585_v6 }
 0x396   : > { %v2727_v10 = vadd.f32 %v2726_v42, %v2566_v48  ;;  %v2569_v50 = vadd.f32 %v3587_v39, %v6202_v49  ;;  %3875 = vmatmul.mubr.bf16.vlgmr.msra.gmra.mrb[96].mxu1 %v2870_v15 }
 0x398   : > { %v2730_v62 = vadd.f32 %v6157_v58, %v2569_v50  ;;  %v3588_v5 = vpop.f32.mrb[76].mxu0  ;;  %v2841_v63 = vmax.f32 %v2727_v10, 0.0 }
 0x399   : > { %v3589_v14 = vpop.f32.mrb[77].mxu0 }
 0x39a   : > { %v2842_v44 = vmax.f32 %v2730_v62, 0.0  ;;  %v3590_v2 = vadd.f32 %v3589_v14, %v3588_v5  ;;  %v3591_v20 = vpop.f32.mrb[78].mxu0 }
 0x39b   : > { %v3592_v35 = vpop.f32.mrb[79].mxu0 }
 0x39c   : > { %v2574_v54 = vadd.f32 %v3590_v2, %v6202_v49  ;;  %v3593_v27 = vadd.f32 %v3592_v35, %v3591_v20  ;;  %v2871_v29 = vpack.c.bf16 %v2842_v44, %v2841_v63 }
 0x39e   : > { %v2735_v8 = vadd.f32 %v6153_v26, %v2574_v54  ;;  %v2577_v42 = vadd.f32 %v3593_v27, %v6202_v49  ;;  %3878 = vmatprep.mubr.bf16.mxu1 %v2871_v29 }
 0x3a0   : > { %v2738_v13 = vadd.f32 %v6155_v24, %v2577_v42  ;;  %v3594_v59 = vpop.f32.mrb[80].mxu0  ;;  %v2843_v40 = vmax.f32 %v2735_v8, 0.0 }
 0x3a1   : > { %v3595_v58 = vpop.f32.mrb[81].mxu0 }
 0x3a2   : > { %v2844_v38 = vmax.f32 %v2738_v13, 0.0  ;;  %v3596_v32 = vadd.f32 %v3595_v58, %v3594_v59  ;;  %v3597_v4 = vpop.f32.mrb[82].mxu0 }
 0x3a3   : > { %v3598_v9 = vpop.f32.mrb[83].mxu0 }
 0x3a4   : > { %v2582_v1 = vadd.f32 %v3596_v32, %v6202_v49  ;;  %v3599_v36 = vadd.f32 %v3598_v9, %v3597_v4  ;;  %v2872_v19 = vpack.c.bf16 %v2844_v38, %v2843_v40 }
 0x3a6   : > { %v2743_v22 = vadd.f32 %v6161_v33, %v2582_v1  ;;  %v2585_v26 = vadd.f32 %v3599_v36, %v6202_v49  ;;  %3879 = vmatmul.mubr.bf16.gmra.mrb[100].mxu1 %v2872_v19 }
 0x3a8   : > { %v2746_v12 = vadd.f32 %v6165_v30, %v2585_v26  ;;  %v3600_v28 = vpop.f32.mrb[84].mxu0  ;;  %v2845_v52 = vmax.f32 %v2743_v22, 0.0 }
 0x3a9   : > { %v3601_v24 = vpop.f32.mrb[85].mxu0 }
 0x3aa   : > { %v2846_v37 = vmax.f32 %v2746_v12, 0.0  ;;  %v3602_v16 = vadd.f32 %v3601_v24, %v3600_v28  ;;  %v3603_v6 = vpop.f32.mrb[86].mxu0 }
 0x3ab   : > { %v3604_v7 = vpop.f32.mrb[87].mxu0 }
 0x3ac   : > { %v2590_v15 = vadd.f32 %v3602_v16, %v6202_v49  ;;  %v3605_v48 = vadd.f32 %v3604_v7, %v3603_v6  ;;  %v2873_v39 = vpack.c.bf16 %v2846_v37, %v2845_v52 }
 0x3ae   : > { %v2751_v10 = vadd.f32 %v6159_v31, %v2590_v15  ;;  %v2593_v33 = vadd.f32 %v3605_v48, %v6202_v49  ;;  %3882 = vmatprep.mubr.bf16.mxu1 %v2873_v39 }
 0x3b0   : > { %v2754_v50 = vadd.f32 %v6163_v23, %v2593_v33  ;;  %v3606_v62 = vpop.f32.mrb[88].mxu0  ;;  %v2847_v5 = vmax.f32 %v2751_v10, 0.0 }
 0x3b1   : > { %v3607_v30 = vpop.f32.mrb[89].mxu0 }
 0x3b2   : > { %v2848_v14 = vmax.f32 %v2754_v50, 0.0  ;;  %v3608_v63 = vadd.f32 %v3607_v30, %v3606_v62  ;;  %v3609_v44 = vpop.f32.mrb[90].mxu0 }
 0x3b3   : > { %v3610_v2 = vpop.f32.mrb[91].mxu0 }
 0x3b4   : > { %v2598_v20 = vadd.f32 %v3608_v63, %v6202_v49  ;;  %v3611_v35 = vadd.f32 %v3610_v2, %v3609_v44  ;;  %v2874_v54 = vpack.c.bf16 %v2848_v14, %v2847_v5 }
 0x3b6   : > { %v2759_v27 = vadd.f32 %v6169_v11, %v2598_v20  ;;  %v2601_v31 = vadd.f32 %v3611_v35, %v6202_v49  ;;  %3883 = vmatmul.mubr.bf16.gmra.mrb[104].mxu1 %v2874_v54 }
 0x3b8   : > { %v2762_v29 = vadd.f32 %v6173_v3, %v2601_v31  ;;  %v3612_v8 = vpop.f32.mrb[92].mxu0  ;;  %v2849_v42 = vmax.f32 %v2759_v27, 0.0 }
 0x3b9   : > { %v3613_v23 = vpop.f32.mrb[93].mxu0 }
 0x3ba   : > { %v2850_v13 = vmax.f32 %v2762_v29, 0.0  ;;  %v3614_v59 = vadd.f32 %v3613_v23, %v3612_v8  ;;  %v3615_v58 = vpop.f32.mrb[94].mxu0 }
 0x3bb   : > { %v3616_v40 = vpop.f32.mrb[95].mxu0 }
 0x3bc   : > { %v2606_v38 = vadd.f32 %v3614_v59, %v6202_v49  ;;  %v3617_v32 = vadd.f32 %v3616_v40, %v3615_v58  ;;  %v2875_v4 = vpack.c.bf16 %v2850_v13, %v2849_v42 }
 0x3be   : > { %v2767_v9 = vadd.f32 %v6167_v21, %v2606_v38  ;;  %v2609_v11 = vadd.f32 %v3617_v32, %v6202_v49  ;;  %3886 = vmatprep.mubr.bf16.mxu1 %v2875_v4 }
 0x3c0   : > { %v2770_v1 = vadd.f32 %v6171_v45, %v2609_v11  ;;  %v3618_v36 = vpop.f32.mrb[96].mxu0  ;;  %v2851_v19 = vmax.f32 %v2767_v9, 0.0 }
 0x3c1   : > { %v3619_v3 = vpop.f32.mrb[97].mxu0 }
 0x3c2   : > { %v2852_v22 = vmax.f32 %v2770_v1, 0.0  ;;  %v3620_v26 = vadd.f32 %v3619_v3, %v3618_v36  ;;  %v3621_v12 = vpop.f32.mrb[98].mxu0 }
 0x3c3   : > { %v3622_v28 = vpop.f32.mrb[99].mxu0 }
 0x3c4   : > { %v2614_v24 = vadd.f32 %v3620_v26, %v6202_v49  ;;  %v3623_v52 = vadd.f32 %v3622_v28, %v3621_v12  ;;  %v2876_v37 = vpack.c.bf16 %v2852_v22, %v2851_v19 }
 0x3c6   : > { %v2775_v16 = vadd.f32 %v6177_v0, %v2614_v24  ;;  %v2617_v21 = vadd.f32 %v3623_v52, %v6202_v49  ;;  %3887 = vmatmul.mubr.bf16.gmra.mrb[108].mxu1 %v2876_v37 }
 0x3c8   : > { %v2778_v6 = vadd.f32 %v6181_v60, %v2617_v21  ;;  %v3624_v7 = vpop.f32.mrb[100].mxu0  ;;  %v2853_v15 = vmax.f32 %v2775_v16, 0.0 }
 0x3c9   : > { %v3625_v45 = vpop.f32.mrb[101].mxu0 }
 0x3ca   : > { %v2854_v48 = vmax.f32 %v2778_v6, 0.0  ;;  %v3626_v39 = vadd.f32 %v3625_v45, %v3624_v7  ;;  %v3627_v10 = vpop.f32.mrb[102].mxu0 }
 0x3cb   : > { %v3628_v33 = vpop.f32.mrb[103].mxu0 }
 0x3cc   : > { %v2622_v50 = vadd.f32 %v3626_v39, %v6202_v49  ;;  %v3629_v62 = vadd.f32 %v3628_v33, %v3627_v10  ;;  %v2877_v30 = vpack.c.bf16 %v2854_v48, %v2853_v15 }
 0x3ce   : > { %v2783_v5 = vadd.f32 %v6175_v47, %v2622_v50  ;;  %v2625_v0 = vadd.f32 %v3629_v62, %v6202_v49  ;;  %3890 = vmatprep.mubr.bf16.mxu1 %v2877_v30  ;;  %v6264_v30 = vld [vmem:[%s4267_s22] sm:$0xff] }
 0x3d0   : > { %v2786_v14 = vadd.f32 %v6179_v61, %v2625_v0  ;;  %v3630_v63 = vpop.f32.mrb[104].mxu0  ;;  %v2855_v44 = vmax.f32 %v2783_v5, 0.0  ;;  %v6267_v5 = vld [vmem:[%s4267_s22 + $0x8] sm:$0xff] }
 0x3d1   : > { %v3631_v60 = vpop.f32.mrb[105].mxu0 }
 0x3d2   : > { %v2856_v2 = vmax.f32 %v2786_v14, 0.0  ;;  %v3632_v20 = vadd.f32 %v3631_v60, %v3630_v63  ;;  %v3633_v35 = vpop.f32.mrb[106].mxu0  ;;  %v364_v14 = vpack.c.bf16 %v6267_v5, %v6264_v30 }
 0x3d3   : > { %v3634_v54 = vpop.f32.mrb[107].mxu0 }
 0x3d4   : > { %v2630_v27 = vadd.f32 %v3632_v20, %v6202_v49  ;;  %v3635_v31 = vadd.f32 %v3634_v54, %v3633_v35  ;;  %v2878_v29 = vpack.c.bf16 %v2856_v2, %v2855_v44  ;;  %3730 = vmatprep.mubr.bf16.mxu0 %v364_v14 }
 0x3d6   : > { %v2791_v8 = vadd.f32 %v6185_v51, %v2630_v27  ;;  %v2633_v47 = vadd.f32 %v3635_v31, %v6202_v49  ;;  %3891 = vmatmul.mubr.bf16.gmra.mrb[112].mxu1 %v2878_v29 }
 0x3d8   : > { %v2794_v23 = vadd.f32 %v6189_v46, %v2633_v47  ;;  %v3636_v42 = vpop.f32.mrb[108].mxu0  ;;  %v2857_v13 = vmax.f32 %v2791_v8, 0.0 }
 0x3d9   : > { %v3637_v61 = vpop.f32.mrb[109].mxu0 }
 0x3da   : > { %v2858_v59 = vmax.f32 %v2794_v23, 0.0  ;;  %v3638_v58 = vadd.f32 %v3637_v61, %v3636_v42  ;;  %v3639_v40 = vpop.f32.mrb[110].mxu0 }
 0x3db   : > { %v3640_v38 = vpop.f32.mrb[111].mxu0 }
 0x3dc   : > { %v2638_v32 = vadd.f32 %v3638_v58, %v6202_v49  ;;  %v3641_v4 = vadd.f32 %v3640_v38, %v3639_v40  ;;  %v2879_v9 = vpack.c.bf16 %v2858_v59, %v2857_v13 }
 0x3de   : > { %v2799_v11 = vadd.f32 %v6183_v34, %v2638_v32  ;;  %v2641_v51 = vadd.f32 %v3641_v4, %v6202_v49  ;;  %3894 = vmatprep.mubr.bf16.mxu1 %v2879_v9 }
 0x3e0   : > { %v2802_v1 = vadd.f32 %v6187_v18, %v2641_v51  ;;  %v3642_v36 = vpop.f32.mrb[112].mxu0  ;;  %v2859_v3 = vmax.f32 %v2799_v11, 0.0  ;;  %v336_v11 = vld [vmem:[%s4267_s22 + $0x20] sm:$0xff]  ;;  %v337_v51 = vld [vmem:[%s4267_s22 + $0x28] sm:$0xff] }
 0x3e1   : > { %v3643_v46 = vpop.f32.mrb[113].mxu0 }
 0x3e2   : > { %v2860_v19 = vmax.f32 %v2802_v1, 0.0  ;;  %v3644_v22 = vadd.f32 %v3643_v46, %v3642_v36  ;;  %v3645_v26 = vpop.f32.mrb[114].mxu0  ;;  %v6282_v1 = vld [vmem:[%s4267_s22 + $0x40] sm:$0xff]  ;;  %v6285_v36 = vld [vmem:[%s4267_s22 + $0x48] sm:$0xff] }
 0x3e3   : > { %v3646_v12 = vpop.f32.mrb[115].mxu0  ;;  %v6294_v46 = vld [vmem:[%s4267_s22 + $0x80] sm:$0xff] }
 0x3e4   : > { %v2646_v28 = vadd.f32 %v3644_v22, %v6202_v49  ;;  %v3647_v24 = vadd.f32 %v3646_v12, %v3645_v26  ;;  %v2880_v52 = vpack.c.bf16 %v2860_v19, %v2859_v3  ;;  %v366_v3 = vpack.c.bf16 %v337_v51, %v336_v11  ;;  %v6300_v19 = vld [vmem:[%s4267_s22 + $0xa0] sm:$0xff]  ;;  %v6303_v22 = vld [vmem:[%s4267_s22 + $0xa8] sm:$0xff] }
 0x3e5   : > { %v368_v26 = vpack.c.bf16 %v6285_v36, %v6282_v1 }
 0x3e6   : > { %v2807_v37 = vadd.f32 %v6193_v43, %v2646_v28  ;;  %v2649_v34 = vadd.f32 %v3647_v24, %v6202_v49  ;;  %3895 = vmatmul.mubr.bf16.gmra.mrb[116].mxu1 %v2880_v52  ;;  %v6312_v24 = vld [vmem:[%s4267_s22 + $0xc0] sm:$0xff]  ;;  %v6315_v52 = vld [vmem:[%s4267_s22 + $0xc8] sm:$0xff]  ;;  %3734 = vmatprep.mubr.bf16.mxu0 %v366_v3 }
 0x3e7   : > { %3738 = vmatprep.mubr.bf16.mxu0 %v368_v26 }
 0x3e8   : > { %v2810_v16 = vadd.f32 %v6197_v55, %v2649_v34  ;;  %v3648_v18 = vpop.f32.mrb[116].mxu0  ;;  %v2861_v6 = vmax.f32 %v2807_v37, 0.0  ;;  %v374_v37 = vpack.c.bf16 %v6303_v22, %v6300_v19  ;;  %v6320_v34 = vld [vmem:[%s4267_s22 + $0xe0] sm:$0xff] }
 0x3e9   : > { %v3649_v21 = vpop.f32.mrb[117].mxu0 }
 0x3ea   : > { %v2862_v7 = vmax.f32 %v2810_v16, 0.0  ;;  %v3650_v45 = vadd.f32 %v3649_v21, %v3648_v18  ;;  %v3651_v15 = vpop.f32.mrb[118].mxu0  ;;  %v6323_v16 = vld [vmem:[%s4267_s22 + $0xe8] sm:$0xff]  ;;  %v376_v18 = vpack.c.bf16 %v6315_v52, %v6312_v24 }
 0x3eb   : > { %v3652_v48 = vpop.f32.mrb[119].mxu0  ;;  %v378_v21 = vpack.c.bf16 %v6323_v16, %v6320_v34 }
 0x3ec   : > { %v2654_v39 = vadd.f32 %v3650_v45, %v6202_v49  ;;  %v3653_v10 = vadd.f32 %v3652_v48, %v3651_v15  ;;  %v2881_v33 = vpack.c.bf16 %v2862_v7, %v2861_v6  ;;  %v4014_v7 = vld [vmem:[%s4267_s22 + $0x10] sm:$0xff] }
 0x3ee   : > { %v2815_v43 = vadd.f32 %v6191_v56, %v2654_v39  ;;  %v2657_v50 = vadd.f32 %v3653_v10, %v6202_v49  ;;  %3898 = vmatprep.mubr.bf16.mxu1 %v2881_v33  ;;  %v4015_v33 = vld [vmem:[%s4267_s22 + $0x18] sm:$0xff] }
 0x3f0   : > { %v2818_v55 = vadd.f32 %v6195_v17, %v2657_v50  ;;  %v3654_v62 = vpop.f32.mrb[120].mxu0  ;;  %v2863_v63 = vmax.f32 %v2815_v43, 0.0 }
 0x3f1   : > { %v3655_v0 = vpop.f32.mrb[121].mxu0 }
 0x3f2   : > { %v2864_v60 = vmax.f32 %v2818_v55, 0.0  ;;  %v3656_v44 = vadd.f32 %v3655_v0, %v3654_v62  ;;  %v3657_v2 = vpop.f32.mrb[122].mxu0 }
 0x3f3   : > { %v3658_v20 = vpop.f32.mrb[123].mxu0 }
 0x3f4   : > { %v2662_v56 = vadd.f32 %v3656_v44, %v6202_v49  ;;  %v3659_v35 = vadd.f32 %v3658_v20, %v3657_v2  ;;  %v2882_v54 = vpack.c.bf16 %v2864_v60, %v2863_v63  ;;  %v4016_v63 = vld [vmem:[%s4267_s22 + $0x30] sm:$0xff] }
 0x3f6   : > { %v2823_v17 = vadd.f32 %v6206_v57, %v2662_v56  ;;  %v2665_v27 = vadd.f32 %v3659_v35, %v6202_v49  ;;  %3899 = vmatmul.mubr.bf16.gmra.mrb[120].mxu1 %v2882_v54  ;;  %v4017_v56 = vld [vmem:[%s4267_s22 + $0x38] sm:$0xff] }
 0x3f8   : > { %v2826_v31 = vadd.f32 %v6211_v53, %v2665_v27  ;;  %v3660_v29 = vpop.f32.mrb[124].mxu0  ;;  %v2865_v47 = vmax.f32 %v2823_v17, 0.0 }
 0x3f9   : > { %v3661_v8 = vpop.f32.mrb[125].mxu0 }
 0x3fa   : > { %v2866_v23 = vmax.f32 %v2826_v31, 0.0  ;;  %v3662_v42 = vadd.f32 %v3661_v8, %v3660_v29  ;;  %v3663_v61 = vpop.f32.mrb[126].mxu0 }
 0x3fb   : > { %v3664_v13 = vpop.f32.mrb[127].mxu0 }
 0x3fc   : > { %v2670_v59 = vadd.f32 %v3662_v42, %v6202_v49  ;;  %v3665_v57 = vadd.f32 %v3664_v13, %v3663_v61  ;;  %v2883_v58 = vpack.c.bf16 %v2866_v23, %v2865_v47  ;;  %v4018_v47 = vld [vmem:[%s4267_s22 + $0x50] sm:$0xff] }
 0x3fe   : > { %v2831_v53 = vadd.f32 %v6204_v41, %v2670_v59  ;;  %v2673_v40 = vadd.f32 %v3665_v57, %v6202_v49  ;;  %3902 = vmatprep.mubr.bf16.mxu1 %v2883_v58  ;;  %v6288_v49 = vld [vmem:[%s4267_s22 + $0x60] sm:$0xff]  ;;  %v6291_v41 = vld [vmem:[%s4267_s22 + $0x68] sm:$0xff]  ;;  %v4019_v57 = vld [vmem:[%s4267_s22 + $0x58] sm:$0xff] }
 0x3ff   : > { %v370_v12 = vpack.c.bf16 %v6291_v41, %v6288_v49 }
 0x400   : > { %v2834_v38 = vadd.f32 %v6208_v25, %v2673_v40  ;;  %v2867_v32 = vmax.f32 %v2831_v53, 0.0  ;;  %v6297_v25 = vld [vmem:[%s4267_s22 + $0x88] sm:$0xff] }
 0x401   : > { %v372_v28 = vpack.c.bf16 %v6297_v25, %v6294_v46  ;;  %3742 = vmatprep.mubr.bf16.mxu0 %v370_v12 }
 0x402   : > { %v2868_v4 = vmax.f32 %v2834_v38, 0.0 }
 0x403   : > { %3746 = vmatprep.mubr.bf16.mxu0 %v372_v28 }
 0x404   : > { %v2884_v9 = vpack.c.bf16 %v2868_v4, %v2867_v32  ;;  %3750 = vmatprep.mubr.bf16.mxu0 %v374_v37 }
 0x405   : > { %3754 = vmatprep.mubr.bf16.mxu0 %v376_v18 }
 0x406   : > { %3903 = vmatmul.mubr.bf16.gmra.mrb[124].mxu1 %v2884_v9  ;;  %3758 = vmatprep.mubr.bf16.mxu0 %v378_v21 }
 0x469   : > { %v3876_v6 = vpop.f32.mrb[96].mxu1 }
 0x46a   : > { %v2992_v45 = vadd.f32 %v4014_v7, %v3876_v6  ;;  %v2983_v15 = vpop.f32.mrb[97].mxu1 }
 0x46b   : > { %v2984_v48 = vadd.f32 %v2983_v15, %v6264_v30  ;;  %v3877_v39 = vpop.f32.mrb[98].mxu1 }
 0x46c   : > { %v3112_v10 = vmax.f32 %v2992_v45, 0.0  ;;  %v2995_v43 = vadd.f32 %v4015_v33, %v3877_v39  ;;  %v2986_v50 = vpop.f32.mrb[99].mxu1 }
 0x46d   : > { %v3110_v55 = vmax.f32 %v2984_v48, 0.0  ;;  %v2987_v62 = vadd.f32 %v2986_v50, %v6267_v5 }
 0x46e   : > { %3144 = vst [vmem:[%s6336_s27 + $0x10] sm:$0xff] %v3112_v10  ;;  %v3113_v0 = vmax.f32 %v2995_v43, 0.0 }
 0x46f   : > { %3142 = vst [vmem:[%s6336_s27] sm:$0xff] %v3110_v55  ;;  %v3111_v30 = vmax.f32 %v2987_v62, 0.0 }
 0x470   : > { %3145 = vst [vmem:[%s6336_s27 + $0x18] sm:$0xff] %v3113_v0 }
 0x471   : > { %3143 = vst [vmem:[%s6336_s27 + $0x8] sm:$0xff] %v3111_v30 }
 0x479   : > { %v3880_v14 = vpop.f32.mrb[100].mxu1 }
 0x47a   : > { %v3008_v60 = vadd.f32 %v4016_v63, %v3880_v14  ;;  %v2999_v5 = vpop.f32.mrb[101].mxu1 }
 0x47b   : > { %v3000_v44 = vadd.f32 %v2999_v5, %v336_v11  ;;  %v3881_v2 = vpop.f32.mrb[102].mxu1  ;;  %v4020_v11 = vld [vmem:[%s4267_s22 + $0x70] sm:$0xff] }
 0x47c   : > { %v3116_v20 = vmax.f32 %v3008_v60, 0.0  ;;  %v3011_v35 = vadd.f32 %v4017_v56, %v3881_v2  ;;  %v3002_v54 = vpop.f32.mrb[103].mxu1 }
 0x47d   : > { %v3114_v17 = vmax.f32 %v3000_v44, 0.0  ;;  %v3003_v27 = vadd.f32 %v3002_v54, %v337_v51 }
 0x47e   : > { %3148 = vst [vmem:[%s6336_s27 + $0x30] sm:$0xff] %v3116_v20  ;;  %v3117_v31 = vmax.f32 %v3011_v35, 0.0 }
 0x47f   : > { %3146 = vst [vmem:[%s6336_s27 + $0x20] sm:$0xff] %v3114_v17  ;;  %v3115_v29 = vmax.f32 %v3003_v27, 0.0 }
 0x480   : > { %3149 = vst [vmem:[%s6336_s27 + $0x38] sm:$0xff] %v3117_v31 }
 0x481   : > { %3147 = vst [vmem:[%s6336_s27 + $0x28] sm:$0xff] %v3115_v29 }
 0x489   : > { %v3884_v8 = vpop.f32.mrb[104].mxu1 }
 0x48a   : > { %v3024_v23 = vadd.f32 %v4018_v47, %v3884_v8  ;;  %v3015_v42 = vpop.f32.mrb[105].mxu1 }
 0x48b   : > { %v3016_v61 = vadd.f32 %v3015_v42, %v6282_v1  ;;  %v3885_v13 = vpop.f32.mrb[106].mxu1 }
 0x48c   : > { %v3120_v59 = vmax.f32 %v3024_v23, 0.0  ;;  %v3027_v58 = vadd.f32 %v4019_v57, %v3885_v13  ;;  %v3018_v53 = vpop.f32.mrb[107].mxu1 }
 0x48d   : > { %v3118_v40 = vmax.f32 %v3016_v61, 0.0  ;;  %v3019_v38 = vadd.f32 %v3018_v53, %v6285_v36  ;;  %v4021_v36 = vld [vmem:[%s4267_s22 + $0x78] sm:$0xff] }
 0x48e   : > { %3152 = vst [vmem:[%s6336_s27 + $0x50] sm:$0xff] %v3120_v59  ;;  %v3121_v32 = vmax.f32 %v3027_v58, 0.0 }
 0x48f   : > { %3150 = vst [vmem:[%s6336_s27 + $0x40] sm:$0xff] %v3118_v40  ;;  %v3119_v4 = vmax.f32 %v3019_v38, 0.0 }
 0x490   : > { %3153 = vst [vmem:[%s6336_s27 + $0x58] sm:$0xff] %v3121_v32 }
 0x491   : > { %3151 = vst [vmem:[%s6336_s27 + $0x48] sm:$0xff] %v3119_v4 }
 0x499   : > { %v3888_v9 = vpop.f32.mrb[108].mxu1 }
 0x49a   : > { %v3040_v51 = vadd.f32 %v4020_v11, %v3888_v9  ;;  %v3031_v1 = vpop.f32.mrb[109].mxu1  ;;  %v4029_v11 = vld [vmem:[%s4267_s22 + $0xf8] sm:$0xff] }
 0x49b   : > { %v3032_v3 = vadd.f32 %v3031_v1, %v6288_v49  ;;  %v3889_v26 = vpop.f32.mrb[110].mxu1  ;;  %v4022_v49 = vld [vmem:[%s4267_s22 + $0x90] sm:$0xff] }
 0x49c   : > { %v3124_v12 = vmax.f32 %v3040_v51, 0.0  ;;  %v3043_v28 = vadd.f32 %v4021_v36, %v3889_v26  ;;  %v3034_v37 = vpop.f32.mrb[111].mxu1 }
 0x49d   : > { %v3122_v18 = vmax.f32 %v3032_v3, 0.0  ;;  %v3035_v21 = vadd.f32 %v3034_v37, %v6291_v41  ;;  %v4023_v41 = vld [vmem:[%s4267_s22 + $0x98] sm:$0xff] }
 0x49e   : > { %3156 = vst [vmem:[%s6336_s27 + $0x70] sm:$0xff] %v3124_v12  ;;  %v3125_v6 = vmax.f32 %v3043_v28, 0.0 }
 0x49f   : > { %3154 = vst [vmem:[%s6336_s27 + $0x60] sm:$0xff] %v3122_v18  ;;  %v3123_v7 = vmax.f32 %v3035_v21, 0.0 }
 0x4a0   : > { %3157 = vst [vmem:[%s6336_s27 + $0x78] sm:$0xff] %v3125_v6 }
 0x4a1   : > { %3155 = vst [vmem:[%s6336_s27 + $0x68] sm:$0xff] %v3123_v7 }
 0x4a9   : > { %v3892_v45 = vpop.f32.mrb[112].mxu1 }
 0x4aa   : > { %v3056_v15 = vadd.f32 %v4022_v49, %v3892_v45  ;;  %v3047_v48 = vpop.f32.mrb[113].mxu1 }
 0x4ab   : > { %v3048_v39 = vadd.f32 %v3047_v48, %v6294_v46  ;;  %v3893_v10 = vpop.f32.mrb[114].mxu1  ;;  %v4024_v46 = vld [vmem:[%s4267_s22 + $0xb0] sm:$0xff] }
 0x4ac   : > { %v3128_v33 = vmax.f32 %v3056_v15, 0.0  ;;  %v3059_v43 = vadd.f32 %v4023_v41, %v3893_v10  ;;  %v3050_v50 = vpop.f32.mrb[115].mxu1 }
 0x4ad   : > { %v3126_v55 = vmax.f32 %v3048_v39, 0.0  ;;  %v3051_v62 = vadd.f32 %v3050_v50, %v6297_v25  ;;  %v4025_v25 = vld [vmem:[%s4267_s22 + $0xb8] sm:$0xff] }
 0x4ae   : > { %3160 = vst [vmem:[%s6336_s27 + $0x90] sm:$0xff] %v3128_v33  ;;  %v3129_v0 = vmax.f32 %v3059_v43, 0.0 }
 0x4af   : > { %3158 = vst [vmem:[%s6336_s27 + $0x80] sm:$0xff] %v3126_v55  ;;  %v3127_v30 = vmax.f32 %v3051_v62, 0.0 }
 0x4b0   : > { %3161 = vst [vmem:[%s6336_s27 + $0x98] sm:$0xff] %v3129_v0 }
 0x4b1   : > { %3159 = vst [vmem:[%s6336_s27 + $0x88] sm:$0xff] %v3127_v30 }
 0x4b9   : > { %v3896_v14 = vpop.f32.mrb[116].mxu1 }
 0x4ba   : > { %v3072_v63 = vadd.f32 %v4024_v46, %v3896_v14  ;;  %v3063_v60 = vpop.f32.mrb[117].mxu1 }
 0x4bb   : > { %v3064_v5 = vadd.f32 %v3063_v60, %v6300_v19  ;;  %v3897_v44 = vpop.f32.mrb[118].mxu1  ;;  %v4026_v19 = vld [vmem:[%s4267_s22 + $0xd0] sm:$0xff] }
 0x4bc   : > { %v3132_v2 = vmax.f32 %v3072_v63, 0.0  ;;  %v3075_v20 = vadd.f32 %v4025_v25, %v3897_v44  ;;  %v3066_v56 = vpop.f32.mrb[119].mxu1 }
 0x4bd   : > { %v3130_v35 = vmax.f32 %v3064_v5, 0.0  ;;  %v3067_v54 = vadd.f32 %v3066_v56, %v6303_v22  ;;  %v4027_v22 = vld [vmem:[%s4267_s22 + $0xd8] sm:$0xff] }
 0x4be   : > { %3164 = vst [vmem:[%s6336_s27 + $0xb0] sm:$0xff] %v3132_v2  ;;  %v3133_v17 = vmax.f32 %v3075_v20, 0.0 }
 0x4bf   : > { %3162 = vst [vmem:[%s6336_s27 + $0xa0] sm:$0xff] %v3130_v35  ;;  %v3131_v27 = vmax.f32 %v3067_v54, 0.0 }
 0x4c0   : > { %3165 = vst [vmem:[%s6336_s27 + $0xb8] sm:$0xff] %v3133_v17 }
 0x4c1   : > { %3163 = vst [vmem:[%s6336_s27 + $0xa8] sm:$0xff] %v3131_v27 }
 0x4c9   : > { %v3900_v31 = vpop.f32.mrb[120].mxu1 }
 0x4ca   : > { %v3088_v29 = vadd.f32 %v4026_v19, %v3900_v31  ;;  %v3079_v8 = vpop.f32.mrb[121].mxu1 }
 0x4cb   : > { %v3080_v47 = vadd.f32 %v3079_v8, %v6312_v24  ;;  %v3901_v23 = vpop.f32.mrb[122].mxu1  ;;  %v4028_v24 = vld [vmem:[%s4267_s22 + $0xf0] sm:$0xff]  ;;  %s4030_s22 = scalar_lea.vmem %s6400_s14, 4096 }
 0x4cc   : > { %v3136_v42 = vmax.f32 %v3088_v29, 0.0  ;;  %v3091_v61 = vadd.f32 %v4027_v22, %v3901_v23  ;;  %v3082_v13 = vpop.f32.mrb[123].mxu1  ;;  %p4031_p11 = scmp.ne.s32.totalorder %s6400_s14, %s4030_s22  ;;  %p4038_p1 = scmp.lt.s32.totalorder %s4036_s25, %s4030_s22 }
 0x4cd   : > { %v3134_v59 = vmax.f32 %v3080_v47, 0.0  ;;  %v3083_v57 = vadd.f32 %v3082_v13, %v6315_v52 }
 0x4ce   : > { %3168 = vst [vmem:[%s6336_s27 + $0xd0] sm:$0xff] %v3136_v42  ;;  %v3137_v58 = vmax.f32 %v3091_v61, 0.0  ;;  %p4032_p12 = pnand %p4031_p11, %p4186_p5  ;;  %p4039_p2 = por %p4038_p1, %p4037_p0 }
 0x4cf   : > { %3166 = vst [vmem:[%s6336_s27 + $0xc0] sm:$0xff] %v3134_v59  ;;  %v3135_v53 = vmax.f32 %v3083_v57, 0.0 }
 0x4d0   : > { %3169 = vst [vmem:[%s6336_s27 + $0xd8] sm:$0xff] %v3137_v58  ;;  %p4033_p13 = pneg %p4032_p12 }
 0x4d1   : > { %3167 = vst [vmem:[%s6336_s27 + $0xc8] sm:$0xff] %v3135_v53 }
 0x4d2   : > { %p4040_p3 = pnand %p4039_p2, %p4033_p13 }
 0x4d9   : > { %v3904_v40 = vpop.f32.mrb[124].mxu1 }
 0x4da   : > { %v3104_v38 = vadd.f32 %v4028_v24, %v3904_v40  ;;  %v3095_v32 = vpop.f32.mrb[125].mxu1 }
 0x4db   : > { %v3096_v4 = vadd.f32 %v3095_v32, %v6320_v34  ;;  %v3905_v9 = vpop.f32.mrb[126].mxu1 }
 0x4dc   : > { %v3140_v52 = vmax.f32 %v3104_v38, 0.0  ;;  %v3107_v51 = vadd.f32 %v4029_v11, %v3905_v9  ;;  %v3098_v1 = vpop.f32.mrb[127].mxu1 }
 0x4dd   : > { %v3138_v3 = vmax.f32 %v3096_v4, 0.0  ;;  %v3099_v26 = vadd.f32 %v3098_v1, %v6323_v16 }
 0x4de   : > { %3172 = vst [vmem:[%s6336_s27 + $0xf0] sm:$0xff] %v3140_v52  ;;  %v3141_v12 = vmax.f32 %v3107_v51, 0.0 }
 0x4df   : > { %3170 = vst [vmem:[%s6336_s27 + $0xe0] sm:$0xff] %v3138_v3  ;;  %v3139_v34 = vmax.f32 %v3099_v26, 0.0 }
 0x4e0   : > { %3173 = vst [vmem:[%s6336_s27 + $0xf8] sm:$0xff] %v3141_v12 }
 0x4e1   : > { %3171 = vst [vmem:[%s6336_s27 + $0xe8] sm:$0xff] %v3139_v34 }
 0x4e2   : > { %4043 = shalt.err (!%p4040_p3)
}
 0x4e3   : > { %s4044_s26 = scalar_lea.hbm %s6398_s21, 4096  ;;  %s4048_s28 = scalar_lea.hbm %s6457_s9, 8192 }
 0x4e4   : > { %p4045_p4 = scmp.ne.s32.totalorder %s6398_s21, %s4044_s26  ;;  %p4049_p9 = scmp.lt.u32.totalorder %s6398_s21, %s6457_s9 }
 0x4e5   : > { %p4050_p10 = scmp.lt.u32.totalorder %s4048_s28, %s4044_s26  ;;  %p4052_p12 = scmp.lt.u32.totalorder %s4044_s26, %s6398_s21 }
 0x4e6   : > { %p4046_p7 = pnand %p4045_p4, %p4186_p5 }
 0x4e7   : > { %p4051_p11 = por %p4050_p10, %p4049_p9 }
 0x4e8   : > { %p4047_p8 = pneg %p4046_p7 }
 0x4e9   : > { %p4053_p13 = por %p4052_p12, %p4051_p11 }
 0x4eb   : > { %p4054_p0 = pnand %p4053_p13, %p4047_p8 }
 0x4ed   : > { %4057 = shalt.err (!%p4054_p0)
}
 0x4ee   : > { %s4096_s22 = smov 128   ;;  %s4097_s29 = smov 8  }
 0x4ef   : > { %3906 = dma.vmem_to_hbm [thread:$0]  (%p4186_p5), %s6400_s14, 4096, %s6398_s21, %s6407_s13, %s4096_s22, %s4096_s22, %s4097_s29  }
 0x4f0 PF: > { %p3912_p1 = scmp.ge.s32.totalorder %s4092_s12, 2  ;;  %s3203_s23 = sand.u32 1, %s4080_s30  }
 0x4f1   : > { %s3204_s25 = scalar_lea.sflag [#allocation3], %s3203_s23 }
 0x4f2   : > { %p3909_p2 = pnand %p3912_p1, %p4190_p6 }
 0x4f4   : > { %4075 = dma.done.wait (!%p3909_p2), %s3204_s25, 4096  }
 0x4f5   : > { %4077 = vsyncadd (!%p3909_p2), %s3204_s25, 4294963200  ;;  %p19_p3 = scmp.ge.s32.totalorder %s4173_s15, 4   ;;  %s6755_s30 = smov %s4084_s10 }
 0x4f6   : > { %s6756_s10 = smov %s4088_s11  ;;  %s6757_s11 = smov %s4184_s18 }
 0x4f7   : > { %s6758_s12 = smov %s4173_s15  ;;  %21 = sbr.rel (!%p19_p3) target bundleno = 3 (0x3), region = 93 }
 0x4fe   :  { %3209 = vsyncpa [#allocation3], 1 }
 0x4ff   :  { %3211 = vsyncpa [#allocation3 + $0x1], 1 }

</bundles_post_ra>
